<compile_context>
chip_gen: v7x
topology: tpu7x:2x2x1
jax: 0.10.0
libtpu: 0.0.40
codegen_flags: <defaults>
</compile_context>

<pallas_src>
import math
from functools import partial

import jax
import jax.numpy as jnp
from jax.experimental import pallas as pl
from jax.experimental.pallas import tpu as pltpu


# ----------------------------------------------------------------------------
# Small helpers
# ----------------------------------------------------------------------------

def _round_up(x, m):
    return ((x + m - 1) // m) * m


def _pick_row_tile(mp, maxt=512):
    """Largest row tile <= maxt that divides mp and gives >=2 grid steps."""
    for t in (512, 256, 128, 64, 32, 16, 8):
        if t <= maxt and mp % t == 0 and mp // t >= 2:
            return t
    return mp


def _pick_lane_tile(npix, want_split):
    """Lane (pixel) tile for the NCHW conv matmul: use the full extent when it
    fits comfortably (biggest-tile rule); split only to bound VMEM or to feed
    both megacore cores when the batch grid axis alone cannot."""
    if npix > 2048:
        for t in (2048, 1024, 512, 256):
            if npix % t == 0:
                return t
    if want_split:
        for t in (512, 256, 128):
            if npix % t == 0 and npix // t >= 2:
                return t
    return npix


_COMPILER_PARAMS_2D = pltpu.CompilerParams(
    dimension_semantics=("parallel", "parallel"),
    vmem_limit_bytes=32 * 1024 * 1024)

_COMPILER_PARAMS_3D = pltpu.CompilerParams(
    dimension_semantics=("parallel", "parallel", "parallel"),
    vmem_limit_bytes=32 * 1024 * 1024)


# ----------------------------------------------------------------------------
# Pallas kernels: fused matmul family for the transformer
# (bias + activation [+ LN prologue] [+ residual epilogue]),
# bf16 operands, f32 accumulation.
# ----------------------------------------------------------------------------

def _mm_epilogue(acc, b_ref, activation):
    acc = acc + b_ref[...].astype(jnp.float32)
    if activation == "relu":
        acc = jnp.maximum(acc, 0.0)
    elif activation == "gelu":
        # TODO(synk): PyTorch nn.GELU default is the exact erf GELU; the tanh
        # approximation is used here for a guaranteed EUP lowering.
        acc = jax.nn.gelu(acc, approximate=True)
    return acc


def _mm_plain_kernel(x_ref, w_ref, b_ref, o_ref, *, activation):
    acc = jnp.dot(x_ref[...], w_ref[...], preferred_element_type=jnp.float32)
    o_ref[...] = _mm_epilogue(acc, b_ref, activation).astype(o_ref.dtype)


def _mm_res_kernel(x_ref, w_ref, b_ref, r_ref, o_ref, *, activation):
    acc = jnp.dot(x_ref[...], w_ref[...], preferred_element_type=jnp.float32)
    acc = _mm_epilogue(acc, b_ref, activation)
    o_ref[...] = (acc + r_ref[...].astype(jnp.float32)).astype(o_ref.dtype)


def _mm_ln_kernel(x_ref, g_ref, bln_ref, w_ref, b_ref, o_ref, *, activation, eps):
    # LayerNorm prologue in f32, fused into the consuming projection matmul.
    x = x_ref[...].astype(jnp.float32)
    mu = jnp.mean(x, axis=-1, keepdims=True)
    xc = x - mu
    var = jnp.mean(xc * xc, axis=-1, keepdims=True)
    xn = xc * jax.lax.rsqrt(var + eps)
    xn = xn * g_ref[...].astype(jnp.float32) + bln_ref[...].astype(jnp.float32)
    acc = jnp.dot(xn.astype(jnp.bfloat16), w_ref[...],
                  preferred_element_type=jnp.float32)
    o_ref[...] = _mm_epilogue(acc, b_ref, activation).astype(o_ref.dtype)


def pallas_matmul(a, w, b, activation="none", residual=None, ln=None,
                  out_dtype=jnp.bfloat16):
    """act(LN?(a) @ w + b) [+ residual].

    a: (M, K) bf16, w: (K, N) bf16, b: (1, N) f32,
    residual: (M, N) bf16 or None, ln: (gamma, beta) each (1, K) f32 or None.
    K is always a full block; N is a full block up to 1024 (so the LN prologue
    is never recomputed per N-tile at these sizes), else tiled 512/256.
    """
    M, K = a.shape
    Kw, N = w.shape
    assert K == Kw, (K, Kw)

    Mp = _round_up(M, 8)
    if Mp != M:                       # rare — all layer sizes here divide
        a = jnp.pad(a, ((0, Mp - M), (0, 0)))
        if residual is not None:
            residual = jnp.pad(residual, ((0, Mp - M), (0, 0)))

    TM = _pick_row_tile(Mp)
    if N <= 1024:
        TN = N
    else:
        assert N % 256 == 0, "large output dims must be 256-aligned at init"
        TN = 512 if N % 512 == 0 else 256
    grid = (Mp // TM, N // TN)

    x_spec = pl.BlockSpec((TM, K), lambda i, j: (i, 0))
    w_spec = pl.BlockSpec((K, TN), lambda i, j: (0, j))
    b_spec = pl.BlockSpec((1, TN), lambda i, j: (0, j))
    out_spec = pl.BlockSpec((TM, TN), lambda i, j: (i, j))

    if ln is not None:
        gamma, beta = ln
        kernel = partial(_mm_ln_kernel, activation=activation, eps=1e-5)
        ln_spec = pl.BlockSpec((1, K), lambda i, j: (0, 0))
        args = (a, gamma, beta, w, b)
        in_specs = [x_spec, ln_spec, ln_spec, w_spec, b_spec]
    elif residual is not None:
        kernel = partial(_mm_res_kernel, activation=activation)
        r_spec = pl.BlockSpec((TM, TN), lambda i, j: (i, j))
        args = (a, w, b, residual)
        in_specs = [x_spec, w_spec, b_spec, r_spec]
    else:
        kernel = partial(_mm_plain_kernel, activation=activation)
        args = (a, w, b)
        in_specs = [x_spec, w_spec, b_spec]

    out = pl.pallas_call(
        kernel,
        out_shape=jax.ShapeDtypeStruct((Mp, N), out_dtype),
        grid=grid,
        in_specs=in_specs,
        out_specs=out_spec,
        compiler_params=_COMPILER_PARAMS_2D,
    )(*args)
    return out if Mp == M else out[:M]


# ----------------------------------------------------------------------------
# Pallas kernel: attention, query-tiled, heads sliced via BlockSpec from the
# fused QKV tensor (head_dim = 128 is lane aligned, so no transposes needed).
# The softmax scale is folded into wq at init time.
# ----------------------------------------------------------------------------

def _attn_kernel(q_ref, k_ref, v_ref, o_ref, *, kv_valid, kv_len):
    q = q_ref[0]                                                     # (TQ, Dh) bf16
    k = k_ref[0]                                                     # (S, Dh)  bf16
    v = v_ref[0]                                                     # (S, Dh)  bf16
    s = jax.lax.dot_general(q, k, (((1,), (1,)), ((), ())),
                            preferred_element_type=jnp.float32)      # (TQ, S)
    if kv_valid < kv_len:
        col = jax.lax.broadcasted_iota(jnp.int32, s.shape, 1)
        s = jnp.where(col < kv_valid, s, -1e30)
    m = jnp.max(s, axis=-1, keepdims=True)
    p = jnp.exp(s - m)
    l = jnp.sum(p, axis=-1, keepdims=True)
    o = jnp.dot(p.astype(jnp.bfloat16), v, preferred_element_type=jnp.float32)
    # Scale the (TQ, Dh) output instead of dividing the (TQ, S) scores.
    o_ref[0] = (o * pl.reciprocal(l, approx=True)).astype(o_ref.dtype)


def pallas_attention(qkv, num_heads, head_dim, kv_valid):
    """qkv: (B, Tp, 3*num_heads*head_dim) bf16 -> (B, Tp, num_heads*head_dim)."""
    B, Tp, three_d = qkv.shape
    D = num_heads * head_dim
    assert three_d == 3 * D
    TQ = _pick_row_tile(Tp, maxt=256)
    grid = (B, num_heads, Tp // TQ)
    nH = num_heads

    kernel = partial(_attn_kernel, kv_valid=kv_valid, kv_len=Tp)
    return pl.pallas_call(
        kernel,
        out_shape=jax.ShapeDtypeStruct((B, Tp, D), jnp.bfloat16),
        grid=grid,
        in_specs=[
            pl.BlockSpec((1, TQ, head_dim), lambda b, h, qi: (b, qi, h)),
            pl.BlockSpec((1, Tp, head_dim), lambda b, h, qi: (b, 0, nH + h)),
            pl.BlockSpec((1, Tp, head_dim), lambda b, h, qi: (b, 0, 2 * nH + h)),
        ],
        out_specs=pl.BlockSpec((1, TQ, head_dim), lambda b, h, qi: (b, qi, h)),
        compiler_params=_COMPILER_PARAMS_3D,
    )(qkv, qkv, qkv)


# ----------------------------------------------------------------------------
# Pallas kernel: NCHW conv as a (Cout, K) @ (K, H*W) matmul per batch.
# Pixels sit on the lane axis -> lane-dense output stores; Cout (small) is
# only a sublane dimension, so narrow channel counts never cause masked stores.
# ----------------------------------------------------------------------------

def _conv_mm_kernel(x_ref, w_ref, b_ref, o_ref, *, activation):
    # x_ref: (1, K, TN) bf16, w_ref: (Cout, K) bf16, b_ref: (Cout, 1) f32.
    acc = jnp.dot(w_ref[...], x_ref[0], preferred_element_type=jnp.float32)
    acc = acc + b_ref[...]
    if activation == "relu":
        acc = jnp.maximum(acc, 0.0)
    o_ref[0] = acc.astype(o_ref.dtype)


def conv2d(x, p, stride=1, pad=0, activation="none", out_dtype=jnp.bfloat16):
    """x: (B, C, H, W) NCHW bf16.  p['w']: (Cout, k*k*C) bf16, p['b']: (Cout, 1) f32."""
    B, C, H, W = x.shape
    k = p["k"]
    if pad > 0:
        x = jnp.pad(x, ((0, 0), (0, 0), (pad, pad), (pad, pad)))
    Ho = (H + 2 * pad - k) // stride + 1
    Wo = (W + 2 * pad - k) // stride + 1
    if k == 1 and stride == 1:
        patches = x.reshape(B, C, H * W)
    else:
        # TODO(synk): im2col still materializes a k*k-inflated patches tensor in
        # HBM; in-kernel per-tap accumulation with halo DMAs would remove it.
        cols = [x[:, :, dy:dy + (Ho - 1) * stride + 1:stride,
                      dx:dx + (Wo - 1) * stride + 1:stride]
                for dy in range(k) for dx in range(k)]
        patches = jnp.concatenate(cols, axis=1).reshape(B, k * k * C, Ho * Wo)

    K = k * k * C
    Npix = Ho * Wo
    Cout = p["w"].shape[0]
    TN = _pick_lane_tile(Npix, want_split=(B < 2))
    grid = (B, Npix // TN)

    out = pl.pallas_call(
        partial(_conv_mm_kernel, activation=activation),
        out_shape=jax.ShapeDtypeStruct((B, Cout, Npix), out_dtype),
        grid=grid,
        in_specs=[
            pl.BlockSpec((1, K, TN), lambda b, j: (b, 0, j)),
            pl.BlockSpec((Cout, K), lambda b, j: (0, 0)),
            pl.BlockSpec((Cout, 1), lambda b, j: (0, 0)),
        ],
        out_specs=pl.BlockSpec((1, Cout, TN), lambda b, j: (b, 0, j)),
        compiler_params=_COMPILER_PARAMS_2D,
    )(patches, p["w"], p["b"])
    return out.reshape(B, Cout, Ho, Wo)


def upsample2x(x):
    # Nearest-neighbour 2x upsample in NCHW: single broadcast+reshape.
    B, C, H, W = x.shape
    y = jnp.broadcast_to(x[:, :, :, None, :, None], (B, C, H, 2, W, 2))
    return y.reshape(B, C, 2 * H, 2 * W)


# ----------------------------------------------------------------------------
# Transformer (pre-LN, MHA + GELU-MLP) with fused QKV / LN / residual matmuls
# ----------------------------------------------------------------------------

def transformer_forward(tp, x, kv_valid):
    """x: (B, Tp, D) bf16; kv_valid = number of real (unpadded) tokens."""
    B, Tp, D = x.shape
    nH, Dh = tp["num_heads"], tp["head_dim"]
    x2 = x.reshape(B * Tp, D)
    for lyr in tp["layers"]:
        # --- attention block: LN fused into the fused QKV projection ---
        qkv = pallas_matmul(x2, lyr["wqkv"], lyr["bqkv"],
                            ln=(lyr["ln1_g"], lyr["ln1_b"]))        # (B*Tp, 3D)
        attn = pallas_attention(qkv.reshape(B, Tp, 3 * D), nH, Dh, kv_valid)
        x2 = pallas_matmul(attn.reshape(B * Tp, D), lyr["wo"], lyr["bo"],
                           residual=x2)                             # + residual
        # --- MLP block: LN fused into fc1, residual fused into fc2 ---
        h = pallas_matmul(x2, lyr["w1"], lyr["b1"], activation="gelu",
                          ln=(lyr["ln2_g"], lyr["ln2_b"]))
        x2 = pallas_matmul(h, lyr["w2"], lyr["b2"], residual=x2)
    return x2.reshape(B, Tp, D)


# ----------------------------------------------------------------------------
# PanoramicUnet2d forward (NCHW in, NCHW out — no layout transposes of images)
# ----------------------------------------------------------------------------

def panoramic_unet2d_forward(params, voxel_inputs_nchw):
    x = voxel_inputs_nchw.astype(jnp.bfloat16)                    # NCHW

    # --- encoder ---
    h = conv2d(x, params["enc_stem"], stride=1, pad=1, activation="relu")
    for lyr in params["enc_down"]:
        h = conv2d(h, lyr, stride=2, pad=1, activation="relu")
    latent = conv2d(h, params["enc_head"], stride=1, pad=0)       # (B, D, H', W')

    B, D, Hh, Ww = latent.shape
    desired_shape = (Hh, Hh * 2)
    desired_numel = desired_shape[0] * desired_shape[1]

    # latent.flatten(2).transpose(-1, -2)  (tiny transpose, left to XLA)
    tokens = jnp.transpose(latent.reshape(B, D, Hh * Ww), (0, 2, 1))
    placeholder = jnp.broadcast_to(params["placeholder"], (B, desired_numel, D))
    seq = jnp.concatenate([placeholder, tokens], axis=1)          # (B, T, D)
    T = seq.shape[1]
    Tp = _round_up(T, 8)
    if Tp != T:
        seq = jnp.pad(seq, ((0, 0), (0, Tp - T), (0, 0)))         # padded KV masked in-kernel

    seq = transformer_forward(params["transformer"], seq, kv_valid=T)
    out_tokens = seq[:, :desired_numel]                           # (B, H'*2H', D)
    lat2 = jnp.transpose(out_tokens, (0, 2, 1)).reshape(
        B, D, desired_shape[0], desired_shape[1])                 # NCHW

    # --- decoder ---
    h = conv2d(lat2, params["dec_stem"], stride=1, pad=0, activation="relu")
    for lyr in params["dec_up"]:
        h = upsample2x(h)
        h = conv2d(h, lyr, stride=1, pad=1, activation="relu")
    return conv2d(h, params["dec_head"], stride=1, pad=1, out_dtype=jnp.float32)


# ----------------------------------------------------------------------------
# Deterministic parameter initialization (weights prepared once: bf16, fused
# QKV with the softmax scale folded into wq, NCHW-layout conv weights)
# ----------------------------------------------------------------------------

def _init_conv(key, in_ch, out_ch, k):
    fan_in = in_ch * k * k
    w = (jax.random.normal(key, (out_ch, fan_in), jnp.float32)
         / math.sqrt(fan_in)).astype(jnp.bfloat16)
    return {"w": w, "b": jnp.zeros((out_ch, 1), jnp.float32), "k": k}


def _init_linear(key, d_in, d_out):
    w = (jax.random.normal(key, (d_in, d_out), jnp.float32)
         / math.sqrt(d_in)).astype(jnp.bfloat16)
    return w, jnp.zeros((1, d_out), jnp.float32)


def init_params(key, in_channels, out_channels, latent_dim,
                base_channels=64, multiplier=2, num_layers=3,
                num_attention_layers=4):
    assert latent_dim % 128 == 0 and latent_dim >= 128, \
        "latent_dim must be a positive multiple of 128 (head_dim = 128)"
    keys = iter(jax.random.split(key, 128))
    params = {}

    ch = base_channels
    params["enc_stem"] = _init_conv(next(keys), in_channels, ch, 3)
    enc_down = []
    for _ in range(num_layers):
        enc_down.append(_init_conv(next(keys), ch, ch * multiplier, 3))
        ch *= multiplier
    params["enc_down"] = enc_down
    params["enc_head"] = _init_conv(next(keys), ch, latent_dim, 1)

    params["placeholder"] = (
        jax.random.normal(next(keys), (1, 1, latent_dim), jnp.float32)
        / math.sqrt(latent_dim)).astype(jnp.bfloat16)

    num_heads = latent_dim // 128
    head_dim = 128
    attn_scale = 1.0 / math.sqrt(head_dim)
    layers = []
    for _ in range(num_attention_layers):
        kq, kk, kv_, ko, k1, k2 = jax.random.split(next(keys), 6)

        def lin_f32(k, d_in, d_out):
            return jax.random.normal(k, (d_in, d_out), jnp.float32) / math.sqrt(d_in)

        wq = lin_f32(kq, latent_dim, num_heads * head_dim) * attn_scale  # fold scale
        wk = lin_f32(kk, latent_dim, num_heads * head_dim)
        wv = lin_f32(kv_, latent_dim, num_heads * head_dim)
        lyr = {
            "ln1_g": jnp.ones((1, latent_dim), jnp.float32),
            "ln1_b": jnp.zeros((1, latent_dim), jnp.float32),
            "ln2_g": jnp.ones((1, latent_dim), jnp.float32),
            "ln2_b": jnp.zeros((1, latent_dim), jnp.float32),
            # Fused QKV weight (scale already folded into Q), prepared at init.
            "wqkv": jnp.concatenate([wq, wk, wv], axis=1).astype(jnp.bfloat16),
            "bqkv": jnp.zeros((1, 3 * num_heads * head_dim), jnp.float32),
        }
        lyr["wo"], lyr["bo"] = _init_linear(ko, num_heads * head_dim, latent_dim)
        lyr["w1"], lyr["b1"] = _init_linear(k1, latent_dim, 4 * latent_dim)
        lyr["w2"], lyr["b2"] = _init_linear(k2, 4 * latent_dim, latent_dim)
        layers.append(lyr)
    params["transformer"] = {"layers": layers,
                             "num_heads": num_heads, "head_dim": head_dim}

    params["dec_stem"] = _init_conv(next(keys), latent_dim, ch, 1)
    dec_up = []
    for _ in range(num_layers):
        dec_up.append(_init_conv(next(keys), ch, ch // multiplier, 3))
        ch //= multiplier
    params["dec_up"] = dec_up
    params["dec_head"] = _init_conv(next(keys), ch, out_channels, 3)
    return params


# ----------------------------------------------------------------------------
# Main
# ----------------------------------------------------------------------------

if __name__ == "__main__":
    key = jax.random.PRNGKey(0)
    k_params, k_input = jax.random.split(key)

    in_channels = 4
    out_channels = 4
    latent_dim = 128          # -> num_heads = 1, head_dim = 128
    base_channels = 8
    multiplier = 2
    num_layers = 2            # encoder downsamples by 4x
    num_attention_layers = 2

    params = init_params(k_params, in_channels, out_channels, latent_dim,
                         base_channels, multiplier, num_layers,
                         num_attention_layers)

    # panoramic input: width = 2 * height, NCHW like the PyTorch module.
    x = jax.random.normal(k_input, (2, in_channels, 16, 32), jnp.float32)

    fwd = jax.jit(lambda inp: panoramic_unet2d_forward(params, inp))
    y = fwd(x)
    y = jax.block_until_ready(y)

    assert y.shape == (2, out_channels, 16, 32), y.shape
    assert bool(jnp.all(jnp.isfinite(y)))
    print("KERNEL_OK")
</pallas_src>

<mosaic_0001>
module attributes {stable_mosaic.version = 11 : i64} {
  func.func @_conv_mm_kernel(%arg0: i32, %arg1: i32, %arg2: memref<1x36x512xbf16, #tpu.memory_space<vmem>>, %arg3: memref<8x36xbf16, #tpu.memory_space<vmem>>, %arg4: memref<8x1xf32, #tpu.memory_space<vmem>>, %arg5: memref<1x8x512xbf16, #tpu.memory_space<vmem>>) attributes {dimension_semantics = [#tpu.dimension_semantics<parallel>, #tpu.dimension_semantics<parallel>], iteration_bounds = array<i64: 2, 1>, scalar_prefetch = 0 : i64, scratch_operands = 0 : i64, tpu.core_type = #tpu.core_type<tc>, window_params = [{transform_indices = @transform_0, window_bounds = array<i64: 1, 36, 512>}, {pipeline_mode = #tpu.pipeline_mode<synchronous>, transform_indices = @transform_1, window_bounds = array<i64: 8, 36>}, {pipeline_mode = #tpu.pipeline_mode<synchronous>, transform_indices = @transform_2, window_bounds = array<i64: 8, 1>}, {transform_indices = @transform_3, window_bounds = array<i64: 1, 8, 512>}]} {
    %c0 = arith.constant 0 : index
    %c0_0 = arith.constant 0 : index
    %0 = vector.load %arg3[%c0, %c0_0] : memref<8x36xbf16, #tpu.memory_space<vmem>>, vector<8x36xbf16>
    %c0_1 = arith.constant 0 : index
    %c0_2 = arith.constant 0 : index
    %c0_3 = arith.constant 0 : index
    %1 = vector.load %arg2[%c0_1, %c0_2, %c0_3] : memref<1x36x512xbf16, #tpu.memory_space<vmem>>, vector<1x36x512xbf16>
    %2 = vector.shape_cast %1 : vector<1x36x512xbf16> to vector<36x512xbf16>
    %cst = arith.constant dense<0.000000e+00> : vector<8x512xf32>
    %3 = tpu.matmul %0, %2, %cst {dimension_numbers = #tpu.dot_dimension_numbers<[1], [0], [0], [1], [0, 0, 1, 1], [], []>} : vector<8x36xbf16>, vector<36x512xbf16>, vector<8x512xf32> -> vector<8x512xf32>
    %c0_4 = arith.constant 0 : index
    %c0_5 = arith.constant 0 : index
    %4 = vector.load %arg4[%c0_4, %c0_5] : memref<8x1xf32, #tpu.memory_space<vmem>>, vector<8x1xf32>
    %5 = vector.broadcast %4 : vector<8x1xf32> to vector<8x512xf32>
    %6 = arith.addf %3, %5 : vector<8x512xf32>
    %cst_6 = arith.constant 0.000000e+00 : f32
    %7 = vector.broadcast %cst_6 : f32 to vector<8x512xf32>
    %8 = arith.maximumf %6, %7 : vector<8x512xf32>
    %9 = arith.truncf %8 : vector<8x512xf32> to vector<8x512xbf16>
    %c0_7 = arith.constant 0 : index
    %c0_8 = arith.constant 0 : index
    %c0_9 = arith.constant 0 : index
    %10 = vector.load %arg5[%c0_7, %c0_8, %c0_9] : memref<1x8x512xbf16, #tpu.memory_space<vmem>>, vector<1x8x512xbf16>
    %11 = vector.shape_cast %10 : vector<1x8x512xbf16> to vector<8x512xbf16>
    %12 = vector.shape_cast %9 : vector<8x512xbf16> to vector<1x8x512xbf16>
    tpu.vector_store %arg5[%c0_7, %c0_8, %c0_9], %12 {strides = array<i32>} : memref<1x8x512xbf16, #tpu.memory_space<vmem>>, vector<1x8x512xbf16>,
    return
  }
  func.func @transform_0(%arg0: i32, %arg1: i32) -> (i32, i32, i32) {
    %c0_i32 = arith.constant 0 : i32
    %c0_i32_0 = arith.constant 0 : i32
    return %arg0, %c0_i32, %arg1 : i32, i32, i32
  }
  func.func @transform_1(%arg0: i32, %arg1: i32) -> (i32, i32) {
    %c0_i32 = arith.constant 0 : i32
    %c0_i32_0 = arith.constant 0 : i32
    %c0_i32_1 = arith.constant 0 : i32
    return %c0_i32, %c0_i32_0 : i32, i32
  }
  func.func @transform_2(%arg0: i32, %arg1: i32) -> (i32, i32) {
    %c0_i32 = arith.constant 0 : i32
    %c0_i32_0 = arith.constant 0 : i32
    %c0_i32_1 = arith.constant 0 : i32
    return %c0_i32, %c0_i32_0 : i32, i32
  }
  func.func @transform_3(%arg0: i32, %arg1: i32) -> (i32, i32, i32) {
    %c0_i32 = arith.constant 0 : i32
    %c0_i32_0 = arith.constant 0 : i32
    return %arg0, %c0_i32, %arg1 : i32, i32, i32
  }
}

module attributes {stable_mosaic.version = 11 : i64} {
  func.func @_conv_mm_kernel(%arg0: i32, %arg1: i32, %arg2: memref<1x72x128xbf16, #tpu.memory_space<vmem>>, %arg3: memref<16x72xbf16, #tpu.memory_space<vmem>>, %arg4: memref<16x1xf32, #tpu.memory_space<vmem>>, %arg5: memref<1x16x128xbf16, #tpu.memory_space<vmem>>) attributes {dimension_semantics = [#tpu.dimension_semantics<parallel>, #tpu.dimension_semantics<parallel>], iteration_bounds = array<i64: 2, 1>, scalar_prefetch = 0 : i64, scratch_operands = 0 : i64, tpu.core_type = #tpu.core_type<tc>, window_params = [{transform_indices = @transform_0, window_bounds = array<i64: 1, 72, 128>}, {pipeline_mode = #tpu.pipeline_mode<synchronous>, transform_indices = @transform_1, window_bounds = array<i64: 16, 72>}, {pipeline_mode = #tpu.pipeline_mode<synchronous>, transform_indices = @transform_2, window_bounds = array<i64: 16, 1>}, {transform_indices = @transform_3, window_bounds = array<i64: 1, 16, 128>}]} {
    %c0 = arith.constant 0 : index
    %c0_0 = arith.constant 0 : index
    %0 = vector.load %arg3[%c0, %c0_0] : memref<16x72xbf16, #tpu.memory_space<vmem>>, vector<16x72xbf16>
    %c0_1 = arith.constant 0 : index
    %c0_2 = arith.constant 0 : index
    %c0_3 = arith.constant 0 : index
    %1 = vector.load %arg2[%c0_1, %c0_2, %c0_3] : memref<1x72x128xbf16, #tpu.memory_space<vmem>>, vector<1x72x128xbf16>
    %2 = vector.shape_cast %1 : vector<1x72x128xbf16> to vector<72x128xbf16>
    %cst = arith.constant dense<0.000000e+00> : vector<16x128xf32>
    %3 = tpu.matmul %0, %2, %cst {dimension_numbers = #tpu.dot_dimension_numbers<[1], [0], [0], [1], [0, 0, 1, 1], [], []>} : vector<16x72xbf16>, vector<72x128xbf16>, vector<16x128xf32> -> vector<16x128xf32>
    %c0_4 = arith.constant 0 : index
    %c0_5 = arith.constant 0 : index
    %4 = vector.load %arg4[%c0_4, %c0_5] : memref<16x1xf32, #tpu.memory_space<vmem>>, vector<16x1xf32>
    %5 = vector.broadcast %4 : vector<16x1xf32> to vector<16x128xf32>
    %6 = arith.addf %3, %5 : vector<16x128xf32>
    %cst_6 = arith.constant 0.000000e+00 : f32
    %7 = vector.broadcast %cst_6 : f32 to vector<16x128xf32>
    %8 = arith.maximumf %6, %7 : vector<16x128xf32>
    %9 = arith.truncf %8 : vector<16x128xf32> to vector<16x128xbf16>
    %c0_7 = arith.constant 0 : index
    %c0_8 = arith.constant 0 : index
    %c0_9 = arith.constant 0 : index
    %10 = vector.load %arg5[%c0_7, %c0_8, %c0_9] : memref<1x16x128xbf16, #tpu.memory_space<vmem>>, vector<1x16x128xbf16>
    %11 = vector.shape_cast %10 : vector<1x16x128xbf16> to vector<16x128xbf16>
    %12 = vector.shape_cast %9 : vector<16x128xbf16> to vector<1x16x128xbf16>
    tpu.vector_store %arg5[%c0_7, %c0_8, %c0_9], %12 {strides = array<i32>} : memref<1x16x128xbf16, #tpu.memory_space<vmem>>, vector<1x16x128xbf16>,
    return
  }
  func.func @transform_0(%arg0: i32, %arg1: i32) -> (i32, i32, i32) {
    %c0_i32 = arith.constant 0 : i32
    %c0_i32_0 = arith.constant 0 : i32
    return %arg0, %c0_i32, %arg1 : i32, i32, i32
  }
  func.func @transform_1(%arg0: i32, %arg1: i32) -> (i32, i32) {
    %c0_i32 = arith.constant 0 : i32
    %c0_i32_0 = arith.constant 0 : i32
    %c0_i32_1 = arith.constant 0 : i32
    return %c0_i32, %c0_i32_0 : i32, i32
  }
  func.func @transform_2(%arg0: i32, %arg1: i32) -> (i32, i32) {
    %c0_i32 = arith.constant 0 : i32
    %c0_i32_0 = arith.constant 0 : i32
    %c0_i32_1 = arith.constant 0 : i32
    return %c0_i32, %c0_i32_0 : i32, i32
  }
  func.func @transform_3(%arg0: i32, %arg1: i32) -> (i32, i32, i32) {
    %c0_i32 = arith.constant 0 : i32
    %c0_i32_0 = arith.constant 0 : i32
    return %arg0, %c0_i32, %arg1 : i32, i32, i32
  }
}

module attributes {stable_mosaic.version = 11 : i64} {
  func.func @_conv_mm_kernel(%arg0: i32, %arg1: i32, %arg2: memref<1x144x32xbf16, #tpu.memory_space<vmem>>, %arg3: memref<32x144xbf16, #tpu.memory_space<vmem>>, %arg4: memref<32x1xf32, #tpu.memory_space<vmem>>, %arg5: memref<1x32x32xbf16, #tpu.memory_space<vmem>>) attributes {dimension_semantics = [#tpu.dimension_semantics<parallel>, #tpu.dimension_semantics<parallel>], iteration_bounds = array<i64: 2, 1>, scalar_prefetch = 0 : i64, scratch_operands = 0 : i64, tpu.core_type = #tpu.core_type<tc>, window_params = [{transform_indices = @transform_0, window_bounds = array<i64: 1, 144, 32>}, {pipeline_mode = #tpu.pipeline_mode<synchronous>, transform_indices = @transform_1, window_bounds = array<i64: 32, 144>}, {pipeline_mode = #tpu.pipeline_mode<synchronous>, transform_indices = @transform_2, window_bounds = array<i64: 32, 1>}, {transform_indices = @transform_3, window_bounds = array<i64: 1, 32, 32>}]} {
    %c0 = arith.constant 0 : index
    %c0_0 = arith.constant 0 : index
    %0 = vector.load %arg3[%c0, %c0_0] : memref<32x144xbf16, #tpu.memory_space<vmem>>, vector<32x144xbf16>
    %c0_1 = arith.constant 0 : index
    %c0_2 = arith.constant 0 : index
    %c0_3 = arith.constant 0 : index
    %1 = vector.load %arg2[%c0_1, %c0_2, %c0_3] : memref<1x144x32xbf16, #tpu.memory_space<vmem>>, vector<1x144x32xbf16>
    %2 = vector.shape_cast %1 : vector<1x144x32xbf16> to vector<144x32xbf16>
    %cst = arith.constant dense<0.000000e+00> : vector<32x32xf32>
    %3 = tpu.matmul %0, %2, %cst {dimension_numbers = #tpu.dot_dimension_numbers<[1], [0], [0], [1], [0, 0, 1, 1], [], []>} : vector<32x144xbf16>, vector<144x32xbf16>, vector<32x32xf32> -> vector<32x32xf32>
    %c0_4 = arith.constant 0 : index
    %c0_5 = arith.constant 0 : index
    %4 = vector.load %arg4[%c0_4, %c0_5] : memref<32x1xf32, #tpu.memory_space<vmem>>, vector<32x1xf32>
    %5 = vector.broadcast %4 : vector<32x1xf32> to vector<32x32xf32>
    %6 = arith.addf %3, %5 : vector<32x32xf32>
    %cst_6 = arith.constant 0.000000e+00 : f32
    %7 = vector.broadcast %cst_6 : f32 to vector<32x32xf32>
    %8 = arith.maximumf %6, %7 : vector<32x32xf32>
    %9 = arith.truncf %8 : vector<32x32xf32> to vector<32x32xbf16>
    %c0_7 = arith.constant 0 : index
    %c0_8 = arith.constant 0 : index
    %c0_9 = arith.constant 0 : index
    %10 = vector.load %arg5[%c0_7, %c0_8, %c0_9] : memref<1x32x32xbf16, #tpu.memory_space<vmem>>, vector<1x32x32xbf16>
    %11 = vector.shape_cast %10 : vector<1x32x32xbf16> to vector<32x32xbf16>
    %12 = vector.shape_cast %9 : vector<32x32xbf16> to vector<1x32x32xbf16>
    tpu.vector_store %arg5[%c0_7, %c0_8, %c0_9], %12 {strides = array<i32>} : memref<1x32x32xbf16, #tpu.memory_space<vmem>>, vector<1x32x32xbf16>,
    return
  }
  func.func @transform_0(%arg0: i32, %arg1: i32) -> (i32, i32, i32) {
    %c0_i32 = arith.constant 0 : i32
    %c0_i32_0 = arith.constant 0 : i32
    return %arg0, %c0_i32, %arg1 : i32, i32, i32
  }
  func.func @transform_1(%arg0: i32, %arg1: i32) -> (i32, i32) {
    %c0_i32 = arith.constant 0 : i32
    %c0_i32_0 = arith.constant 0 : i32
    %c0_i32_1 = arith.constant 0 : i32
    return %c0_i32, %c0_i32_0 : i32, i32
  }
  func.func @transform_2(%arg0: i32, %arg1: i32) -> (i32, i32) {
    %c0_i32 = arith.constant 0 : i32
    %c0_i32_0 = arith.constant 0 : i32
    %c0_i32_1 = arith.constant 0 : i32
    return %c0_i32, %c0_i32_0 : i32, i32
  }
  func.func @transform_3(%arg0: i32, %arg1: i32) -> (i32, i32, i32) {
    %c0_i32 = arith.constant 0 : i32
    %c0_i32_0 = arith.constant 0 : i32
    return %arg0, %c0_i32, %arg1 : i32, i32, i32
  }
}

module attributes {stable_mosaic.version = 11 : i64} {
  func.func @_conv_mm_kernel(%arg0: i32, %arg1: i32, %arg2: memref<1x32x32xbf16, #tpu.memory_space<vmem>>, %arg3: memref<128x32xbf16, #tpu.memory_space<vmem>>, %arg4: memref<128x1xf32, #tpu.memory_space<vmem>>, %arg5: memref<1x128x32xbf16, #tpu.memory_space<vmem>>) attributes {dimension_semantics = [#tpu.dimension_semantics<parallel>, #tpu.dimension_semantics<parallel>], iteration_bounds = array<i64: 2, 1>, scalar_prefetch = 0 : i64, scratch_operands = 0 : i64, tpu.core_type = #tpu.core_type<tc>, window_params = [{transform_indices = @transform_0, window_bounds = array<i64: 1, 32, 32>}, {pipeline_mode = #tpu.pipeline_mode<synchronous>, transform_indices = @transform_1, window_bounds = array<i64: 128, 32>}, {pipeline_mode = #tpu.pipeline_mode<synchronous>, transform_indices = @transform_2, window_bounds = array<i64: 128, 1>}, {transform_indices = @transform_3, window_bounds = array<i64: 1, 128, 32>}]} {
    %c0 = arith.constant 0 : index
    %c0_0 = arith.constant 0 : index
    %0 = vector.load %arg3[%c0, %c0_0] : memref<128x32xbf16, #tpu.memory_space<vmem>>, vector<128x32xbf16>
    %c0_1 = arith.constant 0 : index
    %c0_2 = arith.constant 0 : index
    %c0_3 = arith.constant 0 : index
    %1 = vector.load %arg2[%c0_1, %c0_2, %c0_3] : memref<1x32x32xbf16, #tpu.memory_space<vmem>>, vector<1x32x32xbf16>
    %2 = vector.shape_cast %1 : vector<1x32x32xbf16> to vector<32x32xbf16>
    %cst = arith.constant dense<0.000000e+00> : vector<128x32xf32>
    %3 = tpu.matmul %0, %2, %cst {dimension_numbers = #tpu.dot_dimension_numbers<[1], [0], [0], [1], [0, 0, 1, 1], [], []>} : vector<128x32xbf16>, vector<32x32xbf16>, vector<128x32xf32> -> vector<128x32xf32>
    %c0_4 = arith.constant 0 : index
    %c0_5 = arith.constant 0 : index
    %4 = vector.load %arg4[%c0_4, %c0_5] : memref<128x1xf32, #tpu.memory_space<vmem>>, vector<128x1xf32>
    %5 = vector.broadcast %4 : vector<128x1xf32> to vector<128x32xf32>
    %6 = arith.addf %3, %5 : vector<128x32xf32>
    %7 = arith.truncf %6 : vector<128x32xf32> to vector<128x32xbf16>
    %c0_6 = arith.constant 0 : index
    %c0_7 = arith.constant 0 : index
    %c0_8 = arith.constant 0 : index
    %8 = vector.load %arg5[%c0_6, %c0_7, %c0_8] : memref<1x128x32xbf16, #tpu.memory_space<vmem>>, vector<1x128x32xbf16>
    %9 = vector.shape_cast %8 : vector<1x128x32xbf16> to vector<128x32xbf16>
    %10 = vector.shape_cast %7 : vector<128x32xbf16> to vector<1x128x32xbf16>
    tpu.vector_store %arg5[%c0_6, %c0_7, %c0_8], %10 {strides = array<i32>} : memref<1x128x32xbf16, #tpu.memory_space<vmem>>, vector<1x128x32xbf16>,
    return
  }
  func.func @transform_0(%arg0: i32, %arg1: i32) -> (i32, i32, i32) {
    %c0_i32 = arith.constant 0 : i32
    %c0_i32_0 = arith.constant 0 : i32
    return %arg0, %c0_i32, %arg1 : i32, i32, i32
  }
  func.func @transform_1(%arg0: i32, %arg1: i32) -> (i32, i32) {
    %c0_i32 = arith.constant 0 : i32
    %c0_i32_0 = arith.constant 0 : i32
    %c0_i32_1 = arith.constant 0 : i32
    return %c0_i32, %c0_i32_0 : i32, i32
  }
  func.func @transform_2(%arg0: i32, %arg1: i32) -> (i32, i32) {
    %c0_i32 = arith.constant 0 : i32
    %c0_i32_0 = arith.constant 0 : i32
    %c0_i32_1 = arith.constant 0 : i32
    return %c0_i32, %c0_i32_0 : i32, i32
  }
  func.func @transform_3(%arg0: i32, %arg1: i32) -> (i32, i32, i32) {
    %c0_i32 = arith.constant 0 : i32
    %c0_i32_0 = arith.constant 0 : i32
    return %arg0, %c0_i32, %arg1 : i32, i32, i32
  }
}

module attributes {stable_mosaic.version = 11 : i64} {
  func.func @_attn_kernel(%arg0: i32, %arg1: i32, %arg2: i32, %arg3: memref<1x32x128xbf16, #tpu.memory_space<vmem>>, %arg4: memref<1x64x128xbf16, #tpu.memory_space<vmem>>, %arg5: memref<1x64x128xbf16, #tpu.memory_space<vmem>>, %arg6: memref<1x32x128xbf16, #tpu.memory_space<vmem>>) attributes {dimension_semantics = [#tpu.dimension_semantics<parallel>, #tpu.dimension_semantics<parallel>, #tpu.dimension_semantics<parallel>], iteration_bounds = array<i64: 2, 1, 2>, scalar_prefetch = 0 : i64, scratch_operands = 0 : i64, tpu.core_type = #tpu.core_type<tc>, window_params = [{transform_indices = @transform_0, window_bounds = array<i64: 1, 32, 128>}, {transform_indices = @transform_1, window_bounds = array<i64: 1, 64, 128>}, {transform_indices = @transform_2, window_bounds = array<i64: 1, 64, 128>}, {transform_indices = @transform_3, window_bounds = array<i64: 1, 32, 128>}]} {
    %c0 = arith.constant 0 : index
    %c0_0 = arith.constant 0 : index
    %c0_1 = arith.constant 0 : index
    %0 = vector.load %arg3[%c0, %c0_0, %c0_1] : memref<1x32x128xbf16, #tpu.memory_space<vmem>>, vector<1x32x128xbf16>
    %1 = vector.shape_cast %0 : vector<1x32x128xbf16> to vector<32x128xbf16>
    %c0_2 = arith.constant 0 : index
    %c0_3 = arith.constant 0 : index
    %c0_4 = arith.constant 0 : index
    %2 = vector.load %arg4[%c0_2, %c0_3, %c0_4] : memref<1x64x128xbf16, #tpu.memory_space<vmem>>, vector<1x64x128xbf16>
    %3 = vector.shape_cast %2 : vector<1x64x128xbf16> to vector<64x128xbf16>
    %c0_5 = arith.constant 0 : index
    %c0_6 = arith.constant 0 : index
    %c0_7 = arith.constant 0 : index
    %4 = vector.load %arg5[%c0_5, %c0_6, %c0_7] : memref<1x64x128xbf16, #tpu.memory_space<vmem>>, vector<1x64x128xbf16>
    %5 = vector.shape_cast %4 : vector<1x64x128xbf16> to vector<64x128xbf16>
    %cst = arith.constant dense<0.000000e+00> : vector<32x64xf32>
    %6 = tpu.matmul %1, %3, %cst {dimension_numbers = #tpu.dot_dimension_numbers<[1], [1], [0], [0], [0, 0, 1, 0], [], []>} : vector<32x128xbf16>, vector<64x128xbf16>, vector<32x64xf32> -> vector<32x64xf32>
    %cst_8 = arith.constant dense<0xFF800000> : vector<32xf32>
    %7 = vector.multi_reduction <maximumf>, %6, %cst_8 [1] : vector<32x64xf32> to vector<32xf32>
    %8 = vector.shape_cast %7 : vector<32xf32> to vector<32x1xf32>
    %9 = vector.broadcast %8 : vector<32x1xf32> to vector<32x64xf32>
    %10 = arith.subf %6, %9 : vector<32x64xf32>
    %11 = math.exp %10 : vector<32x64xf32>
    %cst_9 = arith.constant dense<0.000000e+00> : vector<32xf32>
    %12 = vector.multi_reduction <add>, %11, %cst_9 [1] : vector<32x64xf32> to vector<32xf32>
    %13 = vector.shape_cast %12 : vector<32xf32> to vector<32x1xf32>
    %14 = arith.truncf %11 : vector<32x64xf32> to vector<32x64xbf16>
    %cst_10 = arith.constant dense<0.000000e+00> : vector<32x128xf32>
    %15 = tpu.matmul %14, %5, %cst_10 {dimension_numbers = #tpu.dot_dimension_numbers<[1], [0], [0], [1], [0, 0, 1, 1], [], []>} : vector<32x64xbf16>, vector<64x128xbf16>, vector<32x128xf32> -> vector<32x128xf32>
    %16 = tpu.reciprocal %13 {approx = true} : vector<32x1xf32> -> vector<32x1xf32>
    %17 = vector.broadcast %16 : vector<32x1xf32> to vector<32x128xf32>
    %18 = arith.mulf %15, %17 : vector<32x128xf32>
    %19 = arith.truncf %18 : vector<32x128xf32> to vector<32x128xbf16>
    %c0_11 = arith.constant 0 : index
    %c0_12 = arith.constant 0 : index
    %c0_13 = arith.constant 0 : index
    %20 = vector.load %arg6[%c0_11, %c0_12, %c0_13] : memref<1x32x128xbf16, #tpu.memory_space<vmem>>, vector<1x32x128xbf16>
    %21 = vector.shape_cast %20 : vector<1x32x128xbf16> to vector<32x128xbf16>
    %22 = vector.shape_cast %19 : vector<32x128xbf16> to vector<1x32x128xbf16>
    tpu.vector_store %arg6[%c0_11, %c0_12, %c0_13], %22 {strides = array<i32>} : memref<1x32x128xbf16, #tpu.memory_space<vmem>>, vector<1x32x128xbf16>,
    return
  }
  func.func @transform_0(%arg0: i32, %arg1: i32, %arg2: i32) -> (i32, i32, i32) {
    %c0_i32 = arith.constant 0 : i32
    return %arg0, %arg2, %arg1 : i32, i32, i32
  }
  func.func @transform_1(%arg0: i32, %arg1: i32, %arg2: i32) -> (i32, i32, i32) {
    %c1_i32 = arith.constant 1 : i32
    %0 = arith.addi %c1_i32, %arg1 : i32
    %c0_i32 = arith.constant 0 : i32
    %c0_i32_0 = arith.constant 0 : i32
    return %arg0, %c0_i32, %0 : i32, i32, i32
  }
  func.func @transform_2(%arg0: i32, %arg1: i32, %arg2: i32) -> (i32, i32, i32) {
    %c2_i32 = arith.constant 2 : i32
    %0 = arith.addi %c2_i32, %arg1 : i32
    %c0_i32 = arith.constant 0 : i32
    %c0_i32_0 = arith.constant 0 : i32
    return %arg0, %c0_i32, %0 : i32, i32, i32
  }
  func.func @transform_3(%arg0: i32, %arg1: i32, %arg2: i32) -> (i32, i32, i32) {
    %c0_i32 = arith.constant 0 : i32
    return %arg0, %arg2, %arg1 : i32, i32, i32
  }
}

module attributes {stable_mosaic.version = 11 : i64} {
  func.func @_mm_res_kernel(%arg0: i32, %arg1: i32, %arg2: memref<64x128xbf16, #tpu.memory_space<vmem>>, %arg3: memref<128x128xbf16, #tpu.memory_space<vmem>>, %arg4: memref<1x128xf32, #tpu.memory_space<vmem>>, %arg5: memref<64x128xbf16, #tpu.memory_space<vmem>>, %arg6: memref<64x128xbf16, #tpu.memory_space<vmem>>) attributes {dimension_semantics = [#tpu.dimension_semantics<parallel>, #tpu.dimension_semantics<parallel>], iteration_bounds = array<i64: 2, 1>, scalar_prefetch = 0 : i64, scratch_operands = 0 : i64, tpu.core_type = #tpu.core_type<tc>, window_params = [{transform_indices = @transform_0, window_bounds = array<i64: 64, 128>}, {transform_indices = @transform_1, window_bounds = array<i64: 128, 128>}, {transform_indices = @transform_2, window_bounds = array<i64: 1, 128>}, {transform_indices = @transform_3, window_bounds = array<i64: 64, 128>}, {transform_indices = @transform_4, window_bounds = array<i64: 64, 128>}]} {
    %c0 = arith.constant 0 : index
    %c0_0 = arith.constant 0 : index
    %0 = vector.load %arg2[%c0, %c0_0] : memref<64x128xbf16, #tpu.memory_space<vmem>>, vector<64x128xbf16>
    %c0_1 = arith.constant 0 : index
    %c0_2 = arith.constant 0 : index
    %1 = vector.load %arg3[%c0_1, %c0_2] : memref<128x128xbf16, #tpu.memory_space<vmem>>, vector<128x128xbf16>
    %cst = arith.constant dense<0.000000e+00> : vector<64x128xf32>
    %2 = tpu.matmul %0, %1, %cst {dimension_numbers = #tpu.dot_dimension_numbers<[1], [0], [0], [1], [0, 0, 1, 1], [], []>} : vector<64x128xbf16>, vector<128x128xbf16>, vector<64x128xf32> -> vector<64x128xf32>
    %c0_3 = arith.constant 0 : index
    %c0_4 = arith.constant 0 : index
    %3 = vector.load %arg4[%c0_3, %c0_4] : memref<1x128xf32, #tpu.memory_space<vmem>>, vector<1x128xf32>
    %4 = vector.broadcast %3 : vector<1x128xf32> to vector<64x128xf32>
    %5 = arith.addf %2, %4 : vector<64x128xf32>
    %c0_5 = arith.constant 0 : index
    %c0_6 = arith.constant 0 : index
    %6 = vector.load %arg5[%c0_5, %c0_6] : memref<64x128xbf16, #tpu.memory_space<vmem>>, vector<64x128xbf16>
    %7 = arith.extf %6 : vector<64x128xbf16> to vector<64x128xf32>
    %8 = arith.addf %5, %7 : vector<64x128xf32>
    %9 = arith.truncf %8 : vector<64x128xf32> to vector<64x128xbf16>
    %c0_7 = arith.constant 0 : index
    %c0_8 = arith.constant 0 : index
    %10 = vector.load %arg6[%c0_7, %c0_8] : memref<64x128xbf16, #tpu.memory_space<vmem>>, vector<64x128xbf16>
    tpu.vector_store %arg6[%c0_7, %c0_8], %9 {strides = array<i32>} : memref<64x128xbf16, #tpu.memory_space<vmem>>, vector<64x128xbf16>,
    return
  }
  func.func @transform_0(%arg0: i32, %arg1: i32) -> (i32, i32) {
    %c0_i32 = arith.constant 0 : i32
    %c0_i32_0 = arith.constant 0 : i32
    return %arg0, %c0_i32 : i32, i32
  }
  func.func @transform_1(%arg0: i32, %arg1: i32) -> (i32, i32) {
    %c0_i32 = arith.constant 0 : i32
    %c0_i32_0 = arith.constant 0 : i32
    return %c0_i32, %arg1 : i32, i32
  }
  func.func @transform_2(%arg0: i32, %arg1: i32) -> (i32, i32) {
    %c0_i32 = arith.constant 0 : i32
    %c0_i32_0 = arith.constant 0 : i32
    return %c0_i32, %arg1 : i32, i32
  }
  func.func @transform_3(%arg0: i32, %arg1: i32) -> (i32, i32) {
    %c0_i32 = arith.constant 0 : i32
    return %arg0, %arg1 : i32, i32
  }
  func.func @transform_4(%arg0: i32, %arg1: i32) -> (i32, i32) {
    %c0_i32 = arith.constant 0 : i32
    return %arg0, %arg1 : i32, i32
  }
}

module attributes {stable_mosaic.version = 11 : i64} {
  func.func @_mm_ln_kernel(%arg0: i32, %arg1: i32, %arg2: memref<64x128xbf16, #tpu.memory_space<vmem>>, %arg3: memref<1x128xf32, #tpu.memory_space<vmem>>, %arg4: memref<1x128xf32, #tpu.memory_space<vmem>>, %arg5: memref<128x384xbf16, #tpu.memory_space<vmem>>, %arg6: memref<1x384xf32, #tpu.memory_space<vmem>>, %arg7: memref<64x384xbf16, #tpu.memory_space<vmem>>) attributes {dimension_semantics = [#tpu.dimension_semantics<parallel>, #tpu.dimension_semantics<parallel>], iteration_bounds = array<i64: 2, 1>, scalar_prefetch = 0 : i64, scratch_operands = 0 : i64, tpu.core_type = #tpu.core_type<tc>, window_params = [{transform_indices = @transform_0, window_bounds = array<i64: 64, 128>}, {pipeline_mode = #tpu.pipeline_mode<synchronous>, transform_indices = @transform_1, window_bounds = array<i64: 1, 128>}, {pipeline_mode = #tpu.pipeline_mode<synchronous>, transform_indices = @transform_2, window_bounds = array<i64: 1, 128>}, {transform_indices = @transform_3, window_bounds = array<i64: 128, 384>}, {transform_indices = @transform_4, window_bounds = array<i64: 1, 384>}, {transform_indices = @transform_5, window_bounds = array<i64: 64, 384>}]} {
    %c0 = arith.constant 0 : index
    %c0_0 = arith.constant 0 : index
    %0 = vector.load %arg2[%c0, %c0_0] : memref<64x128xbf16, #tpu.memory_space<vmem>>, vector<64x128xbf16>
    %1 = arith.extf %0 : vector<64x128xbf16> to vector<64x128xf32>
    %cst = arith.constant dense<0.000000e+00> : vector<64xf32>
    %2 = vector.multi_reduction <add>, %1, %cst [1] : vector<64x128xf32> to vector<64xf32>
    %3 = vector.shape_cast %2 : vector<64xf32> to vector<64x1xf32>
    %cst_1 = arith.constant 1.280000e+02 : f32
    %4 = vector.broadcast %cst_1 : f32 to vector<64x1xf32>
    %5 = arith.divf %3, %4 : vector<64x1xf32>
    %6 = vector.broadcast %5 : vector<64x1xf32> to vector<64x128xf32>
    %7 = arith.subf %1, %6 : vector<64x128xf32>
    %8 = arith.mulf %7, %7 : vector<64x128xf32>
    %cst_2 = arith.constant dense<0.000000e+00> : vector<64xf32>
    %9 = vector.multi_reduction <add>, %8, %cst_2 [1] : vector<64x128xf32> to vector<64xf32>
    %10 = vector.shape_cast %9 : vector<64xf32> to vector<64x1xf32>
    %cst_3 = arith.constant 1.280000e+02 : f32
    %11 = vector.broadcast %cst_3 : f32 to vector<64x1xf32>
    %12 = arith.divf %10, %11 : vector<64x1xf32>
    %cst_4 = arith.constant 9.99999974E-6 : f32
    %13 = vector.broadcast %cst_4 : f32 to vector<64x1xf32>
    %14 = arith.addf %12, %13 : vector<64x1xf32>
    %15 = math.rsqrt %14 : vector<64x1xf32>
    %16 = vector.broadcast %15 : vector<64x1xf32> to vector<64x128xf32>
    %17 = arith.mulf %7, %16 : vector<64x128xf32>
    %c0_5 = arith.constant 0 : index
    %c0_6 = arith.constant 0 : index
    %18 = vector.load %arg3[%c0_5, %c0_6] : memref<1x128xf32, #tpu.memory_space<vmem>>, vector<1x128xf32>
    %19 = vector.broadcast %18 : vector<1x128xf32> to vector<64x128xf32>
    %20 = arith.mulf %17, %19 : vector<64x128xf32>
    %c0_7 = arith.constant 0 : index
    %c0_8 = arith.constant 0 : index
    %21 = vector.load %arg4[%c0_7, %c0_8] : memref<1x128xf32, #tpu.memory_space<vmem>>, vector<1x128xf32>
    %22 = vector.broadcast %21 : vector<1x128xf32> to vector<64x128xf32>
    %23 = arith.addf %20, %22 : vector<64x128xf32>
    %24 = arith.truncf %23 : vector<64x128xf32> to vector<64x128xbf16>
    %c0_9 = arith.constant 0 : index
    %c0_10 = arith.constant 0 : index
    %25 = vector.load %arg5[%c0_9, %c0_10] : memref<128x384xbf16, #tpu.memory_space<vmem>>, vector<128x384xbf16>
    %cst_11 = arith.constant dense<0.000000e+00> : vector<64x384xf32>
    %26 = tpu.matmul %24, %25, %cst_11 {dimension_numbers = #tpu.dot_dimension_numbers<[1], [0], [0], [1], [0, 0, 1, 1], [], []>} : vector<64x128xbf16>, vector<128x384xbf16>, vector<64x384xf32> -> vector<64x384xf32>
    %c0_12 = arith.constant 0 : index
    %c0_13 = arith.constant 0 : index
    %27 = vector.load %arg6[%c0_12, %c0_13] : memref<1x384xf32, #tpu.memory_space<vmem>>, vector<1x384xf32>
    %28 = vector.broadcast %27 : vector<1x384xf32> to vector<64x384xf32>
    %29 = arith.addf %26, %28 : vector<64x384xf32>
    %30 = arith.truncf %29 : vector<64x384xf32> to vector<64x384xbf16>
    %c0_14 = arith.constant 0 : index
    %c0_15 = arith.constant 0 : index
    %31 = vector.load %arg7[%c0_14, %c0_15] : memref<64x384xbf16, #tpu.memory_space<vmem>>, vector<64x384xbf16>
    tpu.vector_store %arg7[%c0_14, %c0_15], %30 {strides = array<i32>} : memref<64x384xbf16, #tpu.memory_space<vmem>>, vector<64x384xbf16>,
    return
  }
  func.func @transform_0(%arg0: i32, %arg1: i32) -> (i32, i32) {
    %c0_i32 = arith.constant 0 : i32
    %c0_i32_0 = arith.constant 0 : i32
    return %arg0, %c0_i32 : i32, i32
  }
  func.func @transform_1(%arg0: i32, %arg1: i32) -> (i32, i32) {
    %c0_i32 = arith.constant 0 : i32
    %c0_i32_0 = arith.constant 0 : i32
    %c0_i32_1 = arith.constant 0 : i32
    return %c0_i32, %c0_i32_0 : i32, i32
  }
  func.func @transform_2(%arg0: i32, %arg1: i32) -> (i32, i32) {
    %c0_i32 = arith.constant 0 : i32
    %c0_i32_0 = arith.constant 0 : i32
    %c0_i32_1 = arith.constant 0 : i32
    return %c0_i32, %c0_i32_0 : i32, i32
  }
  func.func @transform_3(%arg0: i32, %arg1: i32) -> (i32, i32) {
    %c0_i32 = arith.constant 0 : i32
    %c0_i32_0 = arith.constant 0 : i32
    return %c0_i32, %arg1 : i32, i32
  }
  func.func @transform_4(%arg0: i32, %arg1: i32) -> (i32, i32) {
    %c0_i32 = arith.constant 0 : i32
    %c0_i32_0 = arith.constant 0 : i32
    return %c0_i32, %arg1 : i32, i32
  }
  func.func @transform_5(%arg0: i32, %arg1: i32) -> (i32, i32) {
    %c0_i32 = arith.constant 0 : i32
    return %arg0, %arg1 : i32, i32
  }
}

module attributes {stable_mosaic.version = 11 : i64} {
  func.func @_mm_ln_kernel(%arg0: i32, %arg1: i32, %arg2: memref<64x128xbf16, #tpu.memory_space<vmem>>, %arg3: memref<1x128xf32, #tpu.memory_space<vmem>>, %arg4: memref<1x128xf32, #tpu.memory_space<vmem>>, %arg5: memref<128x512xbf16, #tpu.memory_space<vmem>>, %arg6: memref<1x512xf32, #tpu.memory_space<vmem>>, %arg7: memref<64x512xbf16, #tpu.memory_space<vmem>>) attributes {dimension_semantics = [#tpu.dimension_semantics<parallel>, #tpu.dimension_semantics<parallel>], iteration_bounds = array<i64: 2, 1>, scalar_prefetch = 0 : i64, scratch_operands = 0 : i64, tpu.core_type = #tpu.core_type<tc>, window_params = [{transform_indices = @transform_0, window_bounds = array<i64: 64, 128>}, {pipeline_mode = #tpu.pipeline_mode<synchronous>, transform_indices = @transform_1, window_bounds = array<i64: 1, 128>}, {pipeline_mode = #tpu.pipeline_mode<synchronous>, transform_indices = @transform_2, window_bounds = array<i64: 1, 128>}, {transform_indices = @transform_3, window_bounds = array<i64: 128, 512>}, {transform_indices = @transform_4, window_bounds = array<i64: 1, 512>}, {transform_indices = @transform_5, window_bounds = array<i64: 64, 512>}]} {
    %c0 = arith.constant 0 : index
    %c0_0 = arith.constant 0 : index
    %0 = vector.load %arg2[%c0, %c0_0] : memref<64x128xbf16, #tpu.memory_space<vmem>>, vector<64x128xbf16>
    %1 = arith.extf %0 : vector<64x128xbf16> to vector<64x128xf32>
    %cst = arith.constant dense<0.000000e+00> : vector<64xf32>
    %2 = vector.multi_reduction <add>, %1, %cst [1] : vector<64x128xf32> to vector<64xf32>
    %3 = vector.shape_cast %2 : vector<64xf32> to vector<64x1xf32>
    %cst_1 = arith.constant 1.280000e+02 : f32
    %4 = vector.broadcast %cst_1 : f32 to vector<64x1xf32>
    %5 = arith.divf %3, %4 : vector<64x1xf32>
    %6 = vector.broadcast %5 : vector<64x1xf32> to vector<64x128xf32>
    %7 = arith.subf %1, %6 : vector<64x128xf32>
    %8 = arith.mulf %7, %7 : vector<64x128xf32>
    %cst_2 = arith.constant dense<0.000000e+00> : vector<64xf32>
    %9 = vector.multi_reduction <add>, %8, %cst_2 [1] : vector<64x128xf32> to vector<64xf32>
    %10 = vector.shape_cast %9 : vector<64xf32> to vector<64x1xf32>
    %cst_3 = arith.constant 1.280000e+02 : f32
    %11 = vector.broadcast %cst_3 : f32 to vector<64x1xf32>
    %12 = arith.divf %10, %11 : vector<64x1xf32>
    %cst_4 = arith.constant 9.99999974E-6 : f32
    %13 = vector.broadcast %cst_4 : f32 to vector<64x1xf32>
    %14 = arith.addf %12, %13 : vector<64x1xf32>
    %15 = math.rsqrt %14 : vector<64x1xf32>
    %16 = vector.broadcast %15 : vector<64x1xf32> to vector<64x128xf32>
    %17 = arith.mulf %7, %16 : vector<64x128xf32>
    %c0_5 = arith.constant 0 : index
    %c0_6 = arith.constant 0 : index
    %18 = vector.load %arg3[%c0_5, %c0_6] : memref<1x128xf32, #tpu.memory_space<vmem>>, vector<1x128xf32>
    %19 = vector.broadcast %18 : vector<1x128xf32> to vector<64x128xf32>
    %20 = arith.mulf %17, %19 : vector<64x128xf32>
    %c0_7 = arith.constant 0 : index
    %c0_8 = arith.constant 0 : index
    %21 = vector.load %arg4[%c0_7, %c0_8] : memref<1x128xf32, #tpu.memory_space<vmem>>, vector<1x128xf32>
    %22 = vector.broadcast %21 : vector<1x128xf32> to vector<64x128xf32>
    %23 = arith.addf %20, %22 : vector<64x128xf32>
    %24 = arith.truncf %23 : vector<64x128xf32> to vector<64x128xbf16>
    %c0_9 = arith.constant 0 : index
    %c0_10 = arith.constant 0 : index
    %25 = vector.load %arg5[%c0_9, %c0_10] : memref<128x512xbf16, #tpu.memory_space<vmem>>, vector<128x512xbf16>
    %cst_11 = arith.constant dense<0.000000e+00> : vector<64x512xf32>
    %26 = tpu.matmul %24, %25, %cst_11 {dimension_numbers = #tpu.dot_dimension_numbers<[1], [0], [0], [1], [0, 0, 1, 1], [], []>} : vector<64x128xbf16>, vector<128x512xbf16>, vector<64x512xf32> -> vector<64x512xf32>
    %c0_12 = arith.constant 0 : index
    %c0_13 = arith.constant 0 : index
    %27 = vector.load %arg6[%c0_12, %c0_13] : memref<1x512xf32, #tpu.memory_space<vmem>>, vector<1x512xf32>
    %28 = vector.broadcast %27 : vector<1x512xf32> to vector<64x512xf32>
    %29 = arith.addf %26, %28 : vector<64x512xf32>
    %30 = arith.mulf %29, %29 : vector<64x512xf32>
    %31 = arith.mulf %29, %30 : vector<64x512xf32>
    %cst_14 = arith.constant 4.471500e-02 : f32
    %32 = vector.broadcast %cst_14 : f32 to vector<64x512xf32>
    %33 = arith.mulf %32, %31 : vector<64x512xf32>
    %34 = arith.addf %29, %33 : vector<64x512xf32>
    %cst_15 = arith.constant 0.797884583 : f32
    %35 = vector.broadcast %cst_15 : f32 to vector<64x512xf32>
    %36 = arith.mulf %35, %34 : vector<64x512xf32>
    %37 = math.tanh %36 : vector<64x512xf32>
    %cst_16 = arith.constant 1.000000e+00 : f32
    %38 = vector.broadcast %cst_16 : f32 to vector<64x512xf32>
    %39 = arith.addf %38, %37 : vector<64x512xf32>
    %cst_17 = arith.constant 5.000000e-01 : f32
    %40 = vector.broadcast %cst_17 : f32 to vector<64x512xf32>
    %41 = arith.mulf %40, %39 : vector<64x512xf32>
    %42 = arith.mulf %29, %41 : vector<64x512xf32>
    %43 = arith.truncf %42 : vector<64x512xf32> to vector<64x512xbf16>
    %c0_18 = arith.constant 0 : index
    %c0_19 = arith.constant 0 : index
    %44 = vector.load %arg7[%c0_18, %c0_19] : memref<64x512xbf16, #tpu.memory_space<vmem>>, vector<64x512xbf16>
    tpu.vector_store %arg7[%c0_18, %c0_19], %43 {strides = array<i32>} : memref<64x512xbf16, #tpu.memory_space<vmem>>, vector<64x512xbf16>,
    return
  }
  func.func @transform_0(%arg0: i32, %arg1: i32) -> (i32, i32) {
    %c0_i32 = arith.constant 0 : i32
    %c0_i32_0 = arith.constant 0 : i32
    return %arg0, %c0_i32 : i32, i32
  }
  func.func @transform_1(%arg0: i32, %arg1: i32) -> (i32, i32) {
    %c0_i32 = arith.constant 0 : i32
    %c0_i32_0 = arith.constant 0 : i32
    %c0_i32_1 = arith.constant 0 : i32
    return %c0_i32, %c0_i32_0 : i32, i32
  }
  func.func @transform_2(%arg0: i32, %arg1: i32) -> (i32, i32) {
    %c0_i32 = arith.constant 0 : i32
    %c0_i32_0 = arith.constant 0 : i32
    %c0_i32_1 = arith.constant 0 : i32
    return %c0_i32, %c0_i32_0 : i32, i32
  }
  func.func @transform_3(%arg0: i32, %arg1: i32) -> (i32, i32) {
    %c0_i32 = arith.constant 0 : i32
    %c0_i32_0 = arith.constant 0 : i32
    return %c0_i32, %arg1 : i32, i32
  }
  func.func @transform_4(%arg0: i32, %arg1: i32) -> (i32, i32) {
    %c0_i32 = arith.constant 0 : i32
    %c0_i32_0 = arith.constant 0 : i32
    return %c0_i32, %arg1 : i32, i32
  }
  func.func @transform_5(%arg0: i32, %arg1: i32) -> (i32, i32) {
    %c0_i32 = arith.constant 0 : i32
    return %arg0, %arg1 : i32, i32
  }
}

module attributes {stable_mosaic.version = 11 : i64} {
  func.func @_mm_res_kernel(%arg0: i32, %arg1: i32, %arg2: memref<64x512xbf16, #tpu.memory_space<vmem>>, %arg3: memref<512x128xbf16, #tpu.memory_space<vmem>>, %arg4: memref<1x128xf32, #tpu.memory_space<vmem>>, %arg5: memref<64x128xbf16, #tpu.memory_space<vmem>>, %arg6: memref<64x128xbf16, #tpu.memory_space<vmem>>) attributes {dimension_semantics = [#tpu.dimension_semantics<parallel>, #tpu.dimension_semantics<parallel>], iteration_bounds = array<i64: 2, 1>, scalar_prefetch = 0 : i64, scratch_operands = 0 : i64, tpu.core_type = #tpu.core_type<tc>, window_params = [{transform_indices = @transform_0, window_bounds = array<i64: 64, 512>}, {transform_indices = @transform_1, window_bounds = array<i64: 512, 128>}, {transform_indices = @transform_2, window_bounds = array<i64: 1, 128>}, {transform_indices = @transform_3, window_bounds = array<i64: 64, 128>}, {transform_indices = @transform_4, window_bounds = array<i64: 64, 128>}]} {
    %c0 = arith.constant 0 : index
    %c0_0 = arith.constant 0 : index
    %0 = vector.load %arg2[%c0, %c0_0] : memref<64x512xbf16, #tpu.memory_space<vmem>>, vector<64x512xbf16>
    %c0_1 = arith.constant 0 : index
    %c0_2 = arith.constant 0 : index
    %1 = vector.load %arg3[%c0_1, %c0_2] : memref<512x128xbf16, #tpu.memory_space<vmem>>, vector<512x128xbf16>
    %cst = arith.constant dense<0.000000e+00> : vector<64x128xf32>
    %2 = tpu.matmul %0, %1, %cst {dimension_numbers = #tpu.dot_dimension_numbers<[1], [0], [0], [1], [0, 0, 1, 1], [], []>} : vector<64x512xbf16>, vector<512x128xbf16>, vector<64x128xf32> -> vector<64x128xf32>
    %c0_3 = arith.constant 0 : index
    %c0_4 = arith.constant 0 : index
    %3 = vector.load %arg4[%c0_3, %c0_4] : memref<1x128xf32, #tpu.memory_space<vmem>>, vector<1x128xf32>
    %4 = vector.broadcast %3 : vector<1x128xf32> to vector<64x128xf32>
    %5 = arith.addf %2, %4 : vector<64x128xf32>
    %c0_5 = arith.constant 0 : index
    %c0_6 = arith.constant 0 : index
    %6 = vector.load %arg5[%c0_5, %c0_6] : memref<64x128xbf16, #tpu.memory_space<vmem>>, vector<64x128xbf16>
    %7 = arith.extf %6 : vector<64x128xbf16> to vector<64x128xf32>
    %8 = arith.addf %5, %7 : vector<64x128xf32>
    %9 = arith.truncf %8 : vector<64x128xf32> to vector<64x128xbf16>
    %c0_7 = arith.constant 0 : index
    %c0_8 = arith.constant 0 : index
    %10 = vector.load %arg6[%c0_7, %c0_8] : memref<64x128xbf16, #tpu.memory_space<vmem>>, vector<64x128xbf16>
    tpu.vector_store %arg6[%c0_7, %c0_8], %9 {strides = array<i32>} : memref<64x128xbf16, #tpu.memory_space<vmem>>, vector<64x128xbf16>,
    return
  }
  func.func @transform_0(%arg0: i32, %arg1: i32) -> (i32, i32) {
    %c0_i32 = arith.constant 0 : i32
    %c0_i32_0 = arith.constant 0 : i32
    return %arg0, %c0_i32 : i32, i32
  }
  func.func @transform_1(%arg0: i32, %arg1: i32) -> (i32, i32) {
    %c0_i32 = arith.constant 0 : i32
    %c0_i32_0 = arith.constant 0 : i32
    return %c0_i32, %arg1 : i32, i32
  }
  func.func @transform_2(%arg0: i32, %arg1: i32) -> (i32, i32) {
    %c0_i32 = arith.constant 0 : i32
    %c0_i32_0 = arith.constant 0 : i32
    return %c0_i32, %arg1 : i32, i32
  }
  func.func @transform_3(%arg0: i32, %arg1: i32) -> (i32, i32) {
    %c0_i32 = arith.constant 0 : i32
    return %arg0, %arg1 : i32, i32
  }
  func.func @transform_4(%arg0: i32, %arg1: i32) -> (i32, i32) {
    %c0_i32 = arith.constant 0 : i32
    return %arg0, %arg1 : i32, i32
  }
}

module attributes {stable_mosaic.version = 11 : i64} {
  func.func @_conv_mm_kernel(%arg0: i32, %arg1: i32, %arg2: memref<1x128x32xbf16, #tpu.memory_space<vmem>>, %arg3: memref<32x128xbf16, #tpu.memory_space<vmem>>, %arg4: memref<32x1xf32, #tpu.memory_space<vmem>>, %arg5: memref<1x32x32xbf16, #tpu.memory_space<vmem>>) attributes {dimension_semantics = [#tpu.dimension_semantics<parallel>, #tpu.dimension_semantics<parallel>], iteration_bounds = array<i64: 2, 1>, scalar_prefetch = 0 : i64, scratch_operands = 0 : i64, tpu.core_type = #tpu.core_type<tc>, window_params = [{transform_indices = @transform_0, window_bounds = array<i64: 1, 128, 32>}, {pipeline_mode = #tpu.pipeline_mode<synchronous>, transform_indices = @transform_1, window_bounds = array<i64: 32, 128>}, {pipeline_mode = #tpu.pipeline_mode<synchronous>, transform_indices = @transform_2, window_bounds = array<i64: 32, 1>}, {transform_indices = @transform_3, window_bounds = array<i64: 1, 32, 32>}]} {
    %c0 = arith.constant 0 : index
    %c0_0 = arith.constant 0 : index
    %0 = vector.load %arg3[%c0, %c0_0] : memref<32x128xbf16, #tpu.memory_space<vmem>>, vector<32x128xbf16>
    %c0_1 = arith.constant 0 : index
    %c0_2 = arith.constant 0 : index
    %c0_3 = arith.constant 0 : index
    %1 = vector.load %arg2[%c0_1, %c0_2, %c0_3] : memref<1x128x32xbf16, #tpu.memory_space<vmem>>, vector<1x128x32xbf16>
    %2 = vector.shape_cast %1 : vector<1x128x32xbf16> to vector<128x32xbf16>
    %cst = arith.constant dense<0.000000e+00> : vector<32x32xf32>
    %3 = tpu.matmul %0, %2, %cst {dimension_numbers = #tpu.dot_dimension_numbers<[1], [0], [0], [1], [0, 0, 1, 1], [], []>} : vector<32x128xbf16>, vector<128x32xbf16>, vector<32x32xf32> -> vector<32x32xf32>
    %c0_4 = arith.constant 0 : index
    %c0_5 = arith.constant 0 : index
    %4 = vector.load %arg4[%c0_4, %c0_5] : memref<32x1xf32, #tpu.memory_space<vmem>>, vector<32x1xf32>
    %5 = vector.broadcast %4 : vector<32x1xf32> to vector<32x32xf32>
    %6 = arith.addf %3, %5 : vector<32x32xf32>
    %cst_6 = arith.constant 0.000000e+00 : f32
    %7 = vector.broadcast %cst_6 : f32 to vector<32x32xf32>
    %8 = arith.maximumf %6, %7 : vector<32x32xf32>
    %9 = arith.truncf %8 : vector<32x32xf32> to vector<32x32xbf16>
    %c0_7 = arith.constant 0 : index
    %c0_8 = arith.constant 0 : index
    %c0_9 = arith.constant 0 : index
    %10 = vector.load %arg5[%c0_7, %c0_8, %c0_9] : memref<1x32x32xbf16, #tpu.memory_space<vmem>>, vector<1x32x32xbf16>
    %11 = vector.shape_cast %10 : vector<1x32x32xbf16> to vector<32x32xbf16>
    %12 = vector.shape_cast %9 : vector<32x32xbf16> to vector<1x32x32xbf16>
    tpu.vector_store %arg5[%c0_7, %c0_8, %c0_9], %12 {strides = array<i32>} : memref<1x32x32xbf16, #tpu.memory_space<vmem>>, vector<1x32x32xbf16>,
    return
  }
  func.func @transform_0(%arg0: i32, %arg1: i32) -> (i32, i32, i32) {
    %c0_i32 = arith.constant 0 : i32
    %c0_i32_0 = arith.constant 0 : i32
    return %arg0, %c0_i32, %arg1 : i32, i32, i32
  }
  func.func @transform_1(%arg0: i32, %arg1: i32) -> (i32, i32) {
    %c0_i32 = arith.constant 0 : i32
    %c0_i32_0 = arith.constant 0 : i32
    %c0_i32_1 = arith.constant 0 : i32
    return %c0_i32, %c0_i32_0 : i32, i32
  }
  func.func @transform_2(%arg0: i32, %arg1: i32) -> (i32, i32) {
    %c0_i32 = arith.constant 0 : i32
    %c0_i32_0 = arith.constant 0 : i32
    %c0_i32_1 = arith.constant 0 : i32
    return %c0_i32, %c0_i32_0 : i32, i32
  }
  func.func @transform_3(%arg0: i32, %arg1: i32) -> (i32, i32, i32) {
    %c0_i32 = arith.constant 0 : i32
    %c0_i32_0 = arith.constant 0 : i32
    return %arg0, %c0_i32, %arg1 : i32, i32, i32
  }
}

module attributes {stable_mosaic.version = 11 : i64} {
  func.func @_conv_mm_kernel(%arg0: i32, %arg1: i32, %arg2: memref<1x288x128xbf16, #tpu.memory_space<vmem>>, %arg3: memref<16x288xbf16, #tpu.memory_space<vmem>>, %arg4: memref<16x1xf32, #tpu.memory_space<vmem>>, %arg5: memref<1x16x128xbf16, #tpu.memory_space<vmem>>) attributes {dimension_semantics = [#tpu.dimension_semantics<parallel>, #tpu.dimension_semantics<parallel>], iteration_bounds = array<i64: 2, 1>, scalar_prefetch = 0 : i64, scratch_operands = 0 : i64, tpu.core_type = #tpu.core_type<tc>, window_params = [{transform_indices = @transform_0, window_bounds = array<i64: 1, 288, 128>}, {pipeline_mode = #tpu.pipeline_mode<synchronous>, transform_indices = @transform_1, window_bounds = array<i64: 16, 288>}, {pipeline_mode = #tpu.pipeline_mode<synchronous>, transform_indices = @transform_2, window_bounds = array<i64: 16, 1>}, {transform_indices = @transform_3, window_bounds = array<i64: 1, 16, 128>}]} {
    %c0 = arith.constant 0 : index
    %c0_0 = arith.constant 0 : index
    %0 = vector.load %arg3[%c0, %c0_0] : memref<16x288xbf16, #tpu.memory_space<vmem>>, vector<16x288xbf16>
    %c0_1 = arith.constant 0 : index
    %c0_2 = arith.constant 0 : index
    %c0_3 = arith.constant 0 : index
    %1 = vector.load %arg2[%c0_1, %c0_2, %c0_3] : memref<1x288x128xbf16, #tpu.memory_space<vmem>>, vector<1x288x128xbf16>
    %2 = vector.shape_cast %1 : vector<1x288x128xbf16> to vector<288x128xbf16>
    %cst = arith.constant dense<0.000000e+00> : vector<16x128xf32>
    %3 = tpu.matmul %0, %2, %cst {dimension_numbers = #tpu.dot_dimension_numbers<[1], [0], [0], [1], [0, 0, 1, 1], [], []>} : vector<16x288xbf16>, vector<288x128xbf16>, vector<16x128xf32> -> vector<16x128xf32>
    %c0_4 = arith.constant 0 : index
    %c0_5 = arith.constant 0 : index
    %4 = vector.load %arg4[%c0_4, %c0_5] : memref<16x1xf32, #tpu.memory_space<vmem>>, vector<16x1xf32>
    %5 = vector.broadcast %4 : vector<16x1xf32> to vector<16x128xf32>
    %6 = arith.addf %3, %5 : vector<16x128xf32>
    %cst_6 = arith.constant 0.000000e+00 : f32
    %7 = vector.broadcast %cst_6 : f32 to vector<16x128xf32>
    %8 = arith.maximumf %6, %7 : vector<16x128xf32>
    %9 = arith.truncf %8 : vector<16x128xf32> to vector<16x128xbf16>
    %c0_7 = arith.constant 0 : index
    %c0_8 = arith.constant 0 : index
    %c0_9 = arith.constant 0 : index
    %10 = vector.load %arg5[%c0_7, %c0_8, %c0_9] : memref<1x16x128xbf16, #tpu.memory_space<vmem>>, vector<1x16x128xbf16>
    %11 = vector.shape_cast %10 : vector<1x16x128xbf16> to vector<16x128xbf16>
    %12 = vector.shape_cast %9 : vector<16x128xbf16> to vector<1x16x128xbf16>
    tpu.vector_store %arg5[%c0_7, %c0_8, %c0_9], %12 {strides = array<i32>} : memref<1x16x128xbf16, #tpu.memory_space<vmem>>, vector<1x16x128xbf16>,
    return
  }
  func.func @transform_0(%arg0: i32, %arg1: i32) -> (i32, i32, i32) {
    %c0_i32 = arith.constant 0 : i32
    %c0_i32_0 = arith.constant 0 : i32
    return %arg0, %c0_i32, %arg1 : i32, i32, i32
  }
  func.func @transform_1(%arg0: i32, %arg1: i32) -> (i32, i32) {
    %c0_i32 = arith.constant 0 : i32
    %c0_i32_0 = arith.constant 0 : i32
    %c0_i32_1 = arith.constant 0 : i32
    return %c0_i32, %c0_i32_0 : i32, i32
  }
  func.func @transform_2(%arg0: i32, %arg1: i32) -> (i32, i32) {
    %c0_i32 = arith.constant 0 : i32
    %c0_i32_0 = arith.constant 0 : i32
    %c0_i32_1 = arith.constant 0 : i32
    return %c0_i32, %c0_i32_0 : i32, i32
  }
  func.func @transform_3(%arg0: i32, %arg1: i32) -> (i32, i32, i32) {
    %c0_i32 = arith.constant 0 : i32
    %c0_i32_0 = arith.constant 0 : i32
    return %arg0, %c0_i32, %arg1 : i32, i32, i32
  }
}

module attributes {stable_mosaic.version = 11 : i64} {
  func.func @_conv_mm_kernel(%arg0: i32, %arg1: i32, %arg2: memref<1x144x512xbf16, #tpu.memory_space<vmem>>, %arg3: memref<8x144xbf16, #tpu.memory_space<vmem>>, %arg4: memref<8x1xf32, #tpu.memory_space<vmem>>, %arg5: memref<1x8x512xbf16, #tpu.memory_space<vmem>>) attributes {dimension_semantics = [#tpu.dimension_semantics<parallel>, #tpu.dimension_semantics<parallel>], iteration_bounds = array<i64: 2, 1>, scalar_prefetch = 0 : i64, scratch_operands = 0 : i64, tpu.core_type = #tpu.core_type<tc>, window_params = [{transform_indices = @transform_0, window_bounds = array<i64: 1, 144, 512>}, {pipeline_mode = #tpu.pipeline_mode<synchronous>, transform_indices = @transform_1, window_bounds = array<i64: 8, 144>}, {pipeline_mode = #tpu.pipeline_mode<synchronous>, transform_indices = @transform_2, window_bounds = array<i64: 8, 1>}, {transform_indices = @transform_3, window_bounds = array<i64: 1, 8, 512>}]} {
    %c0 = arith.constant 0 : index
    %c0_0 = arith.constant 0 : index
    %0 = vector.load %arg3[%c0, %c0_0] : memref<8x144xbf16, #tpu.memory_space<vmem>>, vector<8x144xbf16>
    %c0_1 = arith.constant 0 : index
    %c0_2 = arith.constant 0 : index
    %c0_3 = arith.constant 0 : index
    %1 = vector.load %arg2[%c0_1, %c0_2, %c0_3] : memref<1x144x512xbf16, #tpu.memory_space<vmem>>, vector<1x144x512xbf16>
    %2 = vector.shape_cast %1 : vector<1x144x512xbf16> to vector<144x512xbf16>
    %cst = arith.constant dense<0.000000e+00> : vector<8x512xf32>
    %3 = tpu.matmul %0, %2, %cst {dimension_numbers = #tpu.dot_dimension_numbers<[1], [0], [0], [1], [0, 0, 1, 1], [], []>} : vector<8x144xbf16>, vector<144x512xbf16>, vector<8x512xf32> -> vector<8x512xf32>
    %c0_4 = arith.constant 0 : index
    %c0_5 = arith.constant 0 : index
    %4 = vector.load %arg4[%c0_4, %c0_5] : memref<8x1xf32, #tpu.memory_space<vmem>>, vector<8x1xf32>
    %5 = vector.broadcast %4 : vector<8x1xf32> to vector<8x512xf32>
    %6 = arith.addf %3, %5 : vector<8x512xf32>
    %cst_6 = arith.constant 0.000000e+00 : f32
    %7 = vector.broadcast %cst_6 : f32 to vector<8x512xf32>
    %8 = arith.maximumf %6, %7 : vector<8x512xf32>
    %9 = arith.truncf %8 : vector<8x512xf32> to vector<8x512xbf16>
    %c0_7 = arith.constant 0 : index
    %c0_8 = arith.constant 0 : index
    %c0_9 = arith.constant 0 : index
    %10 = vector.load %arg5[%c0_7, %c0_8, %c0_9] : memref<1x8x512xbf16, #tpu.memory_space<vmem>>, vector<1x8x512xbf16>
    %11 = vector.shape_cast %10 : vector<1x8x512xbf16> to vector<8x512xbf16>
    %12 = vector.shape_cast %9 : vector<8x512xbf16> to vector<1x8x512xbf16>
    tpu.vector_store %arg5[%c0_7, %c0_8, %c0_9], %12 {strides = array<i32>} : memref<1x8x512xbf16, #tpu.memory_space<vmem>>, vector<1x8x512xbf16>,
    return
  }
  func.func @transform_0(%arg0: i32, %arg1: i32) -> (i32, i32, i32) {
    %c0_i32 = arith.constant 0 : i32
    %c0_i32_0 = arith.constant 0 : i32
    return %arg0, %c0_i32, %arg1 : i32, i32, i32
  }
  func.func @transform_1(%arg0: i32, %arg1: i32) -> (i32, i32) {
    %c0_i32 = arith.constant 0 : i32
    %c0_i32_0 = arith.constant 0 : i32
    %c0_i32_1 = arith.constant 0 : i32
    return %c0_i32, %c0_i32_0 : i32, i32
  }
  func.func @transform_2(%arg0: i32, %arg1: i32) -> (i32, i32) {
    %c0_i32 = arith.constant 0 : i32
    %c0_i32_0 = arith.constant 0 : i32
    %c0_i32_1 = arith.constant 0 : i32
    return %c0_i32, %c0_i32_0 : i32, i32
  }
  func.func @transform_3(%arg0: i32, %arg1: i32) -> (i32, i32, i32) {
    %c0_i32 = arith.constant 0 : i32
    %c0_i32_0 = arith.constant 0 : i32
    return %arg0, %c0_i32, %arg1 : i32, i32, i32
  }
}

module attributes {stable_mosaic.version = 11 : i64} {
  func.func @_conv_mm_kernel(%arg0: i32, %arg1: i32, %arg2: memref<1x72x512xbf16, #tpu.memory_space<vmem>>, %arg3: memref<4x72xbf16, #tpu.memory_space<vmem>>, %arg4: memref<4x1xf32, #tpu.memory_space<vmem>>, %arg5: memref<1x4x512xf32, #tpu.memory_space<vmem>>) attributes {dimension_semantics = [#tpu.dimension_semantics<parallel>, #tpu.dimension_semantics<parallel>], iteration_bounds = array<i64: 2, 1>, scalar_prefetch = 0 : i64, scratch_operands = 0 : i64, tpu.core_type = #tpu.core_type<tc>, window_params = [{transform_indices = @transform_0, window_bounds = array<i64: 1, 72, 512>}, {pipeline_mode = #tpu.pipeline_mode<synchronous>, transform_indices = @transform_1, window_bounds = array<i64: 4, 72>}, {pipeline_mode = #tpu.pipeline_mode<synchronous>, transform_indices = @transform_2, window_bounds = array<i64: 4, 1>}, {transform_indices = @transform_3, window_bounds = array<i64: 1, 4, 512>}]} {
    %c0 = arith.constant 0 : index
    %c0_0 = arith.constant 0 : index
    %0 = vector.load %arg3[%c0, %c0_0] : memref<4x72xbf16, #tpu.memory_space<vmem>>, vector<4x72xbf16>
    %c0_1 = arith.constant 0 : index
    %c0_2 = arith.constant 0 : index
    %c0_3 = arith.constant 0 : index
    %1 = vector.load %arg2[%c0_1, %c0_2, %c0_3] : memref<1x72x512xbf16, #tpu.memory_space<vmem>>, vector<1x72x512xbf16>
    %2 = vector.shape_cast %1 : vector<1x72x512xbf16> to vector<72x512xbf16>
    %cst = arith.constant dense<0.000000e+00> : vector<4x512xf32>
    %3 = tpu.matmul %0, %2, %cst {dimension_numbers = #tpu.dot_dimension_numbers<[1], [0], [0], [1], [0, 0, 1, 1], [], []>} : vector<4x72xbf16>, vector<72x512xbf16>, vector<4x512xf32> -> vector<4x512xf32>
    %c0_4 = arith.constant 0 : index
    %c0_5 = arith.constant 0 : index
    %4 = vector.load %arg4[%c0_4, %c0_5] : memref<4x1xf32, #tpu.memory_space<vmem>>, vector<4x1xf32>
    %5 = vector.broadcast %4 : vector<4x1xf32> to vector<4x512xf32>
    %6 = arith.addf %3, %5 : vector<4x512xf32>
    %c0_6 = arith.constant 0 : index
    %c0_7 = arith.constant 0 : index
    %c0_8 = arith.constant 0 : index
    %7 = vector.load %arg5[%c0_6, %c0_7, %c0_8] : memref<1x4x512xf32, #tpu.memory_space<vmem>>, vector<1x4x512xf32>
    %8 = vector.shape_cast %7 : vector<1x4x512xf32> to vector<4x512xf32>
    %9 = vector.shape_cast %6 : vector<4x512xf32> to vector<1x4x512xf32>
    tpu.vector_store %arg5[%c0_6, %c0_7, %c0_8], %9 {strides = array<i32>} : memref<1x4x512xf32, #tpu.memory_space<vmem>>, vector<1x4x512xf32>,
    return
  }
  func.func @transform_0(%arg0: i32, %arg1: i32) -> (i32, i32, i32) {
    %c0_i32 = arith.constant 0 : i32
    %c0_i32_0 = arith.constant 0 : i32
    return %arg0, %c0_i32, %arg1 : i32, i32, i32
  }
  func.func @transform_1(%arg0: i32, %arg1: i32) -> (i32, i32) {
    %c0_i32 = arith.constant 0 : i32
    %c0_i32_0 = arith.constant 0 : i32
    %c0_i32_1 = arith.constant 0 : i32
    return %c0_i32, %c0_i32_0 : i32, i32
  }
  func.func @transform_2(%arg0: i32, %arg1: i32) -> (i32, i32) {
    %c0_i32 = arith.constant 0 : i32
    %c0_i32_0 = arith.constant 0 : i32
    %c0_i32_1 = arith.constant 0 : i32
    return %c0_i32, %c0_i32_0 : i32, i32
  }
  func.func @transform_3(%arg0: i32, %arg1: i32) -> (i32, i32, i32) {
    %c0_i32 = arith.constant 0 : i32
    %c0_i32_0 = arith.constant 0 : i32
    return %arg0, %c0_i32, %arg1 : i32, i32, i32
  }
}

</mosaic_0001>

<bundles_post_ra>
// kernel: _lambda_.18
= control target key start
LH: loop header
LB: loop body
LE: loop exit
PB: predicated region body
PF: predicated region fallthrough
CT: control target
= control target key end

     0   :  { %s605_s12 = smov 0   ;;  %s607_s13 = smov 0   ;;  %s648_s0 = inlined_call_operand.vmem [shape: bf16[2,36,512], index: 0, kind: input, shape index: {}]   ;;  %s649_s1 = inlined_call_operand.vmem [shape: bf16[8,36], index: 1, kind: input, shape index: {}]   ;;  %s650_s2 = inlined_call_operand.vmem [shape: f32[8,1], index: 2, kind: input, shape index: {}]   ;;  %s651_s3 = inlined_call_operand.vmem [shape: bf16[2,8,512], index: 3, kind: output, shape index: {}]  }
   0x1   :  { %s609_s14 = smov 0  }
   0x2 LB: > { %s25_s15 = sadd.s32 1, %s578_s13  ;;  %p490_p0 = scmp.ge.s32.totalorder %s582_s14, 1  ;;  %s582_s14 = sphi %s609_s14, %s13_s14   ;;  %s578_s13 = sphi %s607_s13, %s653_s13   ;;  %s574_s12 = sphi %s605_s12, %s652_s12  }
   0x3   : > { %p27_p1 = scmp.ge.s32.totalorder %s25_s15, 2  ;;  %p158_p2 = scmp.lt.s32.totalorder %s582_s14, 3 }
   0x5   : > { %s655_s15 = smov (%p27_p1, %s25_s15), 0  ;;  %p159_p3 = pnand %p490_p0, %p158_p2 }
   0x6   : > { %p191_p4 = scmp.lt.s32.totalorder (!%p159_p3), %s574_s12, 1  ;;  %v584_v0 = vmov (!%p159_p3), 0   ;;  %v222_v1 = vld [vmem:[%s650_s2] sm:$0xff] (!%p159_p3)  ;;  %vm282_vm0 = vcmask (!%p159_p3), 1041408   ;;  %vm278_vm1 = vcmask (!%p159_p3), 293888  }
   0x7   : > { %162 = sbr.rel (%p159_p3) target bundleno = 251 (0xfb), region = 32  ;;  %327 = vmatprep.mubr.bf16.mxu0 (!%p159_p3), %v584_v0  ;;  %368 = vmatprep.mubr.bf16.mxu1 (!%p159_p3), %v584_v0  ;;  %v211_v18 = vld [vmem:[%s649_s1] sm:$0xf] (!%p159_p3) }
   0x8   : > { %543 = vset.pattern.permute.xlu0 (!%p159_p3), %v584_v0 }
   0x9   : > { %225 = vperm.xlu0 (!%p159_p3), %543, %v222_v1  }
   0xe   : > { %s657_s12 = smov (!%p191_p4, %s574_s12), 1 }
   0xf   : > { %s517_s18 = smul.u32 80, %s657_s12  ;;  %s514_s24 = sshll.u32 %s657_s12, 4 }
  0x10   : > { %s208_s27 = scalar_lea.vmem %s651_s3, %s514_s24 }
  0x11   : > { %s198_s21 = scalar_lea.vmem %s648_s0, %s517_s18 }
  0x12   : > { %v544_v2 = vld [vmem:[%s198_s21 + $0x4] ss:$16 sps:$4 sm:$0xff]   ;;  %v546_v3 = vld [vmem:[%s198_s21 + $0xc] ss:$16 sps:$4 sm:$0xff]   ;;  %v548_v4 = vld [vmem:[%s198_s21] ss:$16 sps:$4 sm:$0xff]  }
  0x13   : > { %295 = vmatprep.subr.bf16.mxu0 %v544_v2  ;;  %v549_v5 = vld [vmem:[%s198_s21 + $0x8] ss:$16 sps:$4 sm:$0xff]   ;;  %336 = vmatprep.subr.bf16.mxu1 %v546_v3  ;;  %v550_v6 = vld [vmem:[%s198_s21 + $0x24] ss:$16 sps:$4 sm:$0xff]   ;;  %v552_v7 = vld [vmem:[%s198_s21 + $0x2c] ss:$16 sps:$4 sm:$0xff]  }
  0x14   : > { %296 = vmatpush1.bf16.msra.mxu0 %v548_v4  ;;  %337 = vmatpush1.bf16.msra.mxu1 %v549_v5  ;;  %v554_v8 = vld [vmem:[%s198_s21 + $0x20] ss:$16 sps:$4 sm:$0xff]   ;;  %v555_v9 = vld [vmem:[%s198_s21 + $0x28] ss:$16 sps:$4 sm:$0xff]  }
  0x15   : > { %297 = vmatprep.subr.bf16.mxu0 %v550_v6  ;;  %v220_v10 = vld [vmem:[%s198_s21 + $0x40] sm:$0x33]  ;;  %v221_v11 = vld [vmem:[%s198_s21 + $0x48] sm:$0x33]  ;;  %338 = vmatprep.subr.bf16.mxu1 %v552_v7 }
  0x16   : > { %v503_v12 = vcombine.high %v220_v10, %v220_v10  ;;  %v505_v13 = vcombine.high %v221_v11, %v221_v11  ;;  %v502_v14 = vcombine.low %v220_v10, %v220_v10  ;;  %v504_v15 = vcombine.low %v221_v11, %v221_v11 }
  0x18   : > { %298 = vmatpush1.bf16.msra.mxu0 %v554_v8  ;;  %339 = vmatpush1.bf16.msra.mxu1 %v555_v9  ;;  %v284_v16 = vsel %vm282_vm0, %v502_v14, 0  ;;  %v290_v17 = vsel %vm282_vm0, %v504_v15, 0 }
  0x19   : > { %506 = vmatprep.subr.msk.bf16.mxu0 %vm282_vm0, %v503_v12  ;;  %508 = vmatprep.subr.msk.bf16.mxu1 %vm282_vm0, %v505_v13 }
  0x1c   : > { %300 = vmatpush1.bf16.msra.mxu0 %v284_v16  ;;  %341 = vmatpush1.bf16.msra.mxu1 %v290_v17 }
  0x1f   : > { %507 = vmatmul.mubr.msk.bf16.vlgmr.msra.gmra.mrb[0].mxu0 %vm278_vm1, %v211_v18  ;;  %509 = vmatmul.mubr.msk.bf16.vlgmr.msra.gmra.mrb[0].mxu1 %vm278_vm1, %v211_v18 }
  0x88   : > { %v226_v19 = vpop.permute.xlu0 %225 }
  0xf2   : > { %v329_v20 = vpop.f32.mrb[0].mxu0  ;;  %v370_v21 = vpop.f32.mrb[0].mxu1 }
  0xf3   : > { %v330_v22 = vadd.f32 %v329_v20, %v226_v19  ;;  %v371_v23 = vadd.f32 %v370_v21, %v226_v19  ;;  %v331_v24 = vpop.f32.mrb[1].mxu0  ;;  %v372_v25 = vpop.f32.mrb[1].mxu1 }
  0xf4   : > { %v332_v26 = vadd.f32 %v331_v24, %v226_v19  ;;  %v373_v27 = vadd.f32 %v372_v25, %v226_v19  ;;  %v333_v28 = vpop.f32.mrb[2].mxu0  ;;  %v374_v29 = vpop.f32.mrb[2].mxu1 }
  0xf5   : > { %v377_v30 = vmax.f32 %v330_v22, 0.0  ;;  %v379_v31 = vmax.f32 %v371_v23, 0.0  ;;  %v334_v32 = vpop.f32.mrb[3].mxu0  ;;  %v375_v33 = vpop.f32.mrb[3].mxu1 }
  0xf6   : > { %v378_v34 = vmax.f32 %v332_v26, 0.0  ;;  %v380_v35 = vmax.f32 %v373_v27, 0.0 }
  0xf8   : > { %v515_v36 = vpack.c.bf16 %v378_v34, %v377_v30  ;;  %v516_v37 = vpack.c.bf16 %v380_v35, %v379_v31 }
  0xfa   : > { %397 = vst [vmem:[%s208_s27] sm:$0xff] %v515_v36  ;;  %398 = vst [vmem:[%s208_s27 + $0x8] sm:$0xff] %v516_v37 }
  0xfb PF: > { %s13_s14 = sadd.s32 1, %s582_s14   ;;  %s652_s12 = smov %s578_s13 }
  0xfc   : > { %p10_p5 = scmp.ge.s32.totalorder %s13_s14, 4   ;;  %s653_s13 = smov %s655_s15 }
  0xfe   :  { %12 = sbr.rel (!%p10_p5) target bundleno = 2 (0x2), region = 62 }

// kernel: _lambda_.19
= control target key start
LH: loop header
LB: loop body
LE: loop exit
PB: predicated region body
PF: predicated region fallthrough
CT: control target
= control target key end

     0   :  { %s531_s12 = smov 0   ;;  %s533_s13 = smov 0   ;;  %s577_s0 = inlined_call_operand.vmem [shape: bf16[2,72,128], index: 0, kind: input, shape index: {}]   ;;  %s578_s1 = inlined_call_operand.vmem [shape: bf16[16,72], index: 1, kind: input, shape index: {}]   ;;  %s579_s2 = inlined_call_operand.vmem [shape: f32[16,1], index: 2, kind: input, shape index: {}]   ;;  %s580_s3 = inlined_call_operand.vmem [shape: bf16[2,16,128], index: 3, kind: output, shape index: {}]  }
   0x1   :  { %s535_s14 = smov 0  }
   0x2 LB: > { %s25_s15 = sadd.s32 1, %s502_s13  ;;  %p406_p0 = scmp.ge.s32.totalorder %s506_s14, 1  ;;  %s506_s14 = sphi %s535_s14, %s13_s14   ;;  %s502_s13 = sphi %s533_s13, %s582_s13   ;;  %s498_s12 = sphi %s531_s12, %s581_s12  }
   0x3   : > { %p27_p1 = scmp.ge.s32.totalorder %s25_s15, 2  ;;  %p156_p2 = scmp.lt.s32.totalorder %s506_s14, 3 }
   0x5   : > { %s584_s15 = smov (%p27_p1, %s25_s15), 0  ;;  %p157_p3 = pnand %p406_p0, %p156_p2 }
   0x6   : > { %p186_p4 = scmp.lt.s32.totalorder (!%p157_p3), %s498_s12, 1  ;;  %v508_v0 = vmov (!%p157_p3), 0.0   ;;  %vm509_vm0 = vmmov (!%p157_p3), 0   ;;  %v214_v1 = vld [vmem:[%s579_s2] sm:$0xff] (!%p157_p3)  ;;  %v510_v2 = vmov (!%p157_p3), 0   ;;  %v215_v3 = vld [vmem:[%s579_s2 + $0x8] sm:$0xff] (!%p157_p3) }
   0x7   : > { %160 = sbr.rel (%p157_p3) target bundleno = 259 (0x103), region = 32  ;;  %435 = vmatprep.subr.bf16.mxu0 (!%p157_p3), %v508_v0  ;;  %445 = vmatprep.mubr.msk.bf16.mxu0 (!%p157_p3), %vm509_vm0, %v508_v0  ;;  %vm262_vm1 = vcmask (!%p157_p3), 1043456   ;;  %v483_v10 = vld [vmem:[%s578_s1] sm:$0xff] (!%p157_p3)   ;;  %vm258_vm2 = vcmask (!%p157_p3), 588800  }
   0x8   : > { %477 = vset.pattern.permute.xlu0 (!%p157_p3), %v510_v2 }
   0x9   : > { %218 = vperm.xlu0 (!%p157_p3), %477, %v214_v1  }
   0xd   : > { %223 = vperm.xlu0 (!%p157_p3), %477, %v215_v3  }
   0xe   : > { %s586_s12 = smov (!%p186_p4, %s498_s12), 1 }
   0xf   : > { %s449_s18 = smul.u32 36, %s586_s12  ;;  %s421_s26 = sshll.u32 %s586_s12, 3 }
  0x10   : > { %s201_s29 = scalar_lea.vmem %s580_s3, %s421_s26 }
  0x11   : > { %s193_s23 = scalar_lea.vmem %s577_s0, %s449_s18 }
  0x12   : > { %v478_v4 = vld [vmem:[%s193_s23] sm:$0xff]   ;;  %v479_v5 = vld [vmem:[%s193_s23 + $0x8] sm:$0xff]   ;;  %v480_v6 = vld [vmem:[%s193_s23 + $0x10] sm:$0xff]  }
  0x13   : > { %436 = vmatpush3.bf16.msra.mxu0 %v478_v4  ;;  %v481_v7 = vld [vmem:[%s193_s23 + $0x18] sm:$0xff]   ;;  %v482_v8 = vld [vmem:[%s193_s23 + $0x20] ss:$0 sps:$4 sm:$0xff]  }
  0x14   : > { %437 = vmatprep.subr.bf16.mxu0 %v508_v0  ;;  %v264_v9 = vsel %vm262_vm1, %v482_v8, 0 }
  0x17   : > { %438 = vmatpush3.bf16.msra.mxu0 %v479_v5 }
  0x18   : > { %439 = vmatprep.subr.bf16.mxu0 %v508_v0 }
  0x1b   : > { %440 = vmatpush3.bf16.msra.mxu0 %v480_v6 }
  0x1c   : > { %441 = vmatprep.subr.bf16.mxu0 %v508_v0 }
  0x1f   : > { %442 = vmatpush3.bf16.msra.mxu0 %v481_v7 }
  0x20   : > { %443 = vmatprep.subr.bf16.mxu0 %v508_v0 }
  0x23   : > { %444 = vmatpush3.bf16.msra.mxu0 %v264_v9 }
  0x26   : > { %446 = vmatmul.mubr.msk.bf16.vlgmr.msra.gmra.mrb[0].mxu0 %vm258_vm2, %v483_v10 }
  0x88   : > { %v219_v11 = vpop.permute.xlu0 %218 }
  0x8c   : > { %v224_v15 = vpop.permute.xlu0 %223 }
  0xf9   : > { %v300_v12 = vpop.f32.mrb[0].mxu0 }
  0xfa   : > { %v301_v13 = vadd.f32 %v300_v12, %v219_v11  ;;  %v447_v14 = vpop.f32.mrb[1].mxu0 }
  0xfb   : > { %v303_v16 = vpop.f32.mrb[2].mxu0 }
  0xfc   : > { %v304_v17 = vadd.f32 %v303_v16, %v224_v15  ;;  %v448_v18 = vpop.f32.mrb[3].mxu0  ;;  %v307_v19 = vmax.f32 %v301_v13, 0.0 }
  0xfe   : > { %v308_v20 = vmax.f32 %v304_v17, 0.0 }
 0x100   : > { %v427_v21 = vpack.c.bf16 %v308_v20, %v307_v19 }
 0x102   : > { %428 = vst [vmem:[%s201_s29] sm:$0xff] %v427_v21  }
 0x103 PF: > { %s13_s14 = sadd.s32 1, %s506_s14   ;;  %s581_s12 = smov %s502_s13 }
 0x104   : > { %p10_p5 = scmp.ge.s32.totalorder %s13_s14, 4   ;;  %s582_s13 = smov %s584_s15 }
 0x106   :  { %12 = sbr.rel (!%p10_p5) target bundleno = 2 (0x2), region = 62 }

// kernel: _lambda_.20
= control target key start
LH: loop header
LB: loop body
LE: loop exit
PB: predicated region body
PF: predicated region fallthrough
CT: control target
= control target key end

     0   :  { %s625_s12 = smov 0   ;;  %s627_s13 = smov 0   ;;  %s697_s0 = inlined_call_operand.vmem [shape: bf16[2,144,32], index: 0, kind: input, shape index: {}]   ;;  %s698_s1 = inlined_call_operand.vmem [shape: bf16[32,144], index: 1, kind: input, shape index: {}]   ;;  %s699_s2 = inlined_call_operand.vmem [shape: f32[32,1], index: 2, kind: input, shape index: {}]   ;;  %s700_s3 = inlined_call_operand.vmem [shape: bf16[2,32,32], index: 3, kind: output, shape index: {}]  }
   0x1   :  { %s629_s14 = smov 0  }
   0x2 LB: > { %s25_s15 = sadd.s32 1, %s598_s13  ;;  %p489_p0 = scmp.ge.s32.totalorder %s602_s14, 1  ;;  %s602_s14 = sphi %s629_s14, %s13_s14   ;;  %s598_s13 = sphi %s627_s13, %s702_s13   ;;  %s594_s12 = sphi %s625_s12, %s701_s12  }
   0x3   : > { %p27_p1 = scmp.ge.s32.totalorder %s25_s15, 2  ;;  %p156_p2 = scmp.lt.s32.totalorder %s602_s14, 3 }
   0x5   : > { %s704_s15 = smov (%p27_p1, %s25_s15), 0  ;;  %p157_p3 = pnand %p489_p0, %p156_p2 }
   0x6   : > { %p186_p4 = scmp.lt.s32.totalorder (!%p157_p3), %s594_s12, 1  ;;  %v604_v0 = vmov (!%p157_p3), 0   ;;  %v576_v1 = vld [vmem:[%s698_s1 + $0x4] ss:$8 sps:$4 sm:$0xff] (!%p157_p3)   ;;  %vm321_vm0 = vcmask (!%p157_p3), 130048   ;;  %v227_v3 = vld [vmem:[%s699_s2 + $0x10] sm:$0xff] (!%p157_p3) }
   0x7   : > { %160 = sbr.rel (%p157_p3) target bundleno = 275 (0x113), region = 32  ;;  %328 = vmatprep.subr.bf16.mxu0 (!%p157_p3), %v604_v0  ;;  %519 = vmatprep.subr.bf16.mxu1 (!%p157_p3), %v604_v0  ;;  %v579_v2 = vld [vmem:[%s698_s1 + $0x14] ss:$8 sps:$4 sm:$0xff] (!%p157_p3)   ;;  %v225_v4 = vld [vmem:[%s699_s2] sm:$0xff] (!%p157_p3)  ;;  %v226_v6 = vld [vmem:[%s699_s2 + $0x8] sm:$0xff] (!%p157_p3)  ;;  %vm397_vm1 = vcmask (!%p157_p3), 257024  }
   0x8   : > { %564 = vset.pattern.permute.xlu1 (!%p157_p3), %v604_v0  ;;  %563 = vset.pattern.permute.xlu0 (!%p157_p3), %v604_v0  ;;  %v228_v5 = vld [vmem:[%s699_s2 + $0x18] sm:$0xff] (!%p157_p3)  ;;  %v574_v16 = vld [vmem:[%s698_s1] ss:$8 sps:$4 sm:$0xff] (!%p157_p3)  }
   0x9   : > { %506 = vmatprep.mubr.msk.bf16.mxu0 (!%p157_p3), %vm321_vm0, %v576_v1  ;;  %241 = vperm.xlu1 (!%p157_p3), %564, %v227_v3   ;;  %v577_v17 = vld [vmem:[%s698_s1 + $0x10] ss:$8 sps:$4 sm:$0xff] (!%p157_p3)  }
   0xa   : > { %507 = vmatprep.mubr.msk.bf16.mxu1 (!%p157_p3), %vm321_vm0, %v579_v2  ;;  %231 = vperm.xlu0 (!%p157_p3), %563, %v225_v4  }
   0xd   : > { %246 = vperm.xlu1 (!%p157_p3), %564, %v228_v5  }
   0xe   : > { %s706_s12 = smov (!%p186_p4, %s594_s12), 1  ;;  %236 = vperm.xlu0 %563, %v226_v6  }
   0xf   : > { %s537_s24 = smul.u32 72, %s706_s12  ;;  %s514_s9 = sshll.u32 %s706_s12, 4 }
  0x10   : > { %s201_s16 = scalar_lea.vmem %s700_s3, %s514_s9 }
  0x11   : > { %s667_s4 = scalar_lea.vmem %s697_s0, %s537_s24 }
  0x12   : > { %v565_v7 = vld [vmem:[%s667_s4] sm:$0xff]   ;;  %v566_v8 = vld [vmem:[%s667_s4 + $0x8] sm:$0xff]   ;;  %v567_v9 = vld [vmem:[%s667_s4 + $0x10] sm:$0xff]  }
  0x13   : > { %329 = vmatpush1.bf16.msra.mxu0 %v565_v7  ;;  %528 = vmatpush1.bf16.msra.mxu1 %v565_v7  ;;  %v568_v10 = vld [vmem:[%s667_s4 + $0x18] sm:$0xff]   ;;  %v569_v11 = vld [vmem:[%s667_s4 + $0x20] sm:$0xff]   ;;  %v570_v12 = vld [vmem:[%s667_s4 + $0x28] sm:$0xff]  }
  0x14   : > { %330 = vmatprep.subr.bf16.mxu0 %v604_v0  ;;  %520 = vmatprep.subr.bf16.mxu1 %v604_v0  ;;  %v571_v13 = vld [vmem:[%s667_s4 + $0x30] sm:$0xff]   ;;  %v572_v14 = vld [vmem:[%s667_s4 + $0x38] sm:$0xff]   ;;  %v573_v15 = vld [vmem:[%s667_s4 + $0x40] sm:$0xff]  }
  0x17   : > { %331 = vmatpush1.bf16.msra.mxu0 %v566_v8  ;;  %529 = vmatpush1.bf16.msra.mxu1 %v566_v8 }
  0x18   : > { %332 = vmatprep.subr.bf16.mxu0 %v604_v0  ;;  %521 = vmatprep.subr.bf16.mxu1 %v604_v0 }
  0x1b   : > { %333 = vmatpush1.bf16.msra.mxu0 %v567_v9  ;;  %530 = vmatpush1.bf16.msra.mxu1 %v567_v9 }
  0x1c   : > { %334 = vmatprep.subr.bf16.mxu0 %v604_v0  ;;  %522 = vmatprep.subr.bf16.mxu1 %v604_v0 }
  0x1f   : > { %335 = vmatpush1.bf16.msra.mxu0 %v568_v10  ;;  %531 = vmatpush1.bf16.msra.mxu1 %v568_v10 }
  0x20   : > { %336 = vmatprep.subr.bf16.mxu0 %v604_v0  ;;  %523 = vmatprep.subr.bf16.mxu1 %v604_v0 }
  0x23   : > { %337 = vmatpush1.bf16.msra.mxu0 %v569_v11  ;;  %532 = vmatpush1.bf16.msra.mxu1 %v569_v11 }
  0x24   : > { %338 = vmatprep.subr.bf16.mxu0 %v604_v0  ;;  %524 = vmatprep.subr.bf16.mxu1 %v604_v0 }
  0x27   : > { %339 = vmatpush1.bf16.msra.mxu0 %v570_v12  ;;  %533 = vmatpush1.bf16.msra.mxu1 %v570_v12 }
  0x28   : > { %340 = vmatprep.subr.bf16.mxu0 %v604_v0  ;;  %525 = vmatprep.subr.bf16.mxu1 %v604_v0 }
  0x2b   : > { %341 = vmatpush1.bf16.msra.mxu0 %v571_v13  ;;  %534 = vmatpush1.bf16.msra.mxu1 %v571_v13 }
  0x2c   : > { %342 = vmatprep.subr.bf16.mxu0 %v604_v0  ;;  %526 = vmatprep.subr.bf16.mxu1 %v604_v0 }
  0x2f   : > { %343 = vmatpush1.bf16.msra.mxu0 %v572_v14  ;;  %535 = vmatpush1.bf16.msra.mxu1 %v572_v14 }
  0x30   : > { %344 = vmatprep.subr.bf16.mxu0 %v604_v0  ;;  %527 = vmatprep.subr.bf16.mxu1 %v604_v0 }
  0x33   : > { %345 = vmatpush1.bf16.msra.mxu0 %v573_v15  ;;  %536 = vmatpush1.bf16.msra.mxu1 %v573_v15 }
  0x36   : > { %361 = vmatmul.mubr.bf16.vlgmr.msra.gmra.mrb[0].mxu0 %v574_v16  ;;  %369 = vmatmul.mubr.bf16.vlgmr.msra.gmra.mrb[0].mxu1 %v577_v17 }
  0x88   : > { %v242_v18 = vpop.permute.xlu1 %241 }
  0x89   : > { %v232_v19 = vpop.permute.xlu0 %231 }
  0x8c   : > { %v247_v20 = vpop.permute.xlu1 %246 }
  0x8d   : > { %v237_v21 = vpop.permute.xlu0 %236 }
 0x109   : > { %v362_v22 = vpop.f32.mrb[0].mxu0  ;;  %v370_v23 = vpop.f32.mrb[0].mxu1 }
 0x10a   : > { %v363_v24 = vadd.f32 %v362_v22, %v232_v19  ;;  %v371_v25 = vadd.f32 %v370_v23, %v242_v18  ;;  %v364_v26 = vpop.f32.mrb[1].mxu0  ;;  %v372_v27 = vpop.f32.mrb[1].mxu1 }
 0x10b   : > { %v365_v28 = vpop.f32.mrb[2].mxu0  ;;  %v373_v29 = vpop.f32.mrb[2].mxu1 }
 0x10c   : > { %v377_v30 = vmax.f32 %v363_v24, 0.0  ;;  %v379_v31 = vmax.f32 %v371_v25, 0.0  ;;  %v366_v32 = vadd.f32 %v365_v28, %v237_v21  ;;  %v374_v33 = vadd.f32 %v373_v29, %v247_v20  ;;  %v367_v34 = vpop.f32.mrb[3].mxu0  ;;  %v375_v35 = vpop.f32.mrb[3].mxu1 }
 0x10e   : > { %v515_v36 = vpack.c.bf16 %v377_v30, %v377_v30  ;;  %v517_v37 = vpack.c.bf16 %v379_v31, %v379_v31  ;;  %v378_v38 = vmax.f32 %v366_v32, 0.0  ;;  %v380_v39 = vmax.f32 %v374_v33, 0.0 }
 0x110   : > { %398 = vst.msk [vmem:[%s201_s16] sm:$0xf] %vm397_vm1, %v515_v36  ;;  %400 = vst.msk [vmem:[%s201_s16 + $0x8] sm:$0xf] %vm397_vm1, %v517_v37  ;;  %v516_v40 = vpack.c.bf16 %v378_v38, %v378_v38  ;;  %v518_v41 = vpack.c.bf16 %v380_v39, %v380_v39 }
 0x112   : > { %399 = vst.msk [vmem:[%s201_s16 + $0x4] sm:$0xf] %vm397_vm1, %v516_v40  ;;  %401 = vst.msk [vmem:[%s201_s16 + $0xc] sm:$0xf] %vm397_vm1, %v518_v41 }
 0x113 PF: > { %s13_s14 = sadd.s32 1, %s602_s14   ;;  %s701_s12 = smov %s598_s13 }
 0x114   : > { %p10_p5 = scmp.ge.s32.totalorder %s13_s14, 4   ;;  %s702_s13 = smov %s704_s15 }
 0x116   :  { %12 = sbr.rel (!%p10_p5) target bundleno = 2 (0x2), region = 62 }

// kernel: _lambda_.21
= control target key start
LH: loop header
LB: loop body
LE: loop exit
PB: predicated region body
PF: predicated region fallthrough
CT: control target
= control target key end

     0   :  { %s836_s12 = smov 0   ;;  %s838_s13 = smov 0   ;;  %s990_s0 = inlined_call_operand.vmem [shape: bf16[2,32,32], index: 0, kind: input, shape index: {}]   ;;  %s991_s1 = inlined_call_operand.vmem [shape: bf16[128,32], index: 1, kind: input, shape index: {}]   ;;  %s992_s2 = inlined_call_operand.vmem [shape: f32[128,1], index: 2, kind: input, shape index: {}]   ;;  %s993_s3 = inlined_call_operand.vmem [shape: bf16[2,128,32], index: 3, kind: output, shape index: {}]  }
   0x1   :  { %s840_s14 = smov 0  }
   0x2 LB: > { %s25_s15 = sadd.s32 1, %s809_s13  ;;  %p661_p0 = scmp.ge.s32.totalorder %s813_s14, 1  ;;  %s813_s14 = sphi %s840_s14, %s13_s14   ;;  %s809_s13 = sphi %s838_s13, %s995_s13   ;;  %s805_s12 = sphi %s836_s12, %s994_s12  }
   0x3   : > { %p27_p1 = scmp.ge.s32.totalorder %s25_s15, 2  ;;  %p156_p2 = scmp.lt.s32.totalorder %s813_s14, 3 }
   0x5   : > { %s997_s15 = smov (%p27_p1, %s25_s15), 0  ;;  %p157_p3 = pnand %p661_p0, %p156_p2 }
   0x6   : > { %p186_p4 = scmp.lt.s32.totalorder (!%p157_p3), %s805_s12, 1  ;;  %v783_v0 = vld [vmem:[%s991_s1] sm:$0xff] (!%p157_p3)   ;;  %vm371_vm0 = vcmask (!%p157_p3), 261120   ;;  %v815_v2 = vmov (!%p157_p3), 0   ;;  %v225_v5 = vld [vmem:[%s992_s2 + $0x10] sm:$0xff] (!%p157_p3)  ;;  %v785_v7 = vld [vmem:[%s991_s1 + $0x8] sm:$0xff] (!%p157_p3)  }
   0x7   : > { %160 = sbr.rel (%p157_p3) target bundleno = 254 (0xfe), region = 32  ;;  %v784_v1 = vld [vmem:[%s991_s1 + $0x20] sm:$0xff] (!%p157_p3)   ;;  %734 = vmatprep.mubr.msk.bf16.mxu0 (!%p157_p3), %vm371_vm0, %v783_v0  ;;  %780 = vset.pattern.permute.xlu1 (!%p157_p3), %v815_v2  ;;  %v786_v8 = vld [vmem:[%s991_s1 + $0x28] sm:$0xff] (!%p157_p3)   ;;  %v226_v9 = vld [vmem:[%s992_s2 + $0x18] sm:$0xff] (!%p157_p3)  ;;  %vm557_vm1 = vcmask (!%p157_p3), 257024  }
   0x8   : > { %742 = vmatprep.mubr.msk.bf16.mxu1 (!%p157_p3), %vm371_vm0, %v784_v1  ;;  %779 = vset.pattern.permute.xlu0 (!%p157_p3), %v815_v2  ;;  %v223_v6 = vld [vmem:[%s992_s2] sm:$0xff] (!%p157_p3)  ;;  %v224_v10 = vld [vmem:[%s992_s2 + $0x8] sm:$0xff] (!%p157_p3)  ;;  %v787_v11 = vld [vmem:[%s991_s1 + $0x10] sm:$0xff] (!%p157_p3)  }
   0x9   : > { %251 = vperm.xlu1 (!%p157_p3), %780, %v225_v5   ;;  %241 = vperm.xlu0 (!%p157_p3), %779, %v223_v6   ;;  %v788_v12 = vld [vmem:[%s991_s1 + $0x30] sm:$0xff] (!%p157_p3)   ;;  %v228_v13 = vld [vmem:[%s992_s2 + $0x28] sm:$0xff] (!%p157_p3)  ;;  %v227_v14 = vld [vmem:[%s992_s2 + $0x20] sm:$0xff] (!%p157_p3) }
   0xa   : > { %v789_v15 = vld [vmem:[%s991_s1 + $0x18] sm:$0xff] (!%p157_p3)   ;;  %v229_v18 = vld [vmem:[%s992_s2 + $0x30] sm:$0xff] (!%p157_p3)  ;;  %v232_v19 = vld [vmem:[%s992_s2 + $0x48] sm:$0xff] (!%p157_p3) }
   0xb   : > { %v790_v16 = vld [vmem:[%s991_s1 + $0x38] sm:$0xff] (!%p157_p3)   ;;  %v231_v20 = vld [vmem:[%s992_s2 + $0x40] sm:$0xff] (!%p157_p3)  ;;  %v233_v22 = vld [vmem:[%s992_s2 + $0x50] sm:$0xff] (!%p157_p3) }
   0xc   : > { %v230_v17 = vld [vmem:[%s992_s2 + $0x38] sm:$0xff] (!%p157_p3)  ;;  %v236_v23 = vld [vmem:[%s992_s2 + $0x68] sm:$0xff] (!%p157_p3)  ;;  %v235_v24 = vld [vmem:[%s992_s2 + $0x60] sm:$0xff] (!%p157_p3) }
   0xd   : > { %256 = vperm.xlu1 (!%p157_p3), %780, %v226_v9   ;;  %246 = vperm.xlu0 (!%p157_p3), %779, %v224_v10   ;;  %v234_v21 = vld [vmem:[%s992_s2 + $0x58] sm:$0xff] (!%p157_p3)  ;;  %v237_v26 = vld [vmem:[%s992_s2 + $0x70] sm:$0xff] (!%p157_p3) }
   0xe   : > { %s999_s12 = smov (!%p186_p4, %s805_s12), 1  ;;  %v238_v25 = vld [vmem:[%s992_s2 + $0x78] sm:$0xff] }
   0xf   : > { %s702_s20 = sshll.u32 %s999_s12, 4  ;;  %s703_s22 = sshll.u32 %s999_s12, 6 }
  0x10   : > { %s193_s23 = scalar_lea.vmem %s990_s0, %s702_s20  ;;  %s946_s25 = scalar_lea.vmem %s993_s3, %s703_s22 }
  0x11   : > { %v781_v3 = vld [vmem:[%s193_s23] sm:$0xff]   ;;  %v782_v4 = vld [vmem:[%s193_s23 + $0x8] sm:$0xff]   ;;  %266 = vperm.xlu1 %780, %v228_v13   ;;  %261 = vperm.xlu0 %779, %v227_v14  }
  0x12   : > { %730 = vmatprep.subr.bf16.mxu0 %v781_v3  ;;  %750 = vmatprep.subr.bf16.mxu1 %v781_v3 }
  0x13   : > { %731 = vmatpush3.bf16.msra.mxu0 %v781_v3  ;;  %752 = vmatpush3.bf16.msra.mxu1 %v781_v3 }
  0x14   : > { %732 = vmatprep.subr.bf16.mxu0 %v782_v4  ;;  %751 = vmatprep.subr.bf16.mxu1 %v782_v4 }
  0x15   : > { %276 = vperm.xlu1 %780, %v230_v17   ;;  %271 = vperm.xlu0 %779, %v229_v18  }
  0x17   : > { %733 = vmatpush3.bf16.msra.mxu0 %v782_v4  ;;  %753 = vmatpush3.bf16.msra.mxu1 %v782_v4 }
  0x19   : > { %286 = vperm.xlu1 %780, %v232_v19   ;;  %281 = vperm.xlu0 %779, %v231_v20  }
  0x1a   : > { %735 = vmatmul.mubr.msk.bf16.vlgmr.msra.gmra.mrb[0].mxu0 %vm371_vm0, %v785_v7  ;;  %743 = vmatmul.mubr.msk.bf16.vlgmr.msra.gmra.mrb[0].mxu1 %vm371_vm0, %v786_v8 }
  0x1b   : > { %738 = vmatprep.mubr.msk.bf16.mxu0 %vm371_vm0, %v787_v11  ;;  %746 = vmatprep.mubr.msk.bf16.mxu1 %vm371_vm0, %v788_v12 }
  0x1d   : > { %296 = vperm.xlu1 %780, %v234_v21   ;;  %291 = vperm.xlu0 %779, %v233_v22  }
  0x21   : > { %306 = vperm.xlu1 %780, %v236_v23   ;;  %301 = vperm.xlu0 %779, %v235_v24  }
  0x22   : > { %739 = vmatmul.mubr.msk.bf16.gmra.mrb[4].mxu0 %vm371_vm0, %v789_v15  ;;  %747 = vmatmul.mubr.msk.bf16.gmra.mrb[4].mxu1 %vm371_vm0, %v790_v16 }
  0x25   : > { %316 = vperm.xlu1 %780, %v238_v25   ;;  %311 = vperm.xlu0 %779, %v237_v26  }
  0x88   : > { %v252_v27 = vpop.permute.xlu1 %251  ;;  %v242_v28 = vpop.permute.xlu0 %241 }
  0x8c   : > { %v257_v29 = vpop.permute.xlu1 %256  ;;  %v247_v30 = vpop.permute.xlu0 %246 }
  0x90   : > { %v940_v31 = vpop.permute.xlu1 %266  ;;  %v262_v32 = vpop.permute.xlu0 %261 }
  0x94   : > { %v277_v33 = vpop.permute.xlu1 %276  ;;  %v272_v34 = vpop.permute.xlu0 %271 }
  0x98   : > { %v287_v35 = vpop.permute.xlu1 %286  ;;  %v282_v36 = vpop.permute.xlu0 %281 }
  0x9c   : > { %v297_v37 = vpop.permute.xlu1 %296  ;;  %v292_v38 = vpop.permute.xlu0 %291 }
  0xa0   : > { %v307_v39 = vpop.permute.xlu1 %306  ;;  %v302_v40 = vpop.permute.xlu0 %301 }
  0xa4   : > { %v317_v1 = vpop.permute.xlu1 %316  ;;  %v312_v2 = vpop.permute.xlu0 %311 }
  0xed   : > { %v736_v41 = vpop.f32.mrb[0].mxu0  ;;  %v744_v42 = vpop.f32.mrb[0].mxu1 }
  0xee   : > { %v439_v43 = vadd.f32 %v736_v41, %v252_v27  ;;  %v471_v44 = vadd.f32 %v744_v42, %v292_v38  ;;  %v430_v45 = vpop.f32.mrb[1].mxu0  ;;  %v462_v46 = vpop.f32.mrb[1].mxu1 }
  0xef   : > { %v431_v47 = vadd.f32 %v430_v45, %v242_v28  ;;  %v463_v48 = vadd.f32 %v462_v46, %v282_v36  ;;  %v737_v49 = vpop.f32.mrb[2].mxu0  ;;  %v745_v50 = vpop.f32.mrb[2].mxu1 }
  0xf0   : > { %v706_v51 = vpack.c.bf16 %v439_v43, %v439_v43  ;;  %v714_v52 = vpack.c.bf16 %v471_v44, %v471_v44  ;;  %v442_v53 = vadd.f32 %v737_v49, %v257_v29  ;;  %v474_v54 = vadd.f32 %v745_v50, %v297_v37  ;;  %v433_v55 = vpop.f32.mrb[3].mxu0  ;;  %v465_v56 = vpop.f32.mrb[3].mxu1 }
  0xf1   : > { %v704_v57 = vpack.c.bf16 %v431_v47, %v431_v47  ;;  %v712_v58 = vpack.c.bf16 %v463_v48, %v463_v48  ;;  %v434_v59 = vadd.f32 %v433_v55, %v247_v30  ;;  %v466_v60 = vadd.f32 %v465_v56, %v287_v35 }
  0xf2   : > { %560 = vst.msk [vmem:[%s946_s25 + $0x8] sm:$0xf] %vm557_vm1, %v706_v51  ;;  %568 = vst.msk [vmem:[%s946_s25 + $0x28] sm:$0xf] %vm557_vm1, %v714_v52  ;;  %v707_v61 = vpack.c.bf16 %v442_v53, %v442_v53  ;;  %v715_v62 = vpack.c.bf16 %v474_v54, %v474_v54 }
  0xf3   : > { %558 = vst.msk [vmem:[%s946_s25] sm:$0xf] %vm557_vm1, %v704_v57  ;;  %566 = vst.msk [vmem:[%s946_s25 + $0x20] sm:$0xf] %vm557_vm1, %v712_v58  ;;  %v705_v63 = vpack.c.bf16 %v434_v59, %v434_v59  ;;  %v713_v0 = vpack.c.bf16 %v466_v60, %v466_v60 }
  0xf4   : > { %561 = vst.msk [vmem:[%s946_s25 + $0xc] sm:$0xf] %vm557_vm1, %v707_v61  ;;  %569 = vst.msk [vmem:[%s946_s25 + $0x2c] sm:$0xf] %vm557_vm1, %v715_v62 }
  0xf5   : > { %559 = vst.msk [vmem:[%s946_s25 + $0x4] sm:$0xf] %vm557_vm1, %v705_v63  ;;  %567 = vst.msk [vmem:[%s946_s25 + $0x24] sm:$0xf] %vm557_vm1, %v713_v0  ;;  %v740_v3 = vpop.f32.mrb[4].mxu0  ;;  %v748_v4 = vpop.f32.mrb[4].mxu1 }
  0xf6   : > { %v455_v5 = vadd.f32 %v740_v3, %v272_v34  ;;  %v487_v6 = vadd.f32 %v748_v4, %v312_v2  ;;  %v446_v7 = vpop.f32.mrb[5].mxu0  ;;  %v478_v8 = vpop.f32.mrb[5].mxu1 }
  0xf7   : > { %v447_v9 = vadd.f32 %v446_v7, %v262_v32  ;;  %v479_v10 = vadd.f32 %v478_v8, %v302_v40  ;;  %v741_v11 = vpop.f32.mrb[6].mxu0  ;;  %v749_v12 = vpop.f32.mrb[6].mxu1 }
  0xf8   : > { %v710_v13 = vpack.c.bf16 %v455_v5, %v455_v5  ;;  %v718_v14 = vpack.c.bf16 %v487_v6, %v487_v6  ;;  %v458_v15 = vadd.f32 %v741_v11, %v277_v33  ;;  %v490_v16 = vadd.f32 %v749_v12, %v317_v1  ;;  %v449_v17 = vpop.f32.mrb[7].mxu0  ;;  %v481_v18 = vpop.f32.mrb[7].mxu1 }
  0xf9   : > { %v708_v19 = vpack.c.bf16 %v447_v9, %v447_v9  ;;  %v716_v20 = vpack.c.bf16 %v479_v10, %v479_v10  ;;  %v450_v21 = vadd.f32 %v449_v17, %v940_v31  ;;  %v482_v22 = vadd.f32 %v481_v18, %v307_v39 }
  0xfa   : > { %564 = vst.msk [vmem:[%s946_s25 + $0x18] sm:$0xf] %vm557_vm1, %v710_v13  ;;  %572 = vst.msk [vmem:[%s946_s25 + $0x38] sm:$0xf] %vm557_vm1, %v718_v14  ;;  %v711_v23 = vpack.c.bf16 %v458_v15, %v458_v15  ;;  %v719_v24 = vpack.c.bf16 %v490_v16, %v490_v16 }
  0xfb   : > { %562 = vst.msk [vmem:[%s946_s25 + $0x10] sm:$0xf] %vm557_vm1, %v708_v19  ;;  %570 = vst.msk [vmem:[%s946_s25 + $0x30] sm:$0xf] %vm557_vm1, %v716_v20  ;;  %v709_v25 = vpack.c.bf16 %v450_v21, %v450_v21  ;;  %v717_v26 = vpack.c.bf16 %v482_v22, %v482_v22 }
  0xfc   : > { %565 = vst.msk [vmem:[%s946_s25 + $0x1c] sm:$0xf] %vm557_vm1, %v711_v23  ;;  %573 = vst.msk [vmem:[%s946_s25 + $0x3c] sm:$0xf] %vm557_vm1, %v719_v24 }
  0xfd   : > { %563 = vst.msk [vmem:[%s946_s25 + $0x14] sm:$0xf] %vm557_vm1, %v709_v25  ;;  %571 = vst.msk [vmem:[%s946_s25 + $0x34] sm:$0xf] %vm557_vm1, %v717_v26 }
  0xfe PF: > { %s13_s14 = sadd.s32 1, %s813_s14   ;;  %s994_s12 = smov %s809_s13 }
  0xff   : > { %p10_p5 = scmp.ge.s32.totalorder %s13_s14, 4   ;;  %s995_s13 = smov %s997_s15 }
 0x101   :  { %12 = sbr.rel (!%p10_p5) target bundleno = 2 (0x2), region = 62 }

// kernel: _lambda_.23
= control target key start
LH: loop header
LB: loop body
LE: loop exit
PB: predicated region body
PF: predicated region fallthrough
CT: control target
= control target key end

     0   :  { %s1163_s12 = smov 0   ;;  %s1165_s13 = smov 0   ;;  %s1314_s0 = inlined_call_operand.vmem [shape: bf16[2,64,384], index: 0, kind: input, shape index: {}, may-alias: {0,1,2}]   ;;  %s1315_s1 = inlined_call_operand.vmem [shape: bf16[2,64,384], index: 1, kind: input, shape index: {}, may-alias: {0,1,2}]   ;;  %s1316_s2 = inlined_call_operand.vmem [shape: bf16[2,64,384], index: 2, kind: input, shape index: {}, may-alias: {0,1,2}]   ;;  %s1317_s3 = inlined_call_operand.vmem [shape: bf16[2,64,128], index: 3, kind: output, shape index: {}]  }
   0x1   :  { %s1167_s14 = smov 0   ;;  %s1169_s15 = smov 0  }
   0x2   :  { %s1171_s16 = smov 0   ;;  %s1173_s17 = smov 0  }
   0x3   :  { %s1175_s18 = smov 0   ;;  %s1177_s19 = smov 0  }
   0x4   :  { %s1179_s20 = smov 0  }
   0x5 LB: > { %s25_s21 = sadd.s32 1, %s1133_s18  ;;  %s32_s22 = sadd.s32 1, %s1137_s19  ;;  %s1141_s20 = sphi %s1179_s20, %s13_s20   ;;  %s1137_s19 = sphi %s1177_s19, %s1327_s19   ;;  %s1133_s18 = sphi %s1175_s18, %s1326_s18   ;;  %s1129_s17 = sphi %s1173_s17, %s1325_s17   ;;  %s1125_s16 = sphi %s1171_s16, %s1324_s16   ;;  %s1121_s15 = sphi %s1169_s15, %s1323_s15   ;;  %s1117_s14 = sphi %s1167_s14, %s1322_s14   ;;  %s1113_s13 = sphi %s1165_s13, %s1321_s13   ;;  %s1109_s12 = sphi %s1163_s12, %s1320_s12  }
   0x6   : > { %p26_p0 = scmp.ge.s32.totalorder %s25_s21, 2  ;;  %p50_p1 = scmp.ne.s32.totalorder %s1121_s15, %s1117_s14 }
   0x7   : > { %p51_p2 = scmp.eq.s32.totalorder %s1141_s20, 0  ;;  %p80_p5 = scmp.ne.s32.totalorder %s1113_s13, %s1109_s12 }
   0x8   : > { %s1329_s21 = smov (%p26_p0, %s25_s21), 0  ;;  %s1331_s22 = smov (!%p26_p0, %s32_s22), %s1137_s19 }
   0x9   : > { %p1216_p3 = por %p51_p2, %p50_p1  ;;  %p34_p4 = scmp.ge.s32.totalorder %s1331_s22, 2 }
   0xa   : > { %s37_s24 = ssub.s32 %s1133_s18, %s1329_s21  ;;  %s43_s25 = sadd.s32 1, %s1121_s15 }
   0xb   : > { %s1333_s22 = smov (%p34_p4, %s1331_s22), 0  ;;  %p1227_p6 = por %p80_p5, %p51_p2 }
   0xc   : > { %s36_s27 = ssub.s32 %s1137_s19, %s1333_s22  ;;  %s73_s28 = sadd.s32 1, %s1113_s13 }
   0xd   : > { %s38_s29 = sor.u32 %s37_s24, %s36_s27  ;;  %p71_p7 = scmp.eq.s32.totalorder %s36_s27, 0 }
   0xe   : > { %p41_p8 = scmp.eq.s32.totalorder %s38_s29, 0  ;;  %p870_p9 = scmp.ge.s32.totalorder %s1141_s20, 4 }
   0xf   : > { %s1235_s30 = scalar_select %p71_p7, %s1113_s13, %s73_s28  }
  0x10   : > { %s1238_s4 = scalar_select %p41_p8, %s1121_s15, %s43_s25  }
  0x11   : > { %166 = sbr.rel (%p870_p9) target bundleno = 54 (0x36), region = 16 }
  0x18   : > { %169 = sbr.rel (!%p1216_p3) target bundleno = 34 (0x22), region = 20  ;;  %s171_s5 = sand.u32 (%p1216_p3), 1, %s1121_s15  }
  0x19   : > { %s971_s6 = smul.u32 (%p1216_p3), 12, %s1133_s18  ;;  %s871_s7 = sshll.u32 (%p1216_p3), %s171_s5, 4 }
  0x1a   : > { %s972_s8 = smul.u32 (%p1216_p3), 24, %s1137_s19  ;;  %s173_s27 = scalar_lea.vmem (%p1216_p3), [#allocation2], %s871_s7 }
  0x1c   : > { %s178_s9 = sadd.s32 (%p1216_p3), %s972_s8, %s971_s6 }
  0x1d   : > { %s874_s10 = sshll.u32 (%p1216_p3), %s178_s9, 2 }
  0x1e   : > { %s180_s25 = scalar_lea.vmem (%p1216_p3), %s1314_s0, %s874_s10 }
  0x1f   : > { %v196_v0 = vld [vmem:[%s180_s25] sm:$0xf]  ;;  %v198_v1 = vld [vmem:[%s180_s25 + $0xc] sm:$0xf]  ;;  %v200_v2 = vld [vmem:[%s180_s25 + $0x18] sm:$0xf] }
  0x20   : > { %197 = vst [vmem:[%s173_s27] sm:$0xf] %v196_v0  ;;  %199 = vst [vmem:[%s173_s27 + $0x4] sm:$0xf] %v198_v1  ;;  %v202_v3 = vld [vmem:[%s180_s25 + $0x24] sm:$0xf] }
  0x21   : > { %201 = vst [vmem:[%s173_s27 + $0x8] sm:$0xf] %v200_v2  ;;  %203 = vst [vmem:[%s173_s27 + $0xc] sm:$0xf] %v202_v3 }
  0x22 PF: > { %234 = sbr.rel (!%p1227_p6) target bundleno = 44 (0x2c), region = 61  ;;  %s236_s23 = sand.u32 (%p1227_p6), 1, %s1113_s13  }
  0x23   : > { %s876_s28 = smul.u32 (%p1227_p6), 96, %s1137_s19  ;;  %s875_s29 = sshll.u32 (%p1227_p6), %s236_s23, 5 }
  0x24   : > { %s238_s7 = scalar_lea.vmem (%p1227_p6), [#allocation3], %s875_s29 }
  0x25   : > { %s767_s8 = scalar_lea.vmem (%p1227_p6), %s1315_s1, %s876_s28 }
  0x26   : > { %v877_v4 = vld [vmem:[%s767_s8 + $0x4] sm:$0xf] (%p1227_p6)  ;;  %v878_v5 = vld [vmem:[%s767_s8 + $0x10] sm:$0xf] (%p1227_p6)  ;;  %v879_v6 = vld [vmem:[%s767_s8 + $0x1c] sm:$0xf] (%p1227_p6) }
  0x27   : > { %260 = vst [vmem:[%s238_s7] sm:$0xf] (%p1227_p6), %v877_v4  ;;  %262 = vst [vmem:[%s238_s7 + $0x4] sm:$0xf] (%p1227_p6), %v878_v5  ;;  %v880_v7 = vld [vmem:[%s767_s8 + $0x28] sm:$0xf] (%p1227_p6) }
  0x28   : > { %264 = vst [vmem:[%s238_s7 + $0x8] sm:$0xf] (%p1227_p6), %v879_v6  ;;  %v881_v8 = vld [vmem:[%s767_s8 + $0x34] sm:$0xf] (%p1227_p6)  ;;  %v882_v9 = vld [vmem:[%s767_s8 + $0x40] sm:$0xf] (%p1227_p6) }
  0x29   : > { %266 = vst [vmem:[%s238_s7 + $0xc] sm:$0xf] %v880_v7  ;;  %268 = vst [vmem:[%s238_s7 + $0x10] sm:$0xf] %v881_v8  ;;  %v883_v10 = vld [vmem:[%s767_s8 + $0x4c] sm:$0xf] }
  0x2a   : > { %270 = vst [vmem:[%s238_s7 + $0x14] sm:$0xf] %v882_v9  ;;  %v884_v11 = vld [vmem:[%s767_s8 + $0x58] sm:$0xf]  ;;  %272 = vst [vmem:[%s238_s7 + $0x18] sm:$0xf] %v883_v10 }
  0x2b   : > { %274 = vst [vmem:[%s238_s7 + $0x1c] sm:$0xf] %v884_v11 }
  0x2c PF: > { %313 = sbr.rel (!%p1227_p6) target bundleno = 54 (0x36), region = 102  ;;  %s315_s9 = sand.u32 (%p1227_p6), 1, %s1113_s13  }
  0x2d   : > { %s886_s10 = smul.u32 (%p1227_p6), 96, %s1137_s19  ;;  %s885_s11 = sshll.u32 (%p1227_p6), %s315_s9, 5 }
  0x2e   : > { %s317_s23 = scalar_lea.vmem (%p1227_p6), [#allocation4], %s885_s11 }
  0x2f   : > { %s774_s27 = scalar_lea.vmem (%p1227_p6), %s1316_s2, %s886_s10 }
  0x30   : > { %v887_v12 = vld [vmem:[%s774_s27 + $0x8] sm:$0xf] (%p1227_p6)  ;;  %v888_v13 = vld [vmem:[%s774_s27 + $0x14] sm:$0xf] (%p1227_p6)  ;;  %v889_v14 = vld [vmem:[%s774_s27 + $0x20] sm:$0xf] (%p1227_p6) }
  0x31   : > { %339 = vst [vmem:[%s317_s23] sm:$0xf] (%p1227_p6), %v887_v12  ;;  %341 = vst [vmem:[%s317_s23 + $0x4] sm:$0xf] (%p1227_p6), %v888_v13  ;;  %v890_v15 = vld [vmem:[%s774_s27 + $0x2c] sm:$0xf] (%p1227_p6) }
  0x32   : > { %343 = vst [vmem:[%s317_s23 + $0x8] sm:$0xf] (%p1227_p6), %v889_v14  ;;  %v891_v16 = vld [vmem:[%s774_s27 + $0x38] sm:$0xf] (%p1227_p6)  ;;  %v892_v17 = vld [vmem:[%s774_s27 + $0x44] sm:$0xf] (%p1227_p6) }
  0x33   : > { %345 = vst [vmem:[%s317_s23 + $0xc] sm:$0xf] %v890_v15  ;;  %347 = vst [vmem:[%s317_s23 + $0x10] sm:$0xf] %v891_v16  ;;  %v893_v18 = vld [vmem:[%s774_s27 + $0x50] sm:$0xf] }
  0x34   : > { %349 = vst [vmem:[%s317_s23 + $0x14] sm:$0xf] %v892_v17  ;;  %v894_v19 = vld [vmem:[%s774_s27 + $0x5c] sm:$0xf]  ;;  %351 = vst [vmem:[%s317_s23 + $0x18] sm:$0xf] %v893_v18 }
  0x35   : > { %353 = vst [vmem:[%s317_s23 + $0x1c] sm:$0xf] %v894_v19 }
  0x36 PF: > { %p895_p10 = scmp.ge.s32.totalorder %s1141_s20, 1  ;;  %p391_p11 = scmp.lt.s32.totalorder %s1141_s20, 5 }
  0x38   : > { %p392_p12 = pnand %p895_p10, %p391_p11 }
  0x39   : > { %s405_s26 = sand.u32 (!%p392_p12), 1, %s1109_s12   ;;  %s398_s28 = sand.u32 (!%p392_p12), 1, %s1117_s14   ;;  %vm572_vm0 = vcmask (!%p392_p12), 523264  }
  0x3a   : > { %395 = sbr.rel (%p392_p12) target bundleno = 691 (0x2b3), region = 143  ;;  %s1267_s29 = sshll.u32 (!%p392_p12), %s405_s26, 5 }
  0x3b   : > { %s896_s5 = sshll.u32 (!%p392_p12), %s398_s28, 4  ;;  %s407_s6 = scalar_lea.vmem (!%p392_p12), [#allocation3], %s1267_s29 }
  0x3c   : > { %v1045_v20 = vld [vmem:[%s407_s6] sm:$0xff] (!%p392_p12)   ;;  %v1046_v21 = vld [vmem:[%s407_s6 + $0x8] sm:$0xff] (!%p392_p12)   ;;  %s400_s8 = scalar_lea.vmem (!%p392_p12), [#allocation2], %s896_s5  ;;  %v1047_v23 = vld [vmem:[%s407_s6 + $0x10] sm:$0xff] (!%p392_p12)   ;;  %s414_s12 = scalar_lea.vmem (!%p392_p12), [#allocation4], %s1267_s29 }
  0x3d   : > { %947 = vmatprep.subr.bf16.mxu0 (!%p392_p12), %v1045_v20  ;;  %v1049_v22 = vld [vmem:[%s400_s8] sm:$0xff] (!%p392_p12)   ;;  %v1048_v24 = vld [vmem:[%s407_s6 + $0x18] sm:$0xff] (!%p392_p12)   ;;  %v1052_v35 = vld [vmem:[%s414_s12 + $0x8] sm:$0xff] (!%p392_p12)   ;;  %s899_s14 = sshll.u32 (!%p392_p12), %s1125_s16, 2  ;;  %p454_p13 = scmp.lt.s32.totalorder (!%p392_p12), %s1129_s17, 1 }
  0x3e   : > { %948 = vmatpush3.bf16.xpose.msra.mxu0 (!%p392_p12), %v1045_v20  ;;  %955 = vmatprep.mubr.bf16.mxu0 (!%p392_p12), %v1049_v22  ;;  %v1050_v25 = vld [vmem:[%s400_s8 + $0x8] sm:$0xff] (!%p392_p12)   ;;  %v1051_v34 = vld [vmem:[%s414_s12] sm:$0xff] (!%p392_p12)   ;;  %v1053_v36 = vld [vmem:[%s414_s12 + $0x10] sm:$0xff] (!%p392_p12)   ;;  %p456_p0 = scmp.lt.s32.totalorder (!%p392_p12), %s899_s14, 7 }
  0x3f   : > { %949 = vmatprep.subr.bf16.mxu0 (!%p392_p12), %v1046_v21  ;;  %959 = vmatprep.subr.bf16.mxu1 (!%p392_p12), %v1051_v34  ;;  %v1054_v37 = vld [vmem:[%s414_s12 + $0x18] sm:$0xff] (!%p392_p12)  }
  0x40   : > { %960 = vmatpush3.bf16.msra.mxu1 (!%p392_p12), %v1051_v34 }
  0x41   : > { %961 = vmatprep.subr.bf16.mxu1 %v1052_v35  ;;  %s1335_s17 = smov (!%p454_p13, %s1129_s17), 1  ;;  %s1337_s14 = smov (!%p456_p0, %s899_s14), 7 }
  0x42   : > { %s900_s7 = sshll.u32 %s1335_s17, 3 }
  0x43   : > { %s462_s9 = sadd.s32 %s900_s7, %s1337_s14 }
  0x44   : > { %962 = vmatpush3.bf16.msra.mxu1 %v1052_v35  ;;  %s901_s10 = sshll.u32 %s462_s9, 2 }
  0x45   : > { %963 = vmatprep.subr.bf16.mxu1 %v1053_v36  ;;  %s464_s24 = scalar_lea.vmem %s1317_s3, %s901_s10 }
  0x46   : > { %950 = vmatpush3.bf16.xpose.msra.mxu0 %v1046_v21 }
  0x47   : > { %951 = vmatprep.subr.bf16.mxu0 %v1047_v23 }
  0x48   : > { %964 = vmatpush3.bf16.msra.mxu1 %v1053_v36 }
  0x49   : > { %965 = vmatprep.subr.bf16.mxu1 %v1054_v37 }
  0x4c   : > { %966 = vmatpush3.bf16.msra.mxu1 %v1054_v37 }
  0x4e   : > { %952 = vmatpush3.bf16.xpose.msra.mxu0 %v1047_v23 }
  0x4f   : > { %953 = vmatprep.subr.bf16.mxu0 %v1048_v24 }
  0x56   : > { %954 = vmatpush3.bf16.xpose.msra.mxu0 %v1048_v24 }
  0x5d   : > { %956 = vmatmul.mubr.bf16.vlgmr.msra.gmra.mrb[0].mxu0 %v1050_v25 }
 0x130   : > { %v957_v26 = vpop.f32.mrb[0].mxu0 }
 0x131   : > { %v557_v27 = vpop.f32.mrb[1].mxu0  ;;  %v579_v28 = vsel %vm572_vm0, %v957_v26, -inf }
 0x132   : > { %580 = vmax.xlane.f32.xlu1 %v579_v28  ;;  %v958_v29 = vpop.f32.mrb[2].mxu0  ;;  %v573_v30 = vsel %vm572_vm0, %v557_v27, -inf }
 0x133   : > { %574 = vmax.xlane.f32.xlu0 %v573_v30  ;;  %v560_v31 = vpop.f32.mrb[3].mxu0  ;;  %v582_v32 = vsel %vm572_vm0, %v958_v29, -inf }
 0x134   : > { %v576_v33 = vsel %vm572_vm0, %v560_v31, -inf }
 0x136   : > { %583 = vmax.xlane.f32.xlu1 %v582_v32 }
 0x137   : > { %577 = vmax.xlane.f32.xlu0 %v576_v33 }
 0x1bf   : > { %v581_v38 = vpop.xlane.xlu1 %580 }
 0x1c0   : > { %v587_v39 = vsub.f32 %v957_v26, %v581_v38  ;;  %v575_v40 = vpop.xlane.xlu0 %574 }
 0x1c1   : > { %v585_v41 = vsub.f32 %v557_v27, %v575_v40 }
 0x1c2   : > { %v593_v42 = vmul.f32 1.442695, %v587_v39 }
 0x1c3   : > { %v589_v43 = vmul.f32 1.442695, %v585_v41  ;;  %v584_v44 = vpop.xlane.xlu1 %583 }
 0x1c4   : > { %v588_v45 = vsub.f32 %v958_v29, %v584_v44  ;;  %v578_v46 = vpop.xlane.xlu0 %577 }
 0x1c5   : > { %1055 = vpow2.f32 %v589_v43  ;;  %v586_v47 = vsub.f32 %v560_v31, %v578_v46 }
 0x1c6   : > { %v595_v48 = vmul.f32 1.442695, %v588_v45  ;;  %1057 = vpow2.f32 %v593_v42 }
 0x1c7   : > { %v591_v49 = vmul.f32 1.442695, %v586_v47 }
 0x1c8   : > { %1059 = vpow2.f32 %v595_v48 }
 0x1c9   : > { %1061 = vpow2.f32 %v591_v49 }
 0x1cf   : > { %v1056_v50 = vpop.eup %1055 }
 0x1d0   : > { %v597_v51 = vsel %vm572_vm0, %v1056_v50, 0.0  ;;  %v1058_v52 = vpop.eup %1057 }
 0x1d1   : > { %598 = vadd.xlane.f32.xlu0 %v597_v51  ;;  %v603_v56 = vsel %vm572_vm0, %v1058_v52, 0.0 }
 0x1d2   : > { %v1060_v53 = vpop.eup %1059 }
 0x1d3   : > { %v1062_v54 = vpop.eup %1061  ;;  %v610_v55 = vpack.c.bf16 %v1060_v53, %v1058_v52  ;;  %v606_v59 = vsel %vm572_vm0, %v1060_v53, 0.0 }
 0x1d4   : > { %v600_v57 = vsel %vm572_vm0, %v1062_v54, 0.0  ;;  %v609_v58 = vpack.c.bf16 %v1062_v54, %v1056_v50 }
 0x1d5   : > { %604 = vadd.xlane.f32.xlu0 %v603_v56  ;;  %601 = vadd.xlane.f32.xlu1 %v600_v57 }
 0x1d6   : > { %967 = vmatprep.mubr.msk.bf16.mxu1 %vm572_vm0, %v609_v58 }
 0x1d7   : > { %968 = vmatmul.mubr.msk.bf16.vlgmr.msra.gmra.mrb[0].mxu1 %vm572_vm0, %v610_v55 }
 0x1d9   : > { %607 = vadd.xlane.f32.xlu1 %v606_v59 }
 0x25e   : > { %v599_v60 = vpop.xlane.xlu0 %598 }
 0x25f   : > { %1063 = vrcp.f32 %v599_v60 }
 0x262   : > { %v602_v61 = vpop.xlane.xlu1 %601  ;;  %v605_v62 = vpop.xlane.xlu0 %604 }
 0x263   : > { %1065 = vrcp.f32 %v605_v62 }
 0x266   : > { %v608_v63 = vpop.xlane.xlu1 %607 }
 0x267   : > { %1067 = vrcp.f32 %v608_v63 }
 0x268   : > { %1069 = vrcp.f32 %v602_v61 }
 0x269   : > { %v1064_v0 = vpop.eup %1063 }
 0x26d   : > { %v1066_v2 = vpop.eup %1065 }
 0x271   : > { %v1068_v4 = vpop.eup %1067 }
 0x272   : > { %v1070_v6 = vpop.eup %1069 }
 0x2aa   : > { %v969_v1 = vpop.f32.mrb[0].mxu1 }
 0x2ab   : > { %v675_v3 = vpop.f32.mrb[1].mxu1  ;;  %v696_v7 = vmul.f32 %v1066_v2, %v969_v1 }
 0x2ac   : > { %v970_v5 = vpop.f32.mrb[2].mxu1  ;;  %v694_v10 = vmul.f32 %v1064_v0, %v675_v3 }
 0x2ad   : > { %v697_v8 = vmul.f32 %v1068_v4, %v970_v5  ;;  %v678_v9 = vpop.f32.mrb[3].mxu1 }
 0x2ae   : > { %v695_v11 = vmul.f32 %v1070_v6, %v678_v9 }
 0x2af   : > { %v932_v12 = vpack.c.bf16 %v697_v8, %v696_v7 }
 0x2b0   : > { %v927_v13 = vpack.c.bf16 %v695_v11, %v694_v10 }
 0x2b1   : > { %934 = vst [vmem:[%s464_s24 + $0x8] sm:$0xff] %v932_v12  }
 0x2b2   : > { %928 = vst [vmem:[%s464_s24] sm:$0xff] %v927_v13  }
 0x2b3 PF: > { %s13_s20 = sadd.s32 1, %s1141_s20   ;;  %s1320_s12 = smov %s1113_s13 }
 0x2b4   : > { %p10_p1 = scmp.ge.s32.totalorder %s13_s20, 6   ;;  %s1321_s13 = smov %s1235_s30 }
 0x2b5   : > { %s1322_s14 = smov %s1121_s15  ;;  %s1323_s15 = smov %s1238_s4 }
 0x2b6   : > { %s1324_s16 = smov %s1133_s18  ;;  %s1325_s17 = smov %s1137_s19 }
 0x2b7   : > { %s1326_s18 = smov %s1329_s21  ;;  %s1327_s19 = smov %s1333_s22 }
 0x2b8   :  { %12 = sbr.rel (!%p10_p1) target bundleno = 5 (0x5), region = 206 }

// kernel: _lambda_.24
= control target key start
LH: loop header
LB: loop body
LE: loop exit
PB: predicated region body
PF: predicated region fallthrough
CT: control target
= control target key end

     0   :  { %s858_s15 = smov 0   ;;  %s860_s16 = smov 0   ;;  %s932_s0 = inlined_call_operand.vmem [shape: bf16[128,128], index: 0, kind: input, shape index: {}]   ;;  %s933_s1 = inlined_call_operand.vmem [shape: bf16[128,128], index: 1, kind: input, shape index: {}]   ;;  %s934_s2 = inlined_call_operand.vmem [shape: f32[1,128], index: 2, kind: input, shape index: {}]   ;;  %s935_s3 = inlined_call_operand.vmem [shape: bf16[128,128], index: 3, kind: input, shape index: {}]   ;;  %s936_s4 = inlined_call_operand.vmem [shape: bf16[128,128], index: 4, kind: output, shape index: {}]  }
   0x1   :  { %s862_s17 = smov 0  }
   0x2 LB: > { %s26_s18 = sadd.s32 1, %s827_s16  ;;  %p641_p0 = scmp.ge.s32.totalorder %s831_s17, 1  ;;  %s831_s17 = sphi %s862_s17, %s14_s17   ;;  %s827_s16 = sphi %s860_s16, %s938_s16   ;;  %s823_s15 = sphi %s858_s15, %s937_s15  }
   0x3   : > { %p28_p1 = scmp.ge.s32.totalorder %s26_s18, 2  ;;  %p210_p2 = scmp.lt.s32.totalorder %s831_s17, 3 }
   0x5   : > { %s940_s18 = smov (%p28_p1, %s26_s18), 0  ;;  %p211_p3 = pnand %p641_p0, %p210_p2 }
   0x6   : > { %v797_v0 = vld [vmem:[%s933_s1] sm:$0xff] (!%p211_p3)   ;;  %s642_s21 = sshll.u32 (!%p211_p3), %s823_s15, 3  ;;  %v798_v1 = vld [vmem:[%s933_s1 + $0x8] sm:$0xff] (!%p211_p3)   ;;  %v799_v2 = vld [vmem:[%s933_s1 + $0x10] sm:$0xff] (!%p211_p3)  }
   0x7   : > { %214 = sbr.rel (%p211_p3) target bundleno = 261 (0x105), region = 36  ;;  %p255_p4 = scmp.lt.s32.totalorder (!%p211_p3), %s642_s21, 15  ;;  %733 = vmatprep.subr.bf16.mxu0 (!%p211_p3), %v797_v0  ;;  %757 = vmatprep.subr.bf16.mxu1 (!%p211_p3), %v797_v0  ;;  %v800_v3 = vld [vmem:[%s933_s1 + $0x18] sm:$0xff] (!%p211_p3)   ;;  %v801_v6 = vld [vmem:[%s933_s1 + $0x20] sm:$0xff] (!%p211_p3)   ;;  %v802_v7 = vld [vmem:[%s933_s1 + $0x28] sm:$0xff] (!%p211_p3)  }
   0x8   : > { %734 = vmatpush3.bf16.msra.mxu0 (!%p211_p3), %v797_v0  ;;  %765 = vmatpush3.bf16.msra.mxu1 (!%p211_p3), %v797_v0  ;;  %v803_v8 = vld [vmem:[%s933_s1 + $0x30] sm:$0xff] (!%p211_p3)   ;;  %v804_v9 = vld [vmem:[%s933_s1 + $0x38] sm:$0xff] (!%p211_p3)   ;;  %v648_v16 = vld [vmem:[%s934_s2] ss:$0 sm:$0xff] (!%p211_p3) }
   0x9   : > { %735 = vmatprep.subr.bf16.mxu0 (!%p211_p3), %v798_v1  ;;  %758 = vmatprep.subr.bf16.mxu1 (!%p211_p3), %v798_v1 }
   0xc   : > { %736 = vmatpush3.bf16.msra.mxu0 (!%p211_p3), %v798_v1  ;;  %766 = vmatpush3.bf16.msra.mxu1 (!%p211_p3), %v798_v1 }
   0xd   : > { %737 = vmatprep.subr.bf16.mxu0 (!%p211_p3), %v799_v2  ;;  %759 = vmatprep.subr.bf16.mxu1 (!%p211_p3), %v799_v2 }
   0xe   : > { %s942_s21 = smov (!%p255_p4, %s642_s21), 15 }
   0xf   : > { %s885_s26 = sshll.u32 %s942_s21, 2 }
  0x10   : > { %s891_s29 = scalar_lea.vmem %s932_s0, %s885_s26  ;;  %738 = vmatpush3.bf16.msra.mxu0 %v799_v2  ;;  %767 = vmatpush3.bf16.msra.mxu1 %v799_v2  ;;  %s274_s19 = scalar_lea.vmem %s935_s3, %s885_s26 }
  0x11   : > { %v805_v4 = vld [vmem:[%s891_s29] sm:$0xff]   ;;  %v806_v5 = vld [vmem:[%s891_s29 + $0x10] sm:$0xff]   ;;  %739 = vmatprep.subr.bf16.mxu0 %v800_v3  ;;  %760 = vmatprep.subr.bf16.mxu1 %v800_v3  ;;  %v807_v10 = vld [vmem:[%s891_s29 + $0x8] sm:$0xff]   ;;  %s283_s24 = scalar_lea.vmem %s936_s4, %s885_s26 }
  0x12   : > { %749 = vmatprep.mubr.bf16.mxu0 %v805_v4  ;;  %753 = vmatprep.mubr.bf16.mxu1 %v806_v5  ;;  %v808_v11 = vld [vmem:[%s891_s29 + $0x18] sm:$0xff]   ;;  %v715_v12 = vld [vmem:[%s274_s19 + $0x8] sm:$0xff]   ;;  %v680_v14 = vld [vmem:[%s274_s19] sm:$0xff]  }
  0x13   : > { %v717_v13 = vld [vmem:[%s274_s19 + $0x18] sm:$0xff]   ;;  %v716_v15 = vld [vmem:[%s274_s19 + $0x10] sm:$0xff]   ;;  %v685_v18 = vunpack.c.l.bf16 %v715_v12  ;;  %v681_v21 = vunpack.c.l.bf16 %v680_v14  ;;  %v686_v27 = vunpack.c.h.bf16 %v715_v12  ;;  %v682_v33 = vunpack.c.h.bf16 %v680_v14 }
  0x14   : > { %740 = vmatpush3.bf16.msra.mxu0 %v800_v3  ;;  %768 = vmatpush3.bf16.msra.mxu1 %v800_v3  ;;  %v693_v20 = vunpack.c.l.bf16 %v717_v13  ;;  %v689_v22 = vunpack.c.l.bf16 %v716_v15  ;;  %v694_v28 = vunpack.c.h.bf16 %v717_v13  ;;  %v690_v34 = vunpack.c.h.bf16 %v716_v15 }
  0x15   : > { %741 = vmatprep.subr.bf16.mxu0 %v801_v6  ;;  %761 = vmatprep.subr.bf16.mxu1 %v801_v6 }
  0x18   : > { %742 = vmatpush3.bf16.msra.mxu0 %v801_v6  ;;  %769 = vmatpush3.bf16.msra.mxu1 %v801_v6 }
  0x19   : > { %743 = vmatprep.subr.bf16.mxu0 %v802_v7  ;;  %762 = vmatprep.subr.bf16.mxu1 %v802_v7 }
  0x1c   : > { %744 = vmatpush3.bf16.msra.mxu0 %v802_v7  ;;  %770 = vmatpush3.bf16.msra.mxu1 %v802_v7 }
  0x1d   : > { %745 = vmatprep.subr.bf16.mxu0 %v803_v8  ;;  %763 = vmatprep.subr.bf16.mxu1 %v803_v8 }
  0x20   : > { %746 = vmatpush3.bf16.msra.mxu0 %v803_v8  ;;  %771 = vmatpush3.bf16.msra.mxu1 %v803_v8 }
  0x21   : > { %747 = vmatprep.subr.bf16.mxu0 %v804_v9  ;;  %764 = vmatprep.subr.bf16.mxu1 %v804_v9 }
  0x24   : > { %748 = vmatpush3.bf16.msra.mxu0 %v804_v9  ;;  %772 = vmatpush3.bf16.msra.mxu1 %v804_v9 }
  0x27   : > { %750 = vmatmul.mubr.bf16.vlgmr.msra.gmra.mrb[0].mxu0 %v807_v10  ;;  %754 = vmatmul.mubr.bf16.vlgmr.msra.gmra.mrb[0].mxu1 %v808_v11 }
  0xfa   : > { %v751_v17 = vpop.f32.mrb[0].mxu0  ;;  %v755_v19 = vpop.f32.mrb[0].mxu1 }
  0xfb   : > { %v432_v23 = vadd.f32 %v751_v17, %v648_v16  ;;  %v448_v24 = vadd.f32 %v755_v19, %v648_v16  ;;  %v423_v25 = vpop.f32.mrb[1].mxu0  ;;  %v439_v26 = vpop.f32.mrb[1].mxu1 }
  0xfc   : > { %v424_v29 = vadd.f32 %v648_v16, %v423_v25  ;;  %v440_v30 = vadd.f32 %v648_v16, %v439_v26  ;;  %v752_v31 = vpop.f32.mrb[2].mxu0  ;;  %v756_v32 = vpop.f32.mrb[2].mxu1 }
  0xfd   : > { %v435_v35 = vadd.f32 %v752_v31, %v648_v16  ;;  %v451_v36 = vadd.f32 %v756_v32, %v648_v16  ;;  %v426_v37 = vpop.f32.mrb[3].mxu0  ;;  %v442_v38 = vpop.f32.mrb[3].mxu1  ;;  %v472_v41 = vadd.f32 %v685_v18, %v432_v23  ;;  %v476_v42 = vadd.f32 %v693_v20, %v448_v24 }
  0xfe   : > { %v427_v39 = vadd.f32 %v648_v16, %v426_v37  ;;  %v443_v40 = vadd.f32 %v648_v16, %v442_v38  ;;  %v470_v45 = vadd.f32 %v681_v21, %v424_v29  ;;  %v474_v46 = vadd.f32 %v689_v22, %v440_v30 }
  0xff   : > { %v473_v43 = vadd.f32 %v686_v27, %v435_v35  ;;  %v477_v44 = vadd.f32 %v694_v28, %v451_v36 }
 0x100   : > { %v471_v47 = vadd.f32 %v682_v33, %v427_v39  ;;  %v475_v48 = vadd.f32 %v690_v34, %v443_v40 }
 0x101   : > { %v703_v49 = vpack.c.bf16 %v473_v43, %v472_v41  ;;  %v713_v50 = vpack.c.bf16 %v477_v44, %v476_v42 }
 0x102   : > { %v698_v51 = vpack.c.bf16 %v471_v47, %v470_v45  ;;  %v708_v52 = vpack.c.bf16 %v475_v48, %v474_v46 }
 0x103   : > { %718 = vst [vmem:[%s283_s24 + $0x8] sm:$0xff] %v703_v49   ;;  %720 = vst [vmem:[%s283_s24 + $0x18] sm:$0xff] %v713_v50  }
 0x104   : > { %699 = vst [vmem:[%s283_s24] sm:$0xff] %v698_v51   ;;  %719 = vst [vmem:[%s283_s24 + $0x10] sm:$0xff] %v708_v52  }
 0x105 PF: > { %s14_s17 = sadd.s32 1, %s831_s17   ;;  %s937_s15 = smov %s827_s16 }
 0x106   : > { %p11_p5 = scmp.ge.s32.totalorder %s14_s17, 4   ;;  %s938_s16 = smov %s940_s18 }
 0x108   :  { %13 = sbr.rel (!%p11_p5) target bundleno = 2 (0x2), region = 75 }

// kernel: _lambda_.22
= control target key start
LH: loop header
LB: loop body
LE: loop exit
PB: predicated region body
PF: predicated region fallthrough
CT: control target
= control target key end

     0   :  { %s1211_s18 = smov 0   ;;  %s1213_s19 = smov 0   ;;  %s1411_s0 = inlined_call_operand.vmem [shape: bf16[128,128], index: 0, kind: input, shape index: {}]   ;;  %s1412_s1 = inlined_call_operand.vmem [shape: f32[1,128], index: 1, kind: input, shape index: {}]   ;;  %s1413_s2 = inlined_call_operand.vmem [shape: f32[1,128], index: 2, kind: input, shape index: {}]   ;;  %s1414_s3 = inlined_call_operand.vmem [shape: bf16[128,384], index: 3, kind: input, shape index: {}]   ;;  %s1415_s4 = inlined_call_operand.vmem [shape: f32[1,384], index: 4, kind: input, shape index: {}]   ;;  %s1416_s5 = inlined_call_operand.vmem [shape: bf16[128,384], index: 5, kind: output, shape index: {}]  }
   0x1   :  { %s1215_s20 = smov 0  }
   0x2 LB: > { %s27_s21 = sadd.s32 1, %s1174_s19  ;;  %p962_p0 = scmp.ge.s32.totalorder %s1178_s20, 1  ;;  %s1178_s20 = sphi %s1215_s20, %s15_s20   ;;  %s1174_s19 = sphi %s1213_s19, %s1418_s19   ;;  %s1170_s18 = sphi %s1211_s18, %s1417_s18  }
   0x3   : > { %p29_p1 = scmp.ge.s32.totalorder %s27_s21, 2  ;;  %p223_p2 = scmp.lt.s32.totalorder %s1178_s20, 3 }
   0x5   : > { %s1420_s21 = smov (%p29_p1, %s27_s21), 0  ;;  %p224_p3 = pnand %p962_p0, %p223_p2 }
   0x6   : > { %s963_s22 = sshll.u32 (!%p224_p3), %s1170_s18, 3  ;;  %v1108_v12 = vld [vmem:[%s1414_s3 + $0x4] ss:$12 sps:$4 sm:$0xff] (!%p224_p3)   ;;  %v1110_v13 = vld [vmem:[%s1414_s3] ss:$12 sps:$4 sm:$0xff] (!%p224_p3)  }
   0x7   : > { %227 = sbr.rel (%p224_p3) target bundleno = 581 (0x245), region = 40  ;;  %p266_p4 = scmp.lt.s32.totalorder (!%p224_p3), %s963_s22, 15  ;;  %v1111_v14 = vld [vmem:[%s1414_s3 + $0x1c] ss:$12 sps:$4 sm:$0xff] (!%p224_p3)   ;;  %611 = vmatprep.subr.bf16.mxu0 (!%p224_p3), %v1108_v12  ;;  %v1114_v48 = vld [vmem:[%s1414_s3 + $0x18] ss:$12 sps:$4 sm:$0xff] (!%p224_p3)  }
   0x8   : > { %v1113_v15 = vld [vmem:[%s1414_s3 + $0x8] ss:$12 sps:$4 sm:$0xff] (!%p224_p3)   ;;  %612 = vmatpush1.bf16.msra.mxu0 (!%p224_p3), %v1110_v13  ;;  %v1117_v50 = vld [vmem:[%s1414_s3 + $0x20] ss:$12 sps:$4 sm:$0xff] (!%p224_p3)   ;;  %v1118_v51 = vld [vmem:[%s1414_s3 + $0x30] ss:$12 sps:$4 sm:$0xff] (!%p224_p3)  }
   0x9   : > { %1058 = vmatprep.subr.bf16.mxu1 (!%p224_p3), %v1113_v15  ;;  %613 = vmatprep.subr.bf16.mxu0 (!%p224_p3), %v1111_v14  ;;  %v1115_v49 = vld [vmem:[%s1414_s3 + $0x34] ss:$12 sps:$4 sm:$0xff] (!%p224_p3)   ;;  %v1119_v52 = vld [vmem:[%s1414_s3 + $0x4c] ss:$12 sps:$4 sm:$0xff] (!%p224_p3)   ;;  %v1123_v55 = vld [vmem:[%s1414_s3 + $0x64] ss:$12 sps:$4 sm:$0xff] (!%p224_p3)  }
   0xa   : > { %1059 = vmatpush3.bf16.msra.mxu1 (!%p224_p3), %v1113_v15  ;;  %v1121_v53 = vld [vmem:[%s1414_s3 + $0x38] ss:$12 sps:$4 sm:$0xff] (!%p224_p3)   ;;  %v1122_v54 = vld [vmem:[%s1414_s3 + $0x48] ss:$12 sps:$4 sm:$0xff] (!%p224_p3)   ;;  %v1125_v56 = vld [vmem:[%s1414_s3 + $0x50] ss:$12 sps:$4 sm:$0xff] (!%p224_p3)  }
   0xb   : > { %1060 = vmatprep.subr.bf16.mxu1 (!%p224_p3), %v1117_v50  ;;  %v1126_v57 = vld [vmem:[%s1414_s3 + $0x60] ss:$12 sps:$4 sm:$0xff] (!%p224_p3)   ;;  %v1127_v58 = vld [vmem:[%s1414_s3 + $0x7c] ss:$12 sps:$4 sm:$0xff] (!%p224_p3)   ;;  %v1130_v60 = vld [vmem:[%s1414_s3 + $0x78] ss:$12 sps:$4 sm:$0xff] (!%p224_p3)  }
   0xc   : > { %614 = vmatpush1.bf16.msra.mxu0 (!%p224_p3), %v1114_v48  ;;  %v1129_v59 = vld [vmem:[%s1414_s3 + $0x68] ss:$12 sps:$4 sm:$0xff] (!%p224_p3)   ;;  %v1133_v62 = vld [vmem:[%s1414_s3 + $0x80] ss:$12 sps:$4 sm:$0xff] (!%p224_p3)   ;;  %v1134_v63 = vld [vmem:[%s1414_s3 + $0x90] ss:$12 sps:$4 sm:$0xff] (!%p224_p3)  }
   0xd   : > { %615 = vmatprep.subr.bf16.mxu0 (!%p224_p3), %v1115_v49  ;;  %v1131_v61 = vld [vmem:[%s1414_s3 + $0x94] ss:$12 sps:$4 sm:$0xff] (!%p224_p3)  }
   0xe   : > { %s1422_s22 = smov (!%p266_p4, %s963_s22), 15  ;;  %1061 = vmatpush3.bf16.msra.mxu1 %v1117_v50 }
   0xf   : > { %s964_s23 = sshll.u32 %s1422_s22, 2  ;;  %1062 = vmatprep.subr.bf16.mxu1 %v1121_v53  ;;  %s1082_s14 = smul.u32 12, %s1422_s22 }
  0x10   : > { %s269_s26 = scalar_lea.vmem %s1411_s0, %s964_s23  ;;  %616 = vmatpush1.bf16.msra.mxu0 %v1118_v51 }
  0x11   : > { %v1028_v0 = vld [vmem:[%s269_s26] sm:$0xff]   ;;  %v1043_v1 = vld [vmem:[%s269_s26 + $0x8] sm:$0xff]   ;;  %v1044_v4 = vld [vmem:[%s269_s26 + $0x10] sm:$0xff]   ;;  %617 = vmatprep.subr.bf16.mxu0 %v1119_v52  ;;  %s1370_s17 = scalar_lea.vmem %s1416_s5, %s1082_s14 }
  0x12   : > { %v1029_v2 = vunpack.c.l.bf16 %v1028_v0  ;;  %v1033_v3 = vunpack.c.l.bf16 %v1043_v1  ;;  %v1030_v5 = vunpack.c.h.bf16 %v1028_v0  ;;  %v1034_v6 = vunpack.c.h.bf16 %v1043_v1  ;;  %v1045_v9 = vld [vmem:[%s269_s26 + $0x18] sm:$0xff]   ;;  %1063 = vmatpush3.bf16.msra.mxu1 %v1121_v53 }
  0x13   : > { %v1037_v7 = vunpack.c.l.bf16 %v1044_v4  ;;  %v1038_v8 = vunpack.c.h.bf16 %v1044_v4  ;;  %v1041_v10 = vunpack.c.l.bf16 %v1045_v9  ;;  %v1042_v11 = vunpack.c.h.bf16 %v1045_v9  ;;  %1064 = vmatprep.subr.bf16.mxu1 %v1125_v56  ;;  %v1135_v0 = vld [vmem:[%s1414_s3 + $0xac] ss:$12 sps:$4 sm:$0xff]   ;;  %v1139_v4 = vld [vmem:[%s1414_s3 + $0xb0] ss:$12 sps:$4 sm:$0xff]  }
  0x14   : > { %311 = vadd.xlane.f32.xlu0 %v1029_v2  ;;  %315 = vadd.xlane.f32.xlu1 %v1033_v3  ;;  %v1137_v1 = vld [vmem:[%s1414_s3 + $0x98] ss:$12 sps:$4 sm:$0xff]  }
  0x15   : > { %618 = vmatpush1.bf16.msra.mxu0 %v1122_v54 }
  0x16   : > { %619 = vmatprep.subr.bf16.mxu0 %v1123_v55  ;;  %1065 = vmatpush3.bf16.msra.mxu1 %v1125_v56 }
  0x17   : > { %1066 = vmatprep.subr.bf16.mxu1 %v1129_v59 }
  0x18   : > { %313 = vadd.xlane.f32.xlu0 %v1030_v5  ;;  %317 = vadd.xlane.f32.xlu1 %v1034_v6 }
  0x19   : > { %620 = vmatpush1.bf16.msra.mxu0 %v1126_v57 }
  0x1a   : > { %621 = vmatprep.subr.bf16.mxu0 %v1127_v58  ;;  %1067 = vmatpush3.bf16.msra.mxu1 %v1129_v59 }
  0x1b   : > { %1068 = vmatprep.subr.bf16.mxu1 %v1133_v62 }
  0x1c   : > { %319 = vadd.xlane.f32.xlu0 %v1037_v7  ;;  %321 = vadd.xlane.f32.xlu1 %v1038_v8 }
  0x1d   : > { %622 = vmatpush1.bf16.msra.mxu0 %v1130_v60 }
  0x1e   : > { %623 = vmatprep.subr.bf16.mxu0 %v1131_v61  ;;  %1069 = vmatpush3.bf16.msra.mxu1 %v1133_v62 }
  0x1f   : > { %1070 = vmatprep.subr.bf16.mxu1 %v1137_v1 }
  0x20   : > { %323 = vadd.xlane.f32.xlu0 %v1041_v10  ;;  %325 = vadd.xlane.f32.xlu1 %v1042_v11 }
  0x21   : > { %624 = vmatpush1.bf16.msra.mxu0 %v1134_v63 }
  0x22   : > { %625 = vmatprep.subr.bf16.mxu0 %v1135_v0  ;;  %1071 = vmatpush3.bf16.msra.mxu1 %v1137_v1 }
  0x23   : > { %1072 = vmatprep.subr.bf16.mxu1 %v1139_v4 }
  0x26   : > { %1073 = vmatpush3.bf16.msra.mxu1 %v1139_v4 }
  0xa1   : > { %v312_v16 = vpop.xlane.xlu0 %311  ;;  %v316_v17 = vpop.xlane.xlu1 %315 }
  0xa2   : > { %v328_v18 = vmul.f32 0.0078125, %v312_v16  ;;  %v330_v19 = vmul.f32 0.0078125, %v316_v17 }
  0xa4   : > { %v1247_v20 = vsub.f32 %v1029_v2, %v328_v18  ;;  %v1249_v21 = vsub.f32 %v1033_v3, %v330_v19  ;;  %v1138_v2 = vld [vmem:[%s1414_s3 + $0xa8] ss:$12 sps:$4 sm:$0xff]   ;;  %v1180_v3 = vmov 0  }
  0xa5   : > { %v314_v22 = vpop.xlane.xlu0 %313  ;;  %v318_v23 = vpop.xlane.xlu1 %317  ;;  %643 = vmatprep.mubr.bf16.mxu0 %v1180_v3  ;;  %626 = vmatpush1.bf16.msra.mxu0 %v1138_v2 }
  0xa6   : > { %v329_v24 = vmul.f32 0.0078125, %v314_v22  ;;  %v344_v25 = vmul.f32 %v1247_v20, %v1247_v20  ;;  %v331_v26 = vmul.f32 0.0078125, %v318_v23  ;;  %v346_v29 = vmul.f32 %v1249_v21, %v1249_v21 }
  0xa8   : > { %v1253_v27 = vsub.f32 %v1030_v5, %v329_v24  ;;  %352 = vadd.xlane.f32.xlu0 %v344_v25  ;;  %v1255_v28 = vsub.f32 %v1034_v6, %v331_v26 }
  0xa9   : > { %v320_v30 = vpop.xlane.xlu0 %319  ;;  %v322_v31 = vpop.xlane.xlu1 %321 }
  0xaa   : > { %v332_v32 = vmul.f32 0.0078125, %v320_v30  ;;  %v345_v33 = vmul.f32 %v1253_v27, %v1253_v27  ;;  %v333_v34 = vmul.f32 0.0078125, %v322_v31  ;;  %v347_v37 = vmul.f32 %v1255_v28, %v1255_v28 }
  0xac   : > { %v1261_v35 = vsub.f32 %v1037_v7, %v332_v32  ;;  %356 = vadd.xlane.f32.xlu0 %v346_v29  ;;  %354 = vadd.xlane.f32.xlu1 %v345_v33  ;;  %v1263_v36 = vsub.f32 %v1038_v8, %v333_v34  ;;  %v967_v34 = vld [vmem:[%s1412_s1] ss:$0 sm:$0xff] }
  0xad   : > { %v324_v38 = vpop.xlane.xlu0 %323  ;;  %v326_v39 = vpop.xlane.xlu1 %325 }
  0xae   : > { %v334_v40 = vmul.f32 0.0078125, %v324_v38  ;;  %v348_v41 = vmul.f32 %v1261_v35, %v1261_v35  ;;  %v335_v42 = vmul.f32 0.0078125, %v326_v39  ;;  %v349_v45 = vmul.f32 %v1263_v36, %v1263_v36 }
  0xb0   : > { %v1269_v43 = vsub.f32 %v1041_v10, %v334_v40  ;;  %358 = vadd.xlane.f32.xlu1 %v347_v37  ;;  %360 = vadd.xlane.f32.xlu0 %v348_v41  ;;  %v1271_v44 = vsub.f32 %v1042_v11, %v335_v42  ;;  %v968_v42 = vld [vmem:[%s1413_s2] ss:$0 sm:$0xff] }
  0xb2   : > { %v350_v46 = vmul.f32 %v1269_v43, %v1269_v43  ;;  %v351_v47 = vmul.f32 %v1271_v44, %v1271_v44 }
  0xb4   : > { %362 = vadd.xlane.f32.xlu1 %v349_v45  ;;  %364 = vadd.xlane.f32.xlu0 %v350_v46 }
  0xb8   : > { %366 = vadd.xlane.f32.xlu1 %v351_v47 }
 0x135   : > { %v353_v5 = vpop.xlane.xlu0 %352 }
 0x136   : > { %v368_v6 = vmul.f32 0.0078125, %v353_v5 }
 0x138   : > { %v376_v7 = vadd.f32 1e-05, %v368_v6 }
 0x139   : > { %v355_v8 = vpop.xlane.xlu1 %354  ;;  %v357_v9 = vpop.xlane.xlu0 %356 }
 0x13a   : > { %1140 = vrsqrt.f32 %v376_v7  ;;  %v369_v10 = vmul.f32 0.0078125, %v355_v8  ;;  %v370_v11 = vmul.f32 0.0078125, %v357_v9 }
 0x13c   : > { %v377_v12 = vadd.f32 1e-05, %v369_v10  ;;  %v378_v13 = vadd.f32 1e-05, %v370_v11 }
 0x13d   : > { %v359_v14 = vpop.xlane.xlu1 %358  ;;  %v361_v15 = vpop.xlane.xlu0 %360 }
 0x13e   : > { %1142 = vrsqrt.f32 %v377_v12  ;;  %v371_v16 = vmul.f32 0.0078125, %v359_v14  ;;  %v372_v17 = vmul.f32 0.0078125, %v361_v15 }
 0x13f   : > { %1144 = vrsqrt.f32 %v378_v13 }
 0x140   : > { %v379_v18 = vadd.f32 1e-05, %v371_v16  ;;  %v380_v19 = vadd.f32 1e-05, %v372_v17 }
 0x141   : > { %v363_v22 = vpop.xlane.xlu1 %362  ;;  %v365_v23 = vpop.xlane.xlu0 %364 }
 0x142   : > { %1146 = vrsqrt.f32 %v379_v18  ;;  %v373_v24 = vmul.f32 0.0078125, %v363_v22  ;;  %v374_v25 = vmul.f32 0.0078125, %v365_v23 }
 0x143   : > { %1148 = vrsqrt.f32 %v380_v19 }
 0x144   : > { %v1141_v26 = vpop.eup %1140  ;;  %v381_v29 = vadd.f32 1e-05, %v373_v24  ;;  %v382_v30 = vadd.f32 1e-05, %v374_v25 }
 0x145   : > { %v367_v31 = vpop.xlane.xlu1 %366  ;;  %v392_v32 = vmul.f32 %v1141_v26, %v1247_v20 }
 0x146   : > { %1150 = vrsqrt.f32 %v381_v29  ;;  %v375_v33 = vmul.f32 0.0078125, %v367_v31 }
 0x147   : > { %1152 = vrsqrt.f32 %v382_v30  ;;  %v407_v41 = vmul.f32 %v967_v34, %v392_v32 }
 0x148   : > { %v1143_v37 = vpop.eup %1142  ;;  %v383_v38 = vadd.f32 1e-05, %v375_v33 }
 0x149   : > { %v1145_v39 = vpop.eup %1144  ;;  %v393_v40 = vmul.f32 %v1143_v37, %v1253_v27  ;;  %v422_v49 = vadd.f32 %v968_v42, %v407_v41 }
 0x14a   : > { %1154 = vrsqrt.f32 %v383_v38  ;;  %v394_v20 = vmul.f32 %v1145_v39, %v1249_v21 }
 0x14b   : > { %v408_v45 = vmul.f32 %v967_v34, %v393_v40 }
 0x14c   : > { %v1147_v46 = vpop.eup %1146  ;;  %v409_v47 = vmul.f32 %v967_v34, %v394_v20 }
 0x14d   : > { %v1149_v48 = vpop.eup %1148  ;;  %v423_v50 = vadd.f32 %v968_v42, %v408_v45  ;;  %v395_v51 = vmul.f32 %v1147_v46, %v1255_v28 }
 0x14e   : > { %v396_v52 = vmul.f32 %v1149_v48, %v1261_v35  ;;  %v424_v55 = vadd.f32 %v968_v42, %v409_v47 }
 0x14f   : > { %v430_v53 = vpack.c.bf16 %v423_v50, %v422_v49  ;;  %v410_v27 = vmul.f32 %v967_v34, %v395_v51 }
 0x150   : > { %v1151_v54 = vpop.eup %1150  ;;  %v411_v58 = vmul.f32 %v967_v34, %v396_v52 }
 0x151   : > { %v1153_v56 = vpop.eup %1152  ;;  %644 = vmatmul.mubr.bf16.vlgmr.msra.gmra.mrb[0].mxu0 %v430_v53  ;;  %1074 = vmatprep.mubr.bf16.mxu1 %v430_v53  ;;  %v425_v57 = vadd.f32 %v968_v42, %v410_v27  ;;  %v397_v21 = vmul.f32 %v1151_v54, %v1263_v36 }
 0x152   : > { %653 = vmatprep.mubr.bf16.mxu0 %v1180_v3  ;;  %v398_v59 = vmul.f32 %v1153_v56, %v1269_v43  ;;  %v426_v35 = vadd.f32 %v968_v42, %v411_v58  ;;  %v468_v43 = vlaneseq }
 0x153   : > { %v431_v60 = vpack.c.bf16 %v425_v57, %v424_v55  ;;  %v412_v61 = vmul.f32 %v967_v34, %v397_v21 }
 0x154   : > { %v1155_v28 = vpop.eup %1154  ;;  %v413_v0 = vmul.f32 %v967_v34, %v398_v59  ;;  %v469_v6 = vshrl.u32 %v468_v43, 7 }
 0x155   : > { %1075 = vmatmul.mubr.bf16.vlgmr.msra.gmra.mrb[0].mxu1 %v431_v60  ;;  %v427_v62 = vadd.f32 %v968_v42, %v412_v61  ;;  %v399_v63 = vmul.f32 %v1155_v28, %v1271_v44  ;;  %v466_v44 = vld [vmem:[%s1415_s4] sm:$0x7] }
 0x156   : > { %v428_v4 = vadd.f32 %v968_v42, %v413_v0  ;;  %v470_v7 = vsub.s32 0, %v469_v6  ;;  %v474_v8 = vsub.s32 1, %v469_v6  ;;  %v478_v10 = vsub.s32 2, %v469_v6 }
 0x157   : > { %v432_v1 = vpack.c.bf16 %v427_v62, %v426_v35  ;;  %v414_v2 = vmul.f32 %v967_v34, %v399_v63 }
 0x158   : > { %v1360_v9 = vrot.slane %v466_v44, %v470_v7  ;;  %v1362_v11 = vrot.slane %v466_v44, %v474_v8 }
 0x159   : > { %654 = vmatmul.mubr.bf16.gmra.mrb[4].mxu0 %v431_v60  ;;  %1078 = vmatprep.mubr.bf16.mxu1 %v432_v1  ;;  %v429_v36 = vadd.f32 %v968_v42, %v414_v2 }
 0x15a   : > { %663 = vmatprep.mubr.bf16.mxu0 %v1180_v3 }
 0x15b   : > { %v433_v5 = vpack.c.bf16 %v429_v36, %v428_v4 }
 0x15d   : > { %1079 = vmatmul.mubr.bf16.gmra.mrb[4].mxu1 %v433_v5 }
 0x161   : > { %664 = vmatmul.mubr.bf16.gmra.mrb[8].mxu0 %v432_v1 }
 0x162   : > { %673 = vmatprep.mubr.bf16.mxu0 %v1180_v3  ;;  %v479_v3 = vrot.slane %v466_v44, %v478_v10 }
 0x169   : > { %674 = vmatmul.mubr.bf16.gmra.mrb[12].mxu0 %v433_v5 }
 0x224   : > { %v645_v12 = vpop.f32.mrb[0].mxu0 }
 0x225   : > { %v646_v13 = vadd.f32 %v645_v12, %v1360_v9  ;;  %v647_v14 = vpop.f32.mrb[1].mxu0 }
 0x226   : > { %v648_v15 = vadd.f32 %v647_v14, %v1362_v11  ;;  %v649_v16 = vpop.f32.mrb[2].mxu0 }
 0x227   : > { %v650_v17 = vadd.f32 %v649_v16, %v1360_v9  ;;  %v651_v18 = vpop.f32.mrb[3].mxu0 }
 0x228   : > { %v1011_v19 = vpack.c.bf16 %v648_v15, %v646_v13  ;;  %v652_v22 = vadd.f32 %v651_v18, %v1362_v11  ;;  %v1076_v23 = vpop.f32.mrb[0].mxu1 }
 0x229   : > { %v727_v24 = vadd.f32 %v1076_v23, %v479_v3  ;;  %v718_v25 = vpop.f32.mrb[1].mxu1 }
 0x22a   : > { %829 = vst [vmem:[%s1370_s17] sm:$0xff] %v1011_v19  ;;  %v1013_v26 = vpack.c.bf16 %v652_v22, %v650_v17  ;;  %v719_v29 = vadd.f32 %v718_v25, %v479_v3  ;;  %v1077_v30 = vpop.f32.mrb[2].mxu1 }
 0x22b   : > { %v1016_v31 = vpack.c.bf16 %v727_v24, %v727_v24  ;;  %v730_v32 = vadd.f32 %v1077_v30, %v479_v3  ;;  %v721_v33 = vpop.f32.mrb[3].mxu1 }
 0x22c   : > { %831 = vst [vmem:[%s1370_s17 + $0xc] sm:$0xff] %v1013_v26  ;;  %v1012_v34 = vpack.c.bf16 %v719_v29, %v719_v29  ;;  %v722_v37 = vadd.f32 %v721_v33, %v479_v3  ;;  %v655_v38 = vpop.f32.mrb[4].mxu0 }
 0x22d   : > { %834 = vst [vmem:[%s1370_s17 + $0x20] sm:$0xf] %v1016_v31  ;;  %v1018_v39 = vpack.c.bf16 %v730_v32, %v730_v32  ;;  %v656_v40 = vadd.f32 %v655_v38, %v1360_v9  ;;  %v657_v41 = vpop.f32.mrb[5].mxu0 }
 0x22e   : > { %830 = vst [vmem:[%s1370_s17 + $0x8] sm:$0xf] %v1012_v34  ;;  %v1014_v42 = vpack.c.bf16 %v722_v37, %v722_v37  ;;  %v658_v20 = vadd.f32 %v657_v41, %v1362_v11  ;;  %v659_v45 = vpop.f32.mrb[6].mxu0 }
 0x22f   : > { %836 = vst [vmem:[%s1370_s17 + $0x2c] sm:$0xf] %v1018_v39  ;;  %v660_v46 = vadd.f32 %v659_v45, %v1360_v9  ;;  %v661_v47 = vpop.f32.mrb[7].mxu0 }
 0x230   : > { %832 = vst [vmem:[%s1370_s17 + $0x14] sm:$0xf] %v1014_v42  ;;  %v1015_v48 = vpack.c.bf16 %v658_v20, %v656_v40  ;;  %v662_v49 = vadd.f32 %v661_v47, %v1362_v11  ;;  %v1080_v50 = vpop.f32.mrb[4].mxu1 }
 0x231   : > { %v743_v51 = vadd.f32 %v1080_v50, %v479_v3  ;;  %v734_v52 = vpop.f32.mrb[5].mxu1 }
 0x232   : > { %833 = vst [vmem:[%s1370_s17 + $0x18] sm:$0xff] %v1015_v48  ;;  %v1017_v53 = vpack.c.bf16 %v662_v49, %v660_v46  ;;  %v735_v27 = vadd.f32 %v734_v52, %v479_v3  ;;  %v1081_v54 = vpop.f32.mrb[6].mxu1 }
 0x233   : > { %v1024_v55 = vpack.c.bf16 %v743_v51, %v743_v51  ;;  %v746_v56 = vadd.f32 %v1081_v54, %v479_v3  ;;  %v737_v57 = vpop.f32.mrb[7].mxu1 }
 0x234   : > { %835 = vst [vmem:[%s1370_s17 + $0x24] sm:$0xff] %v1017_v53  ;;  %v1020_v21 = vpack.c.bf16 %v735_v27, %v735_v27  ;;  %v738_v58 = vadd.f32 %v737_v57, %v479_v3  ;;  %v665_v59 = vpop.f32.mrb[8].mxu0 }
 0x235   : > { %842 = vst [vmem:[%s1370_s17 + $0x50] sm:$0xf] %v1024_v55  ;;  %v1026_v60 = vpack.c.bf16 %v746_v56, %v746_v56  ;;  %v666_v61 = vadd.f32 %v665_v59, %v1360_v9  ;;  %v667_v28 = vpop.f32.mrb[9].mxu0 }
 0x236   : > { %838 = vst [vmem:[%s1370_s17 + $0x38] sm:$0xf] %v1020_v21  ;;  %v1022_v35 = vpack.c.bf16 %v738_v58, %v738_v58  ;;  %v668_v62 = vadd.f32 %v667_v28, %v1362_v11  ;;  %v669_v63 = vpop.f32.mrb[10].mxu0 }
 0x237   : > { %844 = vst [vmem:[%s1370_s17 + $0x5c] sm:$0xf] %v1026_v60  ;;  %v670_v0 = vadd.f32 %v669_v63, %v1360_v9  ;;  %v671_v1 = vpop.f32.mrb[11].mxu0 }
 0x238   : > { %840 = vst [vmem:[%s1370_s17 + $0x44] sm:$0xf] %v1022_v35  ;;  %v1019_v2 = vpack.c.bf16 %v668_v62, %v666_v61  ;;  %v672_v4 = vadd.f32 %v671_v1, %v1362_v11 }
 0x23a   : > { %837 = vst [vmem:[%s1370_s17 + $0x30] sm:$0xff] %v1019_v2  ;;  %v1021_v36 = vpack.c.bf16 %v672_v4, %v670_v0 }
 0x23c   : > { %839 = vst [vmem:[%s1370_s17 + $0x3c] sm:$0xff] %v1021_v36  ;;  %v675_v5 = vpop.f32.mrb[12].mxu0 }
 0x23d   : > { %v676_v43 = vadd.f32 %v675_v5, %v1360_v9  ;;  %v677_v6 = vpop.f32.mrb[13].mxu0 }
 0x23e   : > { %v678_v7 = vadd.f32 %v677_v6, %v1362_v11  ;;  %v679_v44 = vpop.f32.mrb[14].mxu0 }
 0x23f   : > { %v680_v8 = vadd.f32 %v679_v44, %v1360_v9  ;;  %v681_v10 = vpop.f32.mrb[15].mxu0 }
 0x240   : > { %v1023_v12 = vpack.c.bf16 %v678_v7, %v676_v43  ;;  %v682_v13 = vadd.f32 %v681_v10, %v1362_v11 }
 0x242   : > { %841 = vst [vmem:[%s1370_s17 + $0x48] sm:$0xff] %v1023_v12  ;;  %v1025_v14 = vpack.c.bf16 %v682_v13, %v680_v8 }
 0x244   : > { %843 = vst [vmem:[%s1370_s17 + $0x54] sm:$0xff] %v1025_v14 }
 0x245 PF: > { %s15_s20 = sadd.s32 1, %s1178_s20   ;;  %s1417_s18 = smov %s1174_s19 }
 0x246   : > { %p12_p5 = scmp.ge.s32.totalorder %s15_s20, 4   ;;  %s1418_s19 = smov %s1420_s21 }
 0x248   :  { %14 = sbr.rel (!%p12_p5) target bundleno = 2 (0x2), region = 76 }

// kernel: _lambda_.26
= control target key start
LH: loop header
LB: loop body
LE: loop exit
PB: predicated region body
PF: predicated region fallthrough
CT: control target
= control target key end

     0   :  { %s1292_s15 = smov 0   ;;  %s1294_s16 = smov 0   ;;  %s1478_s0 = inlined_call_operand.vmem [shape: bf16[128,512], index: 0, kind: input, shape index: {}]   ;;  %s1479_s1 = inlined_call_operand.vmem [shape: bf16[512,128], index: 1, kind: input, shape index: {}]   ;;  %s1480_s2 = inlined_call_operand.vmem [shape: f32[1,128], index: 2, kind: input, shape index: {}]   ;;  %s1481_s3 = inlined_call_operand.vmem [shape: bf16[128,128], index: 3, kind: input, shape index: {}]   ;;  %s1482_s4 = inlined_call_operand.vmem [shape: bf16[128,128], index: 4, kind: output, shape index: {}]  }
   0x1   :  { %s1296_s17 = smov 0  }
   0x2 LB: > { %s26_s18 = sadd.s32 1, %s1261_s16  ;;  %p965_p0 = scmp.ge.s32.totalorder %s1265_s17, 1  ;;  %s1265_s17 = sphi %s1296_s17, %s14_s17   ;;  %s1261_s16 = sphi %s1294_s16, %s1484_s16   ;;  %s1257_s15 = sphi %s1292_s15, %s1483_s15  }
   0x3   : > { %p28_p1 = scmp.ge.s32.totalorder %s26_s18, 2  ;;  %p211_p2 = scmp.lt.s32.totalorder %s1265_s17, 3 }
   0x5   : > { %s1486_s18 = smov (%p28_p1, %s26_s18), 0  ;;  %p212_p3 = pnand %p965_p0, %p211_p2 }
   0x6   : > { %v1187_v0 = vld [vmem:[%s1479_s1 + $0x40] sm:$0xff] (!%p212_p3)   ;;  %v1191_v4 = vld [vmem:[%s1479_s1 + $0x48] sm:$0xff] (!%p212_p3)   ;;  %v1195_v8 = vld [vmem:[%s1479_s1 + $0x50] sm:$0xff] (!%p212_p3)   ;;  %s966_s29 = sshll.u32 (!%p212_p3), %s1257_s15, 3 }
   0x7   : > { %215 = sbr.rel (%p212_p3) target bundleno = 290 (0x122), region = 36  ;;  %v1188_v1 = vld [vmem:[%s1479_s1 + $0xc0] sm:$0xff] (!%p212_p3)   ;;  %1083 = vmatprep.subr.bf16.mxu0 (!%p212_p3), %v1187_v0  ;;  %v1192_v5 = vld [vmem:[%s1479_s1 + $0xc8] sm:$0xff] (!%p212_p3)   ;;  %v1196_v9 = vld [vmem:[%s1479_s1 + $0xd0] sm:$0xff] (!%p212_p3)   ;;  %p257_p4 = scmp.lt.s32.totalorder (!%p212_p3), %s966_s29, 15 }
   0x8   : > { %v1189_v2 = vld [vmem:[%s1479_s1] sm:$0xff] (!%p212_p3)   ;;  %1123 = vmatprep.subr.bf16.mxu1 (!%p212_p3), %v1188_v1  ;;  %v1193_v6 = vld [vmem:[%s1479_s1 + $0x8] sm:$0xff] (!%p212_p3)   ;;  %v1197_v10 = vld [vmem:[%s1479_s1 + $0x10] sm:$0xff] (!%p212_p3)  }
   0x9   : > { %v1190_v3 = vld [vmem:[%s1479_s1 + $0x80] sm:$0xff] (!%p212_p3)   ;;  %1084 = vmatpush3.bf16.msra.mxu0 (!%p212_p3), %v1189_v2  ;;  %v1194_v7 = vld [vmem:[%s1479_s1 + $0x88] sm:$0xff] (!%p212_p3)   ;;  %v1198_v11 = vld [vmem:[%s1479_s1 + $0x90] sm:$0xff] (!%p212_p3)  }
   0xa   : > { %1124 = vmatpush3.bf16.msra.mxu1 (!%p212_p3), %v1190_v3  ;;  %1085 = vmatprep.subr.bf16.mxu0 (!%p212_p3), %v1191_v4  ;;  %v1199_v12 = vld [vmem:[%s1479_s1 + $0x58] sm:$0xff] (!%p212_p3)   ;;  %v1203_v16 = vld [vmem:[%s1479_s1 + $0x60] sm:$0xff] (!%p212_p3)   ;;  %v1207_v20 = vld [vmem:[%s1479_s1 + $0x68] sm:$0xff] (!%p212_p3)  }
   0xb   : > { %1125 = vmatprep.subr.bf16.mxu1 (!%p212_p3), %v1192_v5  ;;  %v1200_v13 = vld [vmem:[%s1479_s1 + $0xd8] sm:$0xff] (!%p212_p3)   ;;  %v1204_v17 = vld [vmem:[%s1479_s1 + $0xe0] sm:$0xff] (!%p212_p3)   ;;  %v1208_v21 = vld [vmem:[%s1479_s1 + $0xe8] sm:$0xff] (!%p212_p3)  }
   0xc   : > { %v1201_v14 = vld [vmem:[%s1479_s1 + $0x18] sm:$0xff] (!%p212_p3)   ;;  %v1205_v18 = vld [vmem:[%s1479_s1 + $0x20] sm:$0xff] (!%p212_p3)   ;;  %v1209_v22 = vld [vmem:[%s1479_s1 + $0x28] sm:$0xff] (!%p212_p3)  }
   0xd   : > { %1086 = vmatpush3.bf16.msra.mxu0 (!%p212_p3), %v1193_v6  ;;  %v1202_v15 = vld [vmem:[%s1479_s1 + $0x98] sm:$0xff] (!%p212_p3)   ;;  %v1206_v19 = vld [vmem:[%s1479_s1 + $0xa0] sm:$0xff] (!%p212_p3)   ;;  %v1210_v23 = vld [vmem:[%s1479_s1 + $0xa8] sm:$0xff] (!%p212_p3)  }
   0xe   : > { %1126 = vmatpush3.bf16.msra.mxu1 %v1194_v7  ;;  %1087 = vmatprep.subr.bf16.mxu0 %v1195_v8  ;;  %s1488_s29 = smov (!%p257_p4, %s966_s29), 15  ;;  %v1211_v24 = vld [vmem:[%s1479_s1 + $0x70] sm:$0xff]   ;;  %v1215_v28 = vld [vmem:[%s1479_s1 + $0x78] sm:$0xff]   ;;  %v1444_v50 = vld [vmem:[%s1480_s2] ss:$0 sm:$0xff] }
   0xf   : > { %1127 = vmatprep.subr.bf16.mxu1 %v1196_v9  ;;  %v1212_v25 = vld [vmem:[%s1479_s1 + $0xf0] sm:$0xff]   ;;  %s1032_s30 = sshll.u32 %s1488_s29, 4  ;;  %v1216_v29 = vld [vmem:[%s1479_s1 + $0xf8] sm:$0xff]   ;;  %s970_s21 = sshll.u32 %s1488_s29, 2 }
  0x10   : > { %v1213_v26 = vld [vmem:[%s1479_s1 + $0x30] sm:$0xff]   ;;  %s1409_s12 = scalar_lea.vmem %s1478_s0, %s1032_s30  ;;  %v1217_v30 = vld [vmem:[%s1479_s1 + $0x38] sm:$0xff]   ;;  %s1439_s24 = scalar_lea.vmem %s1481_s3, %s970_s21 }
  0x11   : > { %1088 = vmatpush3.bf16.msra.mxu0 %v1197_v10  ;;  %v1214_v27 = vld [vmem:[%s1479_s1 + $0xb0] sm:$0xff]   ;;  %v1218_v31 = vld [vmem:[%s1479_s1 + $0xb8] sm:$0xff]   ;;  %v1042_v56 = vld [vmem:[%s1439_s24] sm:$0xff]   ;;  %s1454_s30 = scalar_lea.vmem %s1482_s4, %s970_s21 }
  0x12   : > { %1128 = vmatpush3.bf16.msra.mxu1 %v1198_v11  ;;  %1089 = vmatprep.subr.bf16.mxu0 %v1199_v12  ;;  %v1219_v32 = vld [vmem:[%s1409_s12] ss:$16 sps:$4 sm:$0xff]   ;;  %v1221_v33 = vld [vmem:[%s1409_s12 + $0x4] ss:$16 sps:$4 sm:$0xff]   ;;  %v1222_v34 = vld [vmem:[%s1409_s12 + $0x8] ss:$16 sps:$4 sm:$0xff]   ;;  %v1043_v0 = vunpack.c.l.bf16 %v1042_v56  ;;  %v1044_v2 = vunpack.c.h.bf16 %v1042_v56 }
  0x13   : > { %1129 = vmatprep.subr.bf16.mxu1 %v1200_v13  ;;  %v1224_v35 = vld [vmem:[%s1409_s12 + $0xc] ss:$16 sps:$4 sm:$0xff]   ;;  %680 = vmatprep.mubr.bf16.mxu0 %v1221_v33  ;;  %v1225_v36 = vld [vmem:[%s1409_s12 + $0x24] ss:$16 sps:$4 sm:$0xff]   ;;  %v1229_v38 = vld [vmem:[%s1409_s12 + $0x20] ss:$16 sps:$4 sm:$0xff]  }
  0x14   : > { %745 = vmatprep.mubr.bf16.mxu1 %v1224_v35  ;;  %v1227_v37 = vld [vmem:[%s1409_s12 + $0x2c] ss:$16 sps:$4 sm:$0xff]   ;;  %v1230_v39 = vld [vmem:[%s1409_s12 + $0x28] ss:$16 sps:$4 sm:$0xff]   ;;  %v1231_v40 = vld [vmem:[%s1409_s12 + $0x44] ss:$16 sps:$4 sm:$0xff]  }
  0x15   : > { %1090 = vmatpush3.bf16.msra.mxu0 %v1201_v14  ;;  %v1233_v41 = vld [vmem:[%s1409_s12 + $0x4c] ss:$16 sps:$4 sm:$0xff]   ;;  %v1235_v42 = vld [vmem:[%s1409_s12 + $0x40] ss:$16 sps:$4 sm:$0xff]   ;;  %v1236_v43 = vld [vmem:[%s1409_s12 + $0x48] ss:$16 sps:$4 sm:$0xff]  }
  0x16   : > { %1130 = vmatpush3.bf16.msra.mxu1 %v1202_v15  ;;  %1091 = vmatprep.subr.bf16.mxu0 %v1203_v16  ;;  %v1237_v44 = vld [vmem:[%s1409_s12 + $0x64] ss:$16 sps:$4 sm:$0xff]   ;;  %v1239_v45 = vld [vmem:[%s1409_s12 + $0x6c] ss:$16 sps:$4 sm:$0xff]   ;;  %v1241_v46 = vld [vmem:[%s1409_s12 + $0x60] ss:$16 sps:$4 sm:$0xff]  }
  0x17   : > { %1131 = vmatprep.subr.bf16.mxu1 %v1204_v17  ;;  %v1242_v47 = vld [vmem:[%s1409_s12 + $0x68] ss:$16 sps:$4 sm:$0xff]   ;;  %v1078_v35 = vld [vmem:[%s1439_s24 + $0x10] sm:$0xff]  }
  0x18   : > { %v1077_v13 = vld [vmem:[%s1439_s24 + $0x8] sm:$0xff]  }
  0x19   : > { %1092 = vmatpush3.bf16.msra.mxu0 %v1205_v18 }
  0x1a   : > { %1132 = vmatpush3.bf16.msra.mxu1 %v1206_v19  ;;  %1093 = vmatprep.subr.bf16.mxu0 %v1207_v20 }
  0x1b   : > { %1133 = vmatprep.subr.bf16.mxu1 %v1208_v21 }
  0x1d   : > { %1094 = vmatpush3.bf16.msra.mxu0 %v1209_v22  ;;  %v1047_v22 = vunpack.c.l.bf16 %v1077_v13 }
  0x1e   : > { %1134 = vmatpush3.bf16.msra.mxu1 %v1210_v23  ;;  %1095 = vmatprep.subr.bf16.mxu0 %v1211_v24  ;;  %v1048_v24 = vunpack.c.h.bf16 %v1077_v13 }
  0x1f   : > { %1135 = vmatprep.subr.bf16.mxu1 %v1212_v25 }
  0x21   : > { %1096 = vmatpush3.bf16.msra.mxu0 %v1213_v26 }
  0x22   : > { %1136 = vmatpush3.bf16.msra.mxu1 %v1214_v27  ;;  %1097 = vmatprep.subr.bf16.mxu0 %v1215_v28 }
  0x23   : > { %1137 = vmatprep.subr.bf16.mxu1 %v1216_v29 }
  0x25   : > { %1098 = vmatpush3.bf16.msra.mxu0 %v1217_v30 }
  0x26   : > { %1138 = vmatpush3.bf16.msra.mxu1 %v1218_v31 }
  0x28   : > { %681 = vmatmul.mubr.bf16.vlgmr.msra.gmra.mrb[0].mxu0 %v1219_v32 }
  0x29   : > { %746 = vmatmul.mubr.bf16.vlgmr.msra.gmra.mrb[0].mxu1 %v1222_v34  ;;  %688 = vmatprep.mubr.bf16.mxu0 %v1225_v36 }
  0x2a   : > { %753 = vmatprep.mubr.bf16.mxu1 %v1227_v37 }
  0x30   : > { %689 = vmatmul.mubr.bf16.gmra.mrb[4].mxu0 %v1229_v38 }
  0x31   : > { %754 = vmatmul.mubr.bf16.gmra.mrb[4].mxu1 %v1230_v39  ;;  %696 = vmatprep.mubr.bf16.mxu0 %v1231_v40 }
  0x32   : > { %761 = vmatprep.mubr.bf16.mxu1 %v1233_v41 }
  0x38   : > { %697 = vmatmul.mubr.bf16.gmra.mrb[8].mxu0 %v1235_v42 }
  0x39   : > { %762 = vmatmul.mubr.bf16.gmra.mrb[8].mxu1 %v1236_v43  ;;  %704 = vmatprep.mubr.bf16.mxu0 %v1237_v44  ;;  %v1051_v44 = vunpack.c.l.bf16 %v1078_v35 }
  0x3a   : > { %769 = vmatprep.mubr.bf16.mxu1 %v1239_v45 }
  0x40   : > { %705 = vmatmul.mubr.bf16.gmra.mrb[12].mxu0 %v1241_v46  ;;  %v1052_v46 = vunpack.c.h.bf16 %v1078_v35 }
  0x41   : > { %770 = vmatmul.mubr.bf16.gmra.mrb[12].mxu1 %v1242_v47 }
  0xfb   : > { %v1099_v48 = vpop.f32.mrb[0].mxu0 }
  0xfc   : > { %v1139_v49 = vpop.f32.mrb[0].mxu1  ;;  %v1100_v51 = vpop.f32.mrb[1].mxu0 }
  0xfd   : > { %v1101_v52 = vadd.f32 %v1100_v51, %v1099_v48  ;;  %v1140_v53 = vpop.f32.mrb[1].mxu1  ;;  %v1102_v54 = vpop.f32.mrb[2].mxu0 }
  0xfe   : > { %v1141_v55 = vadd.f32 %v1140_v53, %v1139_v49  ;;  %v1142_v57 = vpop.f32.mrb[2].mxu1  ;;  %v1103_v58 = vpop.f32.mrb[3].mxu0 }
  0xff   : > { %v683_v59 = vadd.f32 %v1101_v52, %v1444_v50  ;;  %v1104_v60 = vadd.f32 %v1103_v58, %v1102_v54  ;;  %v1143_v61 = vpop.f32.mrb[3].mxu1  ;;  %v1079_v58 = vld [vmem:[%s1439_s24 + $0x18] sm:$0xff]  }
 0x100   : > { %v1144_v62 = vadd.f32 %v1143_v61, %v1142_v57 }
 0x101   : > { %v748_v63 = vadd.f32 %v1141_v55, %v683_v59  ;;  %v686_v1 = vadd.f32 %v1104_v60, %v1444_v50 }
 0x103   : > { %v751_v3 = vadd.f32 %v1144_v62, %v686_v1  ;;  %v1105_v4 = vpop.f32.mrb[4].mxu0  ;;  %v794_v7 = vadd.f32 %v1043_v0, %v748_v63 }
 0x104   : > { %v1145_v5 = vpop.f32.mrb[4].mxu1  ;;  %v1106_v6 = vpop.f32.mrb[5].mxu0 }
 0x105   : > { %v795_v8 = vadd.f32 %v1044_v2, %v751_v3  ;;  %v1107_v9 = vadd.f32 %v1106_v6, %v1105_v4  ;;  %v1146_v10 = vpop.f32.mrb[5].mxu1  ;;  %v1108_v11 = vpop.f32.mrb[6].mxu0  ;;  %v1055_v3 = vunpack.c.l.bf16 %v1079_v58 }
 0x106   : > { %v1147_v12 = vadd.f32 %v1146_v10, %v1145_v5  ;;  %v1148_v14 = vpop.f32.mrb[6].mxu1  ;;  %v1109_v15 = vpop.f32.mrb[7].mxu0  ;;  %v1056_v5 = vunpack.c.h.bf16 %v1079_v58 }
 0x107   : > { %v1060_v16 = vpack.c.bf16 %v795_v8, %v794_v7  ;;  %v691_v17 = vadd.f32 %v1107_v9, %v1444_v50  ;;  %v1110_v18 = vadd.f32 %v1109_v15, %v1108_v11  ;;  %v1149_v19 = vpop.f32.mrb[7].mxu1 }
 0x108   : > { %v1150_v20 = vadd.f32 %v1149_v19, %v1148_v14 }
 0x109   : > { %1061 = vst [vmem:[%s1454_s30] sm:$0xff] %v1060_v16   ;;  %v756_v21 = vadd.f32 %v1147_v12, %v691_v17  ;;  %v694_v23 = vadd.f32 %v1110_v18, %v1444_v50 }
 0x10b   : > { %v759_v25 = vadd.f32 %v1150_v20, %v694_v23  ;;  %v1111_v26 = vpop.f32.mrb[8].mxu0  ;;  %v796_v29 = vadd.f32 %v1047_v22, %v756_v21 }
 0x10c   : > { %v1151_v27 = vpop.f32.mrb[8].mxu1  ;;  %v1112_v28 = vpop.f32.mrb[9].mxu0 }
 0x10d   : > { %v797_v30 = vadd.f32 %v1048_v24, %v759_v25  ;;  %v1113_v31 = vadd.f32 %v1112_v28, %v1111_v26  ;;  %v1152_v32 = vpop.f32.mrb[9].mxu1  ;;  %v1114_v33 = vpop.f32.mrb[10].mxu0 }
 0x10e   : > { %v1153_v34 = vadd.f32 %v1152_v32, %v1151_v27  ;;  %v1154_v36 = vpop.f32.mrb[10].mxu1  ;;  %v1115_v37 = vpop.f32.mrb[11].mxu0 }
 0x10f   : > { %v1065_v38 = vpack.c.bf16 %v797_v30, %v796_v29  ;;  %v699_v39 = vadd.f32 %v1113_v31, %v1444_v50  ;;  %v1116_v40 = vadd.f32 %v1115_v37, %v1114_v33  ;;  %v1155_v41 = vpop.f32.mrb[11].mxu1 }
 0x110   : > { %v1156_v42 = vadd.f32 %v1155_v41, %v1154_v36 }
 0x111   : > { %1080 = vst [vmem:[%s1454_s30 + $0x8] sm:$0xff] %v1065_v38   ;;  %v764_v43 = vadd.f32 %v1153_v34, %v699_v39  ;;  %v702_v45 = vadd.f32 %v1116_v40, %v1444_v50 }
 0x113   : > { %v767_v47 = vadd.f32 %v1156_v42, %v702_v45  ;;  %v1117_v48 = vpop.f32.mrb[12].mxu0  ;;  %v798_v52 = vadd.f32 %v1051_v44, %v764_v43 }
 0x114   : > { %v1157_v49 = vpop.f32.mrb[12].mxu1  ;;  %v1118_v51 = vpop.f32.mrb[13].mxu0 }
 0x115   : > { %v799_v53 = vadd.f32 %v1052_v46, %v767_v47  ;;  %v1119_v54 = vadd.f32 %v1118_v51, %v1117_v48  ;;  %v1158_v55 = vpop.f32.mrb[13].mxu1  ;;  %v1120_v56 = vpop.f32.mrb[14].mxu0 }
 0x116   : > { %v1159_v57 = vadd.f32 %v1158_v55, %v1157_v49  ;;  %v1160_v59 = vpop.f32.mrb[14].mxu1  ;;  %v1121_v60 = vpop.f32.mrb[15].mxu0 }
 0x117   : > { %v1070_v61 = vpack.c.bf16 %v799_v53, %v798_v52  ;;  %v707_v62 = vadd.f32 %v1119_v54, %v1444_v50  ;;  %v1122_v63 = vadd.f32 %v1121_v60, %v1120_v56  ;;  %v1161_v0 = vpop.f32.mrb[15].mxu1 }
 0x118   : > { %v1162_v1 = vadd.f32 %v1161_v0, %v1160_v59 }
 0x119   : > { %1081 = vst [vmem:[%s1454_s30 + $0x10] sm:$0xff] %v1070_v61   ;;  %v772_v2 = vadd.f32 %v1159_v57, %v707_v62  ;;  %v710_v4 = vadd.f32 %v1122_v63, %v1444_v50 }
 0x11b   : > { %v775_v6 = vadd.f32 %v1162_v1, %v710_v4  ;;  %v800_v7 = vadd.f32 %v1055_v3, %v772_v2 }
 0x11d   : > { %v801_v8 = vadd.f32 %v1056_v5, %v775_v6 }
 0x11f   : > { %v1075_v9 = vpack.c.bf16 %v801_v8, %v800_v7 }
 0x121   : > { %1082 = vst [vmem:[%s1454_s30 + $0x18] sm:$0xff] %v1075_v9  }
 0x122 PF: > { %s14_s17 = sadd.s32 1, %s1265_s17   ;;  %s1483_s15 = smov %s1261_s16 }
 0x123   : > { %p11_p5 = scmp.ge.s32.totalorder %s14_s17, 4   ;;  %s1484_s16 = smov %s1486_s18 }
 0x125   :  { %13 = sbr.rel (!%p11_p5) target bundleno = 2 (0x2), region = 75 }

// kernel: _lambda_.32
= control target key start
LH: loop header
LB: loop body
LE: loop exit
PB: predicated region body
PF: predicated region fallthrough
CT: control target
= control target key end

     0   :  { %s607_s12 = smov 0   ;;  %s609_s13 = smov 0   ;;  %s662_s0 = inlined_call_operand.vmem [shape: bf16[2,128,32], index: 0, kind: input, shape index: {}]   ;;  %s663_s1 = inlined_call_operand.vmem [shape: bf16[32,128], index: 1, kind: input, shape index: {}]   ;;  %s664_s2 = inlined_call_operand.vmem [shape: f32[32,1], index: 2, kind: input, shape index: {}]   ;;  %s665_s3 = inlined_call_operand.vmem [shape: bf16[2,32,32], index: 3, kind: output, shape index: {}]  }
   0x1   :  { %s611_s14 = smov 0  }
   0x2 LB: > { %s25_s15 = sadd.s32 1, %s580_s13  ;;  %p468_p0 = scmp.ge.s32.totalorder %s584_s14, 1  ;;  %s584_s14 = sphi %s611_s14, %s13_s14   ;;  %s580_s13 = sphi %s609_s13, %s667_s13   ;;  %s576_s12 = sphi %s607_s12, %s666_s12  }
   0x3   : > { %p27_p1 = scmp.ge.s32.totalorder %s25_s15, 2  ;;  %p156_p2 = scmp.lt.s32.totalorder %s584_s14, 3 }
   0x5   : > { %s669_s15 = smov (%p27_p1, %s25_s15), 0  ;;  %p157_p3 = pnand %p468_p0, %p156_p2 }
   0x6   : > { %p186_p4 = scmp.lt.s32.totalorder (!%p157_p3), %s576_s12, 1  ;;  %v560_v0 = vld [vmem:[%s663_s1] sm:$0xff] (!%p157_p3)   ;;  %v586_v1 = vmov (!%p157_p3), 0   ;;  %v225_v2 = vld [vmem:[%s664_s2 + $0x10] sm:$0xff] (!%p157_p3)  ;;  %v226_v4 = vld [vmem:[%s664_s2 + $0x18] sm:$0xff] (!%p157_p3)  ;;  %vm376_vm0 = vcmask (!%p157_p3), 257024  }
   0x7   : > { %160 = sbr.rel (%p157_p3) target bundleno = 272 (0x110), region = 32  ;;  %521 = vmatprep.mubr.bf16.mxu0 (!%p157_p3), %v560_v0  ;;  %551 = vset.pattern.permute.xlu1 (!%p157_p3), %v586_v1  ;;  %v223_v3 = vld [vmem:[%s664_s2] sm:$0xff] (!%p157_p3)  ;;  %v224_v5 = vld [vmem:[%s664_s2 + $0x8] sm:$0xff] (!%p157_p3) }
   0x8   : > { %550 = vset.pattern.permute.xlu0 (!%p157_p3), %v586_v1  ;;  %239 = vperm.xlu1 (!%p157_p3), %551, %v225_v2   ;;  %v561_v14 = vld [vmem:[%s663_s1 + $0x8] sm:$0xff] (!%p157_p3)  }
   0x9   : > { %229 = vperm.xlu0 (!%p157_p3), %550, %v223_v3  }
   0xc   : > { %244 = vperm.xlu1 (!%p157_p3), %551, %v226_v4  }
   0xd   : > { %234 = vperm.xlu0 (!%p157_p3), %550, %v224_v5  }
   0xe   : > { %s671_s12 = smov (!%p186_p4, %s576_s12), 1 }
   0xf   : > { %s489_s22 = sshll.u32 %s671_s12, 6  ;;  %s490_s5 = sshll.u32 %s671_s12, 4 }
  0x10   : > { %s193_s27 = scalar_lea.vmem %s662_s0, %s489_s22  ;;  %s201_s8 = scalar_lea.vmem %s665_s3, %s490_s5 }
  0x11   : > { %v552_v6 = vld [vmem:[%s193_s27] sm:$0xff]   ;;  %v553_v7 = vld [vmem:[%s193_s27 + $0x8] sm:$0xff]   ;;  %v554_v8 = vld [vmem:[%s193_s27 + $0x10] sm:$0xff]  }
  0x12   : > { %505 = vmatprep.subr.bf16.mxu0 %v552_v6  ;;  %v555_v9 = vld [vmem:[%s193_s27 + $0x18] sm:$0xff]   ;;  %v556_v10 = vld [vmem:[%s193_s27 + $0x20] sm:$0xff]   ;;  %v557_v11 = vld [vmem:[%s193_s27 + $0x28] sm:$0xff]  }
  0x13   : > { %506 = vmatpush3.bf16.msra.mxu0 %v552_v6  ;;  %v558_v12 = vld [vmem:[%s193_s27 + $0x30] sm:$0xff]   ;;  %v559_v13 = vld [vmem:[%s193_s27 + $0x38] sm:$0xff]  }
  0x14   : > { %507 = vmatprep.subr.bf16.mxu0 %v553_v7 }
  0x17   : > { %508 = vmatpush3.bf16.msra.mxu0 %v553_v7 }
  0x18   : > { %509 = vmatprep.subr.bf16.mxu0 %v554_v8 }
  0x1b   : > { %510 = vmatpush3.bf16.msra.mxu0 %v554_v8 }
  0x1c   : > { %511 = vmatprep.subr.bf16.mxu0 %v555_v9 }
  0x1f   : > { %512 = vmatpush3.bf16.msra.mxu0 %v555_v9 }
  0x20   : > { %513 = vmatprep.subr.bf16.mxu0 %v556_v10 }
  0x23   : > { %514 = vmatpush3.bf16.msra.mxu0 %v556_v10 }
  0x24   : > { %515 = vmatprep.subr.bf16.mxu0 %v557_v11 }
  0x27   : > { %516 = vmatpush3.bf16.msra.mxu0 %v557_v11 }
  0x28   : > { %517 = vmatprep.subr.bf16.mxu0 %v558_v12 }
  0x2b   : > { %518 = vmatpush3.bf16.msra.mxu0 %v558_v12 }
  0x2c   : > { %519 = vmatprep.subr.bf16.mxu0 %v559_v13 }
  0x2f   : > { %520 = vmatpush3.bf16.msra.mxu0 %v559_v13 }
  0x32   : > { %522 = vmatmul.mubr.bf16.vlgmr.msra.gmra.mrb[0].mxu0 %v561_v14 }
  0x87   : > { %v240_v15 = vpop.permute.xlu1 %239 }
  0x88   : > { %v230_v16 = vpop.permute.xlu0 %229 }
  0x8b   : > { %v245_v20 = vpop.permute.xlu1 %244 }
  0x8c   : > { %v235_v23 = vpop.permute.xlu0 %234 }
 0x105   : > { %v523_v17 = vpop.f32.mrb[0].mxu0 }
 0x106   : > { %v350_v18 = vadd.f32 %v523_v17, %v240_v15  ;;  %v341_v19 = vpop.f32.mrb[1].mxu0 }
 0x107   : > { %v342_v21 = vadd.f32 %v341_v19, %v230_v16  ;;  %v524_v22 = vpop.f32.mrb[2].mxu0 }
 0x108   : > { %v358_v24 = vmax.f32 %v350_v18, 0.0  ;;  %v353_v25 = vadd.f32 %v524_v22, %v245_v20  ;;  %v344_v26 = vpop.f32.mrb[3].mxu0 }
 0x109   : > { %v356_v27 = vmax.f32 %v342_v21, 0.0  ;;  %v345_v28 = vadd.f32 %v344_v26, %v235_v23 }
 0x10a   : > { %v493_v29 = vpack.c.bf16 %v358_v24, %v358_v24  ;;  %v359_v30 = vmax.f32 %v353_v25, 0.0 }
 0x10b   : > { %v491_v31 = vpack.c.bf16 %v356_v27, %v356_v27  ;;  %v357_v32 = vmax.f32 %v345_v28, 0.0 }
 0x10c   : > { %379 = vst.msk [vmem:[%s201_s8 + $0x8] sm:$0xf] %vm376_vm0, %v493_v29  ;;  %v494_v33 = vpack.c.bf16 %v359_v30, %v359_v30 }
 0x10d   : > { %377 = vst.msk [vmem:[%s201_s8] sm:$0xf] %vm376_vm0, %v491_v31  ;;  %v492_v34 = vpack.c.bf16 %v357_v32, %v357_v32 }
 0x10e   : > { %380 = vst.msk [vmem:[%s201_s8 + $0xc] sm:$0xf] %vm376_vm0, %v494_v33 }
 0x10f   : > { %378 = vst.msk [vmem:[%s201_s8 + $0x4] sm:$0xf] %vm376_vm0, %v492_v34 }
 0x110 PF: > { %s13_s14 = sadd.s32 1, %s584_s14   ;;  %s666_s12 = smov %s580_s13 }
 0x111   : > { %p10_p5 = scmp.ge.s32.totalorder %s13_s14, 4   ;;  %s667_s13 = smov %s669_s15 }
 0x113   :  { %12 = sbr.rel (!%p10_p5) target bundleno = 2 (0x2), region = 62 }

// kernel: _lambda_.25
= control target key start
LH: loop header
LB: loop body
LE: loop exit
PB: predicated region body
PF: predicated region fallthrough
CT: control target
= control target key end

     0   :  { %s1613_s18 = smov 0   ;;  %s1615_s19 = smov 0   ;;  %s2136_s0 = inlined_call_operand.vmem [shape: bf16[128,128], index: 0, kind: input, shape index: {}]   ;;  %s2137_s1 = inlined_call_operand.vmem [shape: f32[1,128], index: 1, kind: input, shape index: {}]   ;;  %s2138_s2 = inlined_call_operand.vmem [shape: f32[1,128], index: 2, kind: input, shape index: {}]   ;;  %s2139_s3 = inlined_call_operand.vmem [shape: bf16[128,512], index: 3, kind: input, shape index: {}]   ;;  %s2140_s4 = inlined_call_operand.vmem [shape: f32[1,512], index: 4, kind: input, shape index: {}]   ;;  %s2141_s5 = inlined_call_operand.vmem [shape: bf16[128,512], index: 5, kind: output, shape index: {}]  }
   0x1   :  { %s1617_s20 = smov 0  }
   0x2 LB: > { %s27_s21 = sadd.s32 1, %s1576_s19  ;;  %p1311_p0 = scmp.ge.s32.totalorder %s1580_s20, 1  ;;  %s1580_s20 = sphi %s1617_s20, %s15_s20   ;;  %s1576_s19 = sphi %s1615_s19, %s2143_s19   ;;  %s1572_s18 = sphi %s1613_s18, %s2142_s18  }
   0x3   : > { %p29_p1 = scmp.ge.s32.totalorder %s27_s21, 2  ;;  %p223_p2 = scmp.lt.s32.totalorder %s1580_s20, 3 }
   0x5   : > { %s2145_s21 = smov (%p29_p1, %s27_s21), 0  ;;  %p224_p3 = pnand %p1311_p0, %p223_p2 }
   0x6   : > { %s1312_s22 = sshll.u32 (!%p224_p3), %s1572_s18, 3  ;;  %v1430_v12 = vld [vmem:[%s2139_s3 + $0x4] ss:$16 sps:$4 sm:$0xff] (!%p224_p3)   ;;  %v1432_v13 = vld [vmem:[%s2139_s3 + $0xc] ss:$16 sps:$4 sm:$0xff] (!%p224_p3)  }
   0x7   : > { %227 = sbr.rel (%p224_p3) target bundleno = 653 (0x28d), region = 40  ;;  %p266_p4 = scmp.lt.s32.totalorder (!%p224_p3), %s1312_s22, 15  ;;  %v1434_v14 = vld [vmem:[%s2139_s3] ss:$16 sps:$4 sm:$0xff] (!%p224_p3)   ;;  %v1435_v15 = vld [vmem:[%s2139_s3 + $0x8] ss:$16 sps:$4 sm:$0xff] (!%p224_p3)   ;;  %648 = vmatprep.subr.bf16.mxu0 (!%p224_p3), %v1430_v12  ;;  %721 = vmatprep.subr.bf16.mxu1 (!%p224_p3), %v1432_v13 }
   0x8   : > { %v1436_v16 = vld [vmem:[%s2139_s3 + $0x24] ss:$16 sps:$4 sm:$0xff] (!%p224_p3)   ;;  %v1438_v17 = vld [vmem:[%s2139_s3 + $0x2c] ss:$16 sps:$4 sm:$0xff] (!%p224_p3)   ;;  %649 = vmatpush1.bf16.msra.mxu0 (!%p224_p3), %v1434_v14  ;;  %722 = vmatpush1.bf16.msra.mxu1 (!%p224_p3), %v1435_v15  ;;  %v1440_v50 = vld [vmem:[%s2139_s3 + $0x20] ss:$16 sps:$4 sm:$0xff] (!%p224_p3)  }
   0x9   : > { %650 = vmatprep.subr.bf16.mxu0 (!%p224_p3), %v1436_v16  ;;  %723 = vmatprep.subr.bf16.mxu1 (!%p224_p3), %v1438_v17  ;;  %v1441_v51 = vld [vmem:[%s2139_s3 + $0x28] ss:$16 sps:$4 sm:$0xff] (!%p224_p3)   ;;  %v1442_v52 = vld [vmem:[%s2139_s3 + $0x44] ss:$16 sps:$4 sm:$0xff] (!%p224_p3)   ;;  %v1444_v53 = vld [vmem:[%s2139_s3 + $0x4c] ss:$16 sps:$4 sm:$0xff] (!%p224_p3)  }
   0xa   : > { %v1446_v54 = vld [vmem:[%s2139_s3 + $0x40] ss:$16 sps:$4 sm:$0xff] (!%p224_p3)   ;;  %v1447_v55 = vld [vmem:[%s2139_s3 + $0x48] ss:$16 sps:$4 sm:$0xff] (!%p224_p3)   ;;  %v1448_v56 = vld [vmem:[%s2139_s3 + $0x64] ss:$16 sps:$4 sm:$0xff] (!%p224_p3)  }
   0xb   : > { %v1450_v57 = vld [vmem:[%s2139_s3 + $0x6c] ss:$16 sps:$4 sm:$0xff] (!%p224_p3)   ;;  %v1452_v58 = vld [vmem:[%s2139_s3 + $0x60] ss:$16 sps:$4 sm:$0xff] (!%p224_p3)   ;;  %v1453_v59 = vld [vmem:[%s2139_s3 + $0x68] ss:$16 sps:$4 sm:$0xff] (!%p224_p3)  }
   0xc   : > { %651 = vmatpush1.bf16.msra.mxu0 (!%p224_p3), %v1440_v50  ;;  %724 = vmatpush1.bf16.msra.mxu1 (!%p224_p3), %v1441_v51  ;;  %v1454_v60 = vld [vmem:[%s2139_s3 + $0x84] ss:$16 sps:$4 sm:$0xff] (!%p224_p3)   ;;  %v1456_v61 = vld [vmem:[%s2139_s3 + $0x8c] ss:$16 sps:$4 sm:$0xff] (!%p224_p3)   ;;  %v1458_v62 = vld [vmem:[%s2139_s3 + $0x80] ss:$16 sps:$4 sm:$0xff] (!%p224_p3)  }
   0xd   : > { %652 = vmatprep.subr.bf16.mxu0 (!%p224_p3), %v1442_v52  ;;  %725 = vmatprep.subr.bf16.mxu1 (!%p224_p3), %v1444_v53  ;;  %v1459_v63 = vld [vmem:[%s2139_s3 + $0x88] ss:$16 sps:$4 sm:$0xff] (!%p224_p3)   ;;  %v1582_v12 = vmov (!%p224_p3), 0   ;;  %v1318_v51 = vld [vmem:[%s2138_s2] ss:$0 sm:$0xff] (!%p224_p3) }
   0xe   : > { %s2147_s22 = smov (!%p266_p4, %s1312_s22), 15  ;;  %680 = vmatprep.mubr.bf16.mxu0 %v1582_v12  ;;  %753 = vmatprep.mubr.bf16.mxu1 %v1582_v12 }
   0xf   : > { %s1313_s23 = sshll.u32 %s2147_s22, 2  ;;  %s1369_s9 = sshll.u32 %s2147_s22, 4 }
  0x10   : > { %s269_s26 = scalar_lea.vmem %s2136_s0, %s1313_s23  ;;  %653 = vmatpush1.bf16.msra.mxu0 %v1446_v54  ;;  %726 = vmatpush1.bf16.msra.mxu1 %v1447_v55  ;;  %s1943_s11 = scalar_lea.vmem %s2141_s5, %s1369_s9 }
  0x11   : > { %v1387_v0 = vld [vmem:[%s269_s26] sm:$0xff]   ;;  %v1402_v1 = vld [vmem:[%s269_s26 + $0x8] sm:$0xff]   ;;  %v1403_v4 = vld [vmem:[%s269_s26 + $0x10] sm:$0xff]   ;;  %654 = vmatprep.subr.bf16.mxu0 %v1448_v56  ;;  %727 = vmatprep.subr.bf16.mxu1 %v1450_v57 }
  0x12   : > { %v1388_v2 = vunpack.c.l.bf16 %v1387_v0  ;;  %v1392_v3 = vunpack.c.l.bf16 %v1402_v1  ;;  %v1389_v5 = vunpack.c.h.bf16 %v1387_v0  ;;  %v1393_v6 = vunpack.c.h.bf16 %v1402_v1  ;;  %v1404_v9 = vld [vmem:[%s269_s26 + $0x18] sm:$0xff]   ;;  %v1460_v0 = vld [vmem:[%s2139_s3 + $0xa4] ss:$16 sps:$4 sm:$0xff]  }
  0x13   : > { %v1396_v7 = vunpack.c.l.bf16 %v1403_v4  ;;  %v1397_v8 = vunpack.c.h.bf16 %v1403_v4  ;;  %v1400_v10 = vunpack.c.l.bf16 %v1404_v9  ;;  %v1401_v11 = vunpack.c.h.bf16 %v1404_v9  ;;  %v1462_v1 = vld [vmem:[%s2139_s3 + $0xac] ss:$16 sps:$4 sm:$0xff]   ;;  %v1466_v4 = vld [vmem:[%s2139_s3 + $0xc4] ss:$16 sps:$4 sm:$0xff]  }
  0x14   : > { %311 = vadd.xlane.f32.xlu0 %v1388_v2  ;;  %315 = vadd.xlane.f32.xlu1 %v1392_v3  ;;  %v1474_v9 = vld [vmem:[%s2139_s3 + $0xec] ss:$16 sps:$4 sm:$0xff]  }
  0x15   : > { %655 = vmatpush1.bf16.msra.mxu0 %v1452_v58  ;;  %728 = vmatpush1.bf16.msra.mxu1 %v1453_v59 }
  0x16   : > { %656 = vmatprep.subr.bf16.mxu0 %v1454_v60  ;;  %729 = vmatprep.subr.bf16.mxu1 %v1456_v61 }
  0x18   : > { %313 = vadd.xlane.f32.xlu0 %v1389_v5  ;;  %317 = vadd.xlane.f32.xlu1 %v1393_v6 }
  0x19   : > { %657 = vmatpush1.bf16.msra.mxu0 %v1458_v62  ;;  %730 = vmatpush1.bf16.msra.mxu1 %v1459_v63 }
  0x1a   : > { %658 = vmatprep.subr.bf16.mxu0 %v1460_v0  ;;  %731 = vmatprep.subr.bf16.mxu1 %v1462_v1 }
  0x1c   : > { %319 = vadd.xlane.f32.xlu0 %v1396_v7  ;;  %321 = vadd.xlane.f32.xlu1 %v1397_v8 }
  0x20   : > { %323 = vadd.xlane.f32.xlu0 %v1400_v10  ;;  %325 = vadd.xlane.f32.xlu1 %v1401_v11 }
  0xa1   : > { %v312_v18 = vpop.xlane.xlu0 %311  ;;  %v316_v19 = vpop.xlane.xlu1 %315 }
  0xa2   : > { %v328_v20 = vmul.f32 0.0078125, %v312_v18  ;;  %v330_v21 = vmul.f32 0.0078125, %v316_v19 }
  0xa4   : > { %v1655_v22 = vsub.f32 %v1388_v2, %v328_v20  ;;  %v1657_v23 = vsub.f32 %v1392_v3, %v330_v21  ;;  %v1464_v2 = vld [vmem:[%s2139_s3 + $0xa0] ss:$16 sps:$4 sm:$0xff]   ;;  %v1465_v3 = vld [vmem:[%s2139_s3 + $0xa8] ss:$16 sps:$4 sm:$0xff]  }
  0xa5   : > { %v314_v24 = vpop.xlane.xlu0 %313  ;;  %v318_v25 = vpop.xlane.xlu1 %317  ;;  %659 = vmatpush1.bf16.msra.mxu0 %v1464_v2  ;;  %732 = vmatpush1.bf16.msra.mxu1 %v1465_v3 }
  0xa6   : > { %v329_v26 = vmul.f32 0.0078125, %v314_v24  ;;  %v344_v27 = vmul.f32 %v1655_v22, %v1655_v22  ;;  %v331_v28 = vmul.f32 0.0078125, %v318_v25  ;;  %v346_v31 = vmul.f32 %v1657_v23, %v1657_v23  ;;  %660 = vmatprep.subr.bf16.mxu0 %v1466_v4 }
  0xa8   : > { %v1661_v29 = vsub.f32 %v1389_v5, %v329_v26  ;;  %352 = vadd.xlane.f32.xlu0 %v344_v27  ;;  %v1663_v30 = vsub.f32 %v1393_v6, %v331_v28  ;;  %v1468_v5 = vld [vmem:[%s2139_s3 + $0xcc] ss:$16 sps:$4 sm:$0xff]   ;;  %v1470_v6 = vld [vmem:[%s2139_s3 + $0xc0] ss:$16 sps:$4 sm:$0xff]  }
  0xa9   : > { %v320_v32 = vpop.xlane.xlu0 %319  ;;  %v322_v33 = vpop.xlane.xlu1 %321  ;;  %733 = vmatprep.subr.bf16.mxu1 %v1468_v5  ;;  %661 = vmatpush1.bf16.msra.mxu0 %v1470_v6 }
  0xaa   : > { %v332_v34 = vmul.f32 0.0078125, %v320_v32  ;;  %v345_v35 = vmul.f32 %v1661_v29, %v1661_v29  ;;  %v333_v36 = vmul.f32 0.0078125, %v322_v33  ;;  %v347_v39 = vmul.f32 %v1663_v30, %v1663_v30 }
  0xac   : > { %v1669_v37 = vsub.f32 %v1396_v7, %v332_v34  ;;  %356 = vadd.xlane.f32.xlu0 %v346_v31  ;;  %354 = vadd.xlane.f32.xlu1 %v345_v35  ;;  %v1671_v38 = vsub.f32 %v1397_v8, %v333_v36  ;;  %v1471_v7 = vld [vmem:[%s2139_s3 + $0xc8] ss:$16 sps:$4 sm:$0xff]   ;;  %v1472_v8 = vld [vmem:[%s2139_s3 + $0xe4] ss:$16 sps:$4 sm:$0xff]  }
  0xad   : > { %v324_v40 = vpop.xlane.xlu0 %323  ;;  %v326_v41 = vpop.xlane.xlu1 %325  ;;  %734 = vmatpush1.bf16.msra.mxu1 %v1471_v7  ;;  %662 = vmatprep.subr.bf16.mxu0 %v1472_v8 }
  0xae   : > { %v334_v42 = vmul.f32 0.0078125, %v324_v40  ;;  %v348_v43 = vmul.f32 %v1669_v37, %v1669_v37  ;;  %v335_v44 = vmul.f32 0.0078125, %v326_v41  ;;  %v349_v47 = vmul.f32 %v1671_v38, %v1671_v38  ;;  %735 = vmatprep.subr.bf16.mxu1 %v1474_v9 }
  0xb0   : > { %v1677_v45 = vsub.f32 %v1400_v10, %v334_v42  ;;  %358 = vadd.xlane.f32.xlu1 %v347_v39  ;;  %360 = vadd.xlane.f32.xlu0 %v348_v43  ;;  %v1679_v46 = vsub.f32 %v1401_v11, %v335_v44  ;;  %v1476_v10 = vld [vmem:[%s2139_s3 + $0xe0] ss:$16 sps:$4 sm:$0xff]   ;;  %v1477_v11 = vld [vmem:[%s2139_s3 + $0xe8] ss:$16 sps:$4 sm:$0xff]  }
  0xb1   : > { %663 = vmatpush1.bf16.msra.mxu0 %v1476_v10  ;;  %736 = vmatpush1.bf16.msra.mxu1 %v1477_v11  ;;  %v1317_v42 = vld [vmem:[%s2137_s1] ss:$0 sm:$0xff] }
  0xb2   : > { %v350_v48 = vmul.f32 %v1677_v45, %v1677_v45  ;;  %v351_v49 = vmul.f32 %v1679_v46, %v1679_v46 }
  0xb4   : > { %362 = vadd.xlane.f32.xlu1 %v349_v47  ;;  %364 = vadd.xlane.f32.xlu0 %v350_v48 }
  0xb8   : > { %366 = vadd.xlane.f32.xlu1 %v351_v49 }
 0x135   : > { %v353_v13 = vpop.xlane.xlu0 %352 }
 0x136   : > { %v368_v14 = vmul.f32 0.0078125, %v353_v13 }
 0x138   : > { %v376_v15 = vadd.f32 1e-05, %v368_v14  ;;  %v468_v14 = vlaneseq }
 0x139   : > { %v355_v16 = vpop.xlane.xlu1 %354  ;;  %v357_v17 = vpop.xlane.xlu0 %356 }
 0x13a   : > { %1478 = vrsqrt.f32 %v376_v15  ;;  %v369_v18 = vmul.f32 0.0078125, %v355_v16  ;;  %v370_v19 = vmul.f32 0.0078125, %v357_v17  ;;  %v469_v15 = vshrl.u32 %v468_v14, 7 }
 0x13c   : > { %v377_v20 = vadd.f32 1e-05, %v369_v18  ;;  %v378_v21 = vadd.f32 1e-05, %v370_v19  ;;  %v478_v16 = vsub.s32 2, %v469_v15  ;;  %v474_v17 = vsub.s32 1, %v469_v15 }
 0x13d   : > { %v359_v24 = vpop.xlane.xlu1 %358  ;;  %v361_v25 = vpop.xlane.xlu0 %360  ;;  %v482_v18 = vsub.s32 3, %v469_v15 }
 0x13e   : > { %1480 = vrsqrt.f32 %v377_v20  ;;  %v371_v26 = vmul.f32 0.0078125, %v359_v24  ;;  %v372_v28 = vmul.f32 0.0078125, %v361_v25 }
 0x13f   : > { %1482 = vrsqrt.f32 %v378_v21 }
 0x140   : > { %v379_v27 = vadd.f32 1e-05, %v371_v26  ;;  %v380_v34 = vadd.f32 1e-05, %v372_v28 }
 0x141   : > { %v363_v31 = vpop.xlane.xlu1 %362  ;;  %v365_v36 = vpop.xlane.xlu0 %364 }
 0x142   : > { %1484 = vrsqrt.f32 %v379_v27  ;;  %v373_v32 = vmul.f32 0.0078125, %v363_v31  ;;  %v374_v44 = vmul.f32 0.0078125, %v365_v36 }
 0x144   : > { %v1479_v33 = vpop.eup %1478  ;;  %v381_v35 = vadd.f32 1e-05, %v373_v32  ;;  %v382_v53 = vadd.f32 1e-05, %v374_v44 }
 0x145   : > { %v367_v39 = vpop.xlane.xlu1 %366  ;;  %v392_v40 = vmul.f32 %v1479_v33, %v1655_v22 }
 0x146   : > { %1486 = vrsqrt.f32 %v381_v35  ;;  %v375_v41 = vmul.f32 0.0078125, %v367_v39 }
 0x147   : > { %1488 = vrsqrt.f32 %v380_v34  ;;  %v407_v48 = vmul.f32 %v1317_v42, %v392_v40 }
 0x148   : > { %v1481_v43 = vpop.eup %1480  ;;  %v383_v50 = vadd.f32 1e-05, %v375_v41 }
 0x149   : > { %v393_v47 = vmul.f32 %v1481_v43, %v1661_v29  ;;  %v1483_v49 = vpop.eup %1482  ;;  %v422_v54 = vadd.f32 %v1318_v51, %v407_v48 }
 0x14a   : > { %v394_v56 = vmul.f32 %v1483_v49, %v1657_v23  ;;  %1490 = vrsqrt.f32 %v383_v50 }
 0x14b   : > { %v408_v52 = vmul.f32 %v1317_v42, %v393_v47  ;;  %1492 = vrsqrt.f32 %v382_v53 }
 0x14c   : > { %v1485_v22 = vpop.eup %1484  ;;  %v409_v60 = vmul.f32 %v1317_v42, %v394_v56 }
 0x14d   : > { %v423_v55 = vadd.f32 %v1318_v51, %v408_v52  ;;  %v395_v57 = vmul.f32 %v1485_v22, %v1663_v30 }
 0x14e   : > { %v424_v0 = vadd.f32 %v1318_v51, %v409_v60 }
 0x14f   : > { %v430_v58 = vpack.c.bf16 %v423_v55, %v422_v54  ;;  %v410_v59 = vmul.f32 %v1317_v42, %v395_v57 }
 0x150   : > { %v1487_v29 = vpop.eup %1486 }
 0x151   : > { %681 = vmatmul.mubr.bf16.vlgmr.msra.gmra.mrb[0].mxu0 %v430_v58  ;;  %754 = vmatmul.mubr.bf16.vlgmr.msra.gmra.mrb[0].mxu1 %v430_v58  ;;  %v1489_v61 = vpop.eup %1488  ;;  %v425_v62 = vadd.f32 %v1318_v51, %v410_v59  ;;  %v397_v63 = vmul.f32 %v1487_v29, %v1671_v38 }
 0x152   : > { %690 = vmatprep.mubr.bf16.mxu0 %v1582_v12  ;;  %763 = vmatprep.mubr.bf16.mxu1 %v1582_v12  ;;  %v396_v23 = vmul.f32 %v1489_v61, %v1669_v37 }
 0x153   : > { %v431_v30 = vpack.c.bf16 %v425_v62, %v424_v0  ;;  %v412_v1 = vmul.f32 %v1317_v42, %v397_v63 }
 0x154   : > { %v1491_v2 = vpop.eup %1490  ;;  %v411_v3 = vmul.f32 %v1317_v42, %v396_v23 }
 0x155   : > { %v1493_v4 = vpop.eup %1492  ;;  %v427_v5 = vadd.f32 %v1318_v51, %v412_v1  ;;  %v399_v6 = vmul.f32 %v1491_v2, %v1679_v46  ;;  %v470_v46 = vsub.s32 0, %v469_v15 }
 0x156   : > { %v426_v7 = vadd.f32 %v1318_v51, %v411_v3  ;;  %v398_v38 = vmul.f32 %v1493_v4, %v1677_v45  ;;  %v466_v45 = vld [vmem:[%s2140_s4] sm:$0xf] }
 0x157   : > { %v414_v9 = vmul.f32 %v1317_v42, %v399_v6  ;;  %v1790_v19 = vrot.slane %v466_v45, %v470_v46  ;;  %v1792_v20 = vrot.slane %v466_v45, %v478_v16  ;;  %v1796_v21 = vrot.slane %v466_v45, %v482_v18 }
 0x158   : > { %v432_v8 = vpack.c.bf16 %v427_v5, %v426_v7  ;;  %v413_v37 = vmul.f32 %v1317_v42, %v398_v38 }
 0x159   : > { %691 = vmatmul.mubr.bf16.gmra.mrb[4].mxu0 %v431_v30  ;;  %764 = vmatmul.mubr.bf16.gmra.mrb[4].mxu1 %v431_v30  ;;  %v429_v10 = vadd.f32 %v1318_v51, %v414_v9 }
 0x15a   : > { %700 = vmatprep.mubr.bf16.mxu0 %v1582_v12  ;;  %773 = vmatprep.mubr.bf16.mxu1 %v1582_v12  ;;  %v428_v11 = vadd.f32 %v1318_v51, %v413_v37 }
 0x15c   : > { %v433_v13 = vpack.c.bf16 %v429_v10, %v428_v11 }
 0x161   : > { %701 = vmatmul.mubr.bf16.gmra.mrb[8].mxu0 %v432_v8  ;;  %774 = vmatmul.mubr.bf16.gmra.mrb[8].mxu1 %v432_v8 }
 0x162   : > { %710 = vmatprep.mubr.bf16.mxu0 %v1582_v12  ;;  %783 = vmatprep.mubr.bf16.mxu1 %v1582_v12  ;;  %v1794_v12 = vrot.slane %v466_v45, %v474_v17 }
 0x169   : > { %711 = vmatmul.mubr.bf16.gmra.mrb[12].mxu0 %v433_v13  ;;  %784 = vmatmul.mubr.bf16.gmra.mrb[12].mxu1 %v433_v13 }
 0x224   : > { %v682_v24 = vpop.f32.mrb[0].mxu0  ;;  %v755_v25 = vpop.f32.mrb[0].mxu1 }
 0x225   : > { %v1799_v26 = vadd.f32 %v682_v24, %v1790_v19  ;;  %v1802_v27 = vadd.f32 %v755_v25, %v1792_v20  ;;  %v684_v28 = vpop.f32.mrb[1].mxu0  ;;  %v757_v31 = vpop.f32.mrb[1].mxu1 }
 0x226   : > { %v1805_v32 = vadd.f32 %v684_v28, %v1794_v12  ;;  %v1808_v33 = vadd.f32 %v757_v31, %v1796_v21  ;;  %v686_v34 = vpop.f32.mrb[2].mxu0  ;;  %v759_v35 = vpop.f32.mrb[2].mxu1 }
 0x227   : > { %v794_v36 = vmul.f32 %v1799_v26, %v1799_v26  ;;  %v796_v39 = vmul.f32 %v1802_v27, %v1802_v27  ;;  %v1815_v40 = vadd.f32 %v686_v34, %v1790_v19  ;;  %v1818_v41 = vadd.f32 %v759_v35, %v1792_v20  ;;  %v688_v42 = vpop.f32.mrb[3].mxu0  ;;  %v761_v43 = vpop.f32.mrb[3].mxu1 }
 0x228   : > { %v795_v44 = vmul.f32 %v1805_v32, %v1805_v32  ;;  %v797_v47 = vmul.f32 %v1808_v33, %v1808_v33  ;;  %v1825_v48 = vadd.f32 %v688_v42, %v1794_v12  ;;  %v1828_v49 = vadd.f32 %v761_v43, %v1796_v21 }
 0x229   : > { %v826_v50 = vmul.f32 %v794_v36, %v1799_v26  ;;  %v828_v51 = vmul.f32 %v796_v39, %v1802_v27  ;;  %v798_v52 = vmul.f32 %v1815_v40, %v1815_v40  ;;  %v800_v22 = vmul.f32 %v1818_v41, %v1818_v41 }
 0x22a   : > { %v827_v53 = vmul.f32 %v795_v44, %v1805_v32  ;;  %v829_v54 = vmul.f32 %v797_v47, %v1808_v33  ;;  %v799_v55 = vmul.f32 %v1825_v48, %v1825_v48  ;;  %v801_v56 = vmul.f32 %v1828_v49, %v1828_v49 }
 0x22b   : > { %v858_v57 = vmul.f32 0.044715, %v826_v50  ;;  %v860_v58 = vmul.f32 0.044715, %v828_v51  ;;  %v830_v59 = vmul.f32 %v798_v52, %v1815_v40  ;;  %v832_v29 = vmul.f32 %v800_v22, %v1818_v41 }
 0x22c   : > { %v859_v60 = vmul.f32 0.044715, %v827_v53  ;;  %v861_v61 = vmul.f32 0.044715, %v829_v54  ;;  %v831_v62 = vmul.f32 %v799_v55, %v1825_v48  ;;  %v833_v63 = vmul.f32 %v801_v56, %v1828_v49  ;;  %v692_v0 = vpop.f32.mrb[4].mxu0  ;;  %v765_v23 = vpop.f32.mrb[4].mxu1 }
 0x22d   : > { %v890_v30 = vadd.f32 %v858_v57, %v1799_v26  ;;  %v892_v1 = vadd.f32 %v860_v58, %v1802_v27  ;;  %v862_v2 = vmul.f32 0.044715, %v830_v59  ;;  %v864_v3 = vmul.f32 0.044715, %v832_v29  ;;  %v694_v4 = vpop.f32.mrb[5].mxu0  ;;  %v767_v5 = vpop.f32.mrb[5].mxu1 }
 0x22e   : > { %v891_v6 = vadd.f32 %v859_v60, %v1805_v32  ;;  %v893_v7 = vadd.f32 %v861_v61, %v1808_v33  ;;  %v863_v38 = vmul.f32 0.044715, %v831_v62  ;;  %v865_v8 = vmul.f32 0.044715, %v833_v63  ;;  %v696_v9 = vpop.f32.mrb[6].mxu0  ;;  %v769_v37 = vpop.f32.mrb[6].mxu1 }
 0x22f   : > { %v922_v10 = vmul.f32 0.7978846, %v890_v30  ;;  %v924_v11 = vmul.f32 0.7978846, %v892_v1  ;;  %v894_v13 = vadd.f32 %v862_v2, %v1815_v40  ;;  %v896_v14 = vadd.f32 %v864_v3, %v1818_v41  ;;  %v698_v15 = vpop.f32.mrb[7].mxu0  ;;  %v771_v46 = vpop.f32.mrb[7].mxu1 }
 0x230   : > { %v923_v16 = vmul.f32 0.7978846, %v891_v6  ;;  %v925_v45 = vmul.f32 0.7978846, %v893_v7  ;;  %v895_v17 = vadd.f32 %v863_v38, %v1825_v48  ;;  %v897_v18 = vadd.f32 %v865_v8, %v1828_v49 }
 0x231   : > { %1494 = vtanh.f32 %v922_v10  ;;  %v926_v24 = vmul.f32 0.7978846, %v894_v13  ;;  %v928_v25 = vmul.f32 0.7978846, %v896_v14  ;;  %v1855_v28 = vadd.f32 %v692_v0, %v1790_v19 }
 0x232   : > { %1496 = vtanh.f32 %v924_v11  ;;  %v927_v31 = vmul.f32 0.7978846, %v895_v17  ;;  %v929_v34 = vmul.f32 0.7978846, %v897_v18  ;;  %v1858_v35 = vadd.f32 %v765_v23, %v1792_v20 }
 0x233   : > { %1498 = vtanh.f32 %v923_v16  ;;  %v802_v36 = vmul.f32 %v1855_v28, %v1855_v28  ;;  %v1863_v39 = vadd.f32 %v694_v4, %v1794_v12  ;;  %v1866_v42 = vadd.f32 %v767_v5, %v1796_v21 }
 0x234   : > { %1500 = vtanh.f32 %v925_v45  ;;  %v804_v43 = vmul.f32 %v1858_v35, %v1858_v35  ;;  %v1871_v44 = vadd.f32 %v696_v9, %v1790_v19  ;;  %v1874_v47 = vadd.f32 %v769_v37, %v1792_v20  ;;  %v1876_v50 = vpop.f32.mrb[8].mxu0  ;;  %v1878_v51 = vpop.f32.mrb[8].mxu1 }
 0x235   : > { %1502 = vtanh.f32 %v926_v24  ;;  %v834_v52 = vmul.f32 %v802_v36, %v1855_v28  ;;  %v803_v22 = vmul.f32 %v1863_v39, %v1863_v39  ;;  %v805_v53 = vmul.f32 %v1866_v42, %v1866_v42  ;;  %v1885_v54 = vpop.f32.mrb[9].mxu0  ;;  %v1887_v55 = vpop.f32.mrb[9].mxu1 }
 0x236   : > { %1504 = vtanh.f32 %v928_v25  ;;  %v836_v56 = vmul.f32 %v804_v43, %v1858_v35  ;;  %v806_v57 = vmul.f32 %v1871_v44, %v1871_v44  ;;  %v808_v58 = vmul.f32 %v1874_v47, %v1874_v47  ;;  %v1894_v59 = vpop.f32.mrb[10].mxu0  ;;  %v1896_v29 = vpop.f32.mrb[10].mxu1 }
 0x237   : > { %1506 = vtanh.f32 %v927_v31  ;;  %v866_v60 = vmul.f32 0.044715, %v834_v52  ;;  %v835_v61 = vmul.f32 %v803_v22, %v1863_v39  ;;  %v837_v62 = vmul.f32 %v805_v53, %v1866_v42  ;;  %v1900_v63 = vpop.f32.mrb[11].mxu0  ;;  %v1902_v0 = vpop.f32.mrb[11].mxu1 }
 0x238   : > { %1508 = vtanh.f32 %v929_v34  ;;  %v868_v23 = vmul.f32 0.044715, %v836_v56  ;;  %v838_v30 = vmul.f32 %v806_v57, %v1871_v44  ;;  %v840_v1 = vmul.f32 %v808_v58, %v1874_v47 }
 0x239   : > { %v898_v2 = vadd.f32 %v866_v60, %v1855_v28  ;;  %v867_v3 = vmul.f32 0.044715, %v835_v61  ;;  %v869_v4 = vmul.f32 0.044715, %v837_v62  ;;  %v1908_v5 = vadd.f32 %v698_v15, %v1794_v12 }
 0x23a   : > { %v900_v6 = vadd.f32 %v868_v23, %v1858_v35  ;;  %v870_v7 = vmul.f32 0.044715, %v838_v30  ;;  %v872_v38 = vmul.f32 0.044715, %v840_v1  ;;  %v1912_v8 = vadd.f32 %v771_v46, %v1796_v21 }
 0x23b   : > { %v1495_v9 = vpop.eup %1494  ;;  %v930_v37 = vmul.f32 0.7978846, %v898_v2  ;;  %v899_v10 = vadd.f32 %v867_v3, %v1863_v39  ;;  %v901_v11 = vadd.f32 %v869_v4, %v1866_v42  ;;  %v807_v13 = vmul.f32 %v1908_v5, %v1908_v5 }
 0x23c   : > { %v1497_v14 = vpop.eup %1496  ;;  %v986_v16 = vadd.f32 1.0, %v1495_v9  ;;  %v932_v15 = vmul.f32 0.7978846, %v900_v6  ;;  %v902_v45 = vadd.f32 %v870_v7, %v1871_v44  ;;  %v904_v17 = vadd.f32 %v872_v38, %v1874_v47  ;;  %v1920_v18 = vpop.f32.mrb[12].mxu0 }
 0x23d   : > { %v1922_v46 = vpop.f32.mrb[12].mxu1  ;;  %v1499_v24 = vpop.eup %1498  ;;  %v988_v25 = vadd.f32 1.0, %v1497_v14  ;;  %1510 = vtanh.f32 %v930_v37  ;;  %v931_v31 = vmul.f32 0.7978846, %v899_v10  ;;  %v933_v34 = vmul.f32 0.7978846, %v901_v11 }
 0x23e   : > { %v1924_v36 = vpop.f32.mrb[13].mxu0  ;;  %v1501_v43 = vpop.eup %1500  ;;  %v1018_v52 = vmul.f32 0.5, %v986_v16  ;;  %v987_v22 = vadd.f32 1.0, %v1499_v24  ;;  %1512 = vtanh.f32 %v932_v15  ;;  %v934_v53 = vmul.f32 0.7978846, %v902_v45 }
 0x23f   : > { %v1926_v56 = vpop.f32.mrb[13].mxu1  ;;  %v1928_v57 = vpop.f32.mrb[14].mxu0  ;;  %v1020_v60 = vmul.f32 0.5, %v988_v25  ;;  %v989_v61 = vadd.f32 1.0, %v1501_v43  ;;  %1514 = vtanh.f32 %v931_v31  ;;  %v936_v62 = vmul.f32 0.7978846, %v904_v17 }
 0x240   : > { %v1503_v58 = vpop.eup %1502  ;;  %v1930_v23 = vpop.f32.mrb[14].mxu1  ;;  %v1050_v2 = vmul.f32 %v1018_v52, %v1799_v26  ;;  %v1019_v3 = vmul.f32 0.5, %v987_v22  ;;  %1516 = vtanh.f32 %v933_v34  ;;  %v809_v25 = vmul.f32 %v1912_v8, %v1912_v8 }
 0x241   : > { %v1932_v30 = vpop.f32.mrb[15].mxu0  ;;  %v1505_v1 = vpop.eup %1504  ;;  %v990_v4 = vadd.f32 1.0, %v1503_v58  ;;  %v1052_v38 = vmul.f32 %v1020_v60, %v1802_v27  ;;  %v1021_v9 = vmul.f32 0.5, %v989_v61  ;;  %1518 = vtanh.f32 %v934_v53 }
 0x242   : > { %v1936_v6 = vpop.f32.mrb[15].mxu1  ;;  %v1507_v7 = vpop.eup %1506  ;;  %v992_v37 = vadd.f32 1.0, %v1505_v1  ;;  %v1051_v11 = vmul.f32 %v1019_v3, %v1805_v32  ;;  %1520 = vtanh.f32 %v936_v62  ;;  %v839_v27 = vmul.f32 %v807_v13, %v1908_v5 }
 0x243   : > { %v1509_v10 = vpop.eup %1508  ;;  %v1022_v14 = vmul.f32 0.5, %v990_v4  ;;  %v991_v16 = vadd.f32 1.0, %v1507_v7  ;;  %v1053_v26 = vmul.f32 %v1021_v9, %v1808_v33  ;;  %v841_v22 = vmul.f32 %v809_v25, %v1912_v8 }
 0x244   : > { %v1024_v15 = vmul.f32 0.5, %v992_v37  ;;  %v993_v45 = vadd.f32 1.0, %v1509_v10  ;;  %v1370_v17 = vpack.c.bf16 %v1051_v11, %v1050_v2  ;;  %v871_v52 = vmul.f32 0.044715, %v839_v27 }
 0x245   : > { %v1054_v24 = vmul.f32 %v1022_v14, %v1815_v40  ;;  %v1023_v32 = vmul.f32 0.5, %v991_v16  ;;  %v1371_v31 = vpack.c.bf16 %v1053_v26, %v1052_v38  ;;  %v1956_v13 = vadd.f32 %v1876_v50, %v1790_v19 }
 0x246   : > { %v1056_v34 = vmul.f32 %v1024_v15, %v1818_v41  ;;  %v1025_v43 = vmul.f32 0.5, %v993_v45  ;;  %1178 = vst [vmem:[%s1943_s11] sm:$0xff] %v1370_v17  ;;  %v1960_v40 = vadd.f32 %v1878_v51, %v1792_v20  ;;  %v903_v58 = vadd.f32 %v871_v52, %v1908_v5 }
 0x247   : > { %v1055_v33 = vmul.f32 %v1023_v32, %v1825_v48  ;;  %v1511_v53 = vpop.eup %1510  ;;  %1179 = vst [vmem:[%s1943_s11 + $0x8] sm:$0xff] %v1371_v31  ;;  %v1967_v48 = vadd.f32 %v1885_v54, %v1794_v12  ;;  %v1971_v60 = vadd.f32 %v1887_v55, %v1796_v21  ;;  %v873_v62 = vmul.f32 0.044715, %v841_v22 }
 0x248   : > { %v1057_v41 = vmul.f32 %v1025_v43, %v1828_v49  ;;  %v1513_v50 = vpop.eup %1512  ;;  %v994_v51 = vadd.f32 1.0, %v1511_v53  ;;  %v810_v1 = vmul.f32 %v1956_v13, %v1956_v13  ;;  %v935_v4 = vmul.f32 0.7978846, %v903_v58 }
 0x249   : > { %v1372_v61 = vpack.c.bf16 %v1055_v33, %v1054_v24  ;;  %v1515_v2 = vpop.eup %1514  ;;  %v996_v3 = vadd.f32 1.0, %v1513_v50  ;;  %v812_v54 = vmul.f32 %v1960_v40, %v1960_v40  ;;  %v905_v9 = vadd.f32 %v873_v62, %v1912_v8 }
 0x24a   : > { %v1373_v49 = vpack.c.bf16 %v1057_v41, %v1056_v34  ;;  %v1517_v7 = vpop.eup %1516  ;;  %v1026_v38 = vmul.f32 0.5, %v994_v51  ;;  %v995_v55 = vadd.f32 1.0, %v1515_v2  ;;  %v842_v37 = vmul.f32 %v810_v1, %v1956_v13 }
 0x24b   : > { %1180 = vst [vmem:[%s1943_s11 + $0x10] sm:$0xff] %v1372_v61  ;;  %v1519_v10 = vpop.eup %1518  ;;  %v1028_v11 = vmul.f32 0.5, %v996_v3  ;;  %v997_v14 = vadd.f32 1.0, %v1517_v7  ;;  %1522 = vtanh.f32 %v935_v4  ;;  %v844_v16 = vmul.f32 %v812_v54, %v1960_v40 }
 0x24c   : > { %1181 = vst [vmem:[%s1943_s11 + $0x18] sm:$0xff] %v1373_v49  ;;  %v1521_v26 = vpop.eup %1520  ;;  %v1058_v15 = vmul.f32 %v1026_v38, %v1855_v28  ;;  %v1027_v45 = vmul.f32 0.5, %v995_v55  ;;  %v998_v27 = vadd.f32 1.0, %v1519_v10  ;;  %v937_v17 = vmul.f32 0.7978846, %v905_v9 }
 0x24d   : > { %v1060_v24 = vmul.f32 %v1028_v11, %v1858_v35  ;;  %v1029_v32 = vmul.f32 0.5, %v997_v14  ;;  %v1000_v25 = vadd.f32 1.0, %v1521_v26  ;;  %v874_v31 = vmul.f32 0.044715, %v842_v37 }
 0x24e   : > { %v1059_v34 = vmul.f32 %v1027_v45, %v1863_v39  ;;  %v1030_v43 = vmul.f32 0.5, %v998_v27  ;;  %1524 = vtanh.f32 %v937_v17  ;;  %v876_v52 = vmul.f32 0.044715, %v844_v16 }
 0x24f   : > { %v1061_v33 = vmul.f32 %v1029_v32, %v1866_v42  ;;  %v1032_v22 = vmul.f32 0.5, %v1000_v25  ;;  %v906_v28 = vadd.f32 %v874_v31, %v1956_v13  ;;  %v811_v53 = vmul.f32 %v1967_v48, %v1967_v48 }
 0x250   : > { %v1374_v41 = vpack.c.bf16 %v1059_v34, %v1058_v15  ;;  %v1062_v35 = vmul.f32 %v1030_v43, %v1871_v44  ;;  %v908_v58 = vadd.f32 %v876_v52, %v1960_v40  ;;  %v813_v39 = vmul.f32 %v1971_v60, %v1971_v60 }
 0x251   : > { %v1375_v50 = vpack.c.bf16 %v1061_v33, %v1060_v24  ;;  %v1994_v61 = vmul.f32 %v1032_v22, %v1874_v47  ;;  %v938_v42 = vmul.f32 0.7978846, %v906_v28  ;;  %v843_v51 = vmul.f32 %v811_v53, %v1967_v48 }
 0x252   : > { %1182 = vst [vmem:[%s1943_s11 + $0x20] sm:$0xff] %v1374_v41  ;;  %v940_v62 = vmul.f32 0.7978846, %v908_v58  ;;  %v845_v1 = vmul.f32 %v813_v39, %v1971_v60  ;;  %v2001_v2 = vadd.f32 %v1894_v59, %v1790_v19  ;;  %v2005_v44 = vadd.f32 %v1896_v29, %v1792_v20 }
 0x253   : > { %1183 = vst [vmem:[%s1943_s11 + $0x28] sm:$0xff] %v1375_v50  ;;  %1526 = vtanh.f32 %v938_v42  ;;  %v875_v49 = vmul.f32 0.044715, %v843_v51  ;;  %v2010_v47 = vadd.f32 %v1900_v63, %v1794_v12  ;;  %v2014_v3 = vadd.f32 %v1902_v0, %v1796_v21 }
 0x254   : > { %1528 = vtanh.f32 %v940_v62  ;;  %v877_v4 = vmul.f32 0.044715, %v845_v1  ;;  %v814_v59 = vmul.f32 %v2001_v2, %v2001_v2  ;;  %v816_v29 = vmul.f32 %v2005_v44, %v2005_v44 }
 0x255   : > { %v1523_v54 = vpop.eup %1522  ;;  %v907_v7 = vadd.f32 %v875_v49, %v1967_v48  ;;  %v815_v38 = vmul.f32 %v2010_v47, %v2010_v47  ;;  %v817_v63 = vmul.f32 %v2014_v3, %v2014_v3  ;;  %v2027_v0 = vadd.f32 %v1920_v18, %v1790_v19 }
 0x256   : > { %v999_v55 = vadd.f32 1.0, %v1523_v54  ;;  %v909_v9 = vadd.f32 %v877_v4, %v1971_v60  ;;  %v846_v37 = vmul.f32 %v814_v59, %v2001_v2  ;;  %v848_v10 = vmul.f32 %v816_v29, %v2005_v44 }
 0x257   : > { %v939_v11 = vmul.f32 0.7978846, %v907_v7  ;;  %v847_v14 = vmul.f32 %v815_v38, %v2010_v47  ;;  %v849_v16 = vmul.f32 %v817_v63, %v2014_v3  ;;  %v818_v26 = vmul.f32 %v2027_v0, %v2027_v0 }
 0x258   : > { %v1525_v15 = vpop.eup %1524  ;;  %v1031_v45 = vmul.f32 0.5, %v999_v55  ;;  %v941_v27 = vmul.f32 0.7978846, %v909_v9  ;;  %v878_v18 = vmul.f32 0.044715, %v846_v37  ;;  %v2038_v17 = vadd.f32 %v1922_v46, %v1792_v20 }
 0x259   : > { %v1001_v24 = vadd.f32 1.0, %v1525_v15  ;;  %1530 = vtanh.f32 %v939_v11  ;;  %v880_v32 = vmul.f32 0.044715, %v848_v10  ;;  %v879_v25 = vmul.f32 0.044715, %v847_v14 }
 0x25a   : > { %v1063_v31 = vmul.f32 %v1031_v45, %v1908_v5  ;;  %1532 = vtanh.f32 %v941_v27  ;;  %v910_v34 = vadd.f32 %v878_v18, %v2001_v2  ;;  %v881_v43 = vmul.f32 0.044715, %v849_v16 }
 0x25b   : > { %v1033_v52 = vmul.f32 0.5, %v1001_v24  ;;  %v912_v33 = vadd.f32 %v880_v32, %v2005_v44  ;;  %v911_v22 = vadd.f32 %v879_v25, %v2010_v47  ;;  %v850_v28 = vmul.f32 %v818_v26, %v2027_v0 }
 0x25c   : > { %v1376_v46 = vpack.c.bf16 %v1063_v31, %v1062_v35  ;;  %v942_v53 = vmul.f32 0.7978846, %v910_v34  ;;  %v913_v41 = vadd.f32 %v881_v43, %v2014_v3  ;;  %v820_v58 = vmul.f32 %v2038_v17, %v2038_v17 }
 0x25d   : > { %v1527_v5 = vpop.eup %1526  ;;  %v1065_v39 = vmul.f32 %v1033_v52, %v1912_v8  ;;  %v944_v50 = vmul.f32 0.7978846, %v912_v33  ;;  %v943_v42 = vmul.f32 0.7978846, %v911_v22  ;;  %v882_v51 = vmul.f32 0.044715, %v850_v28 }
 0x25e   : > { %v1529_v62 = vpop.eup %1528  ;;  %1184 = vst [vmem:[%s1943_s11 + $0x30] sm:$0xff] %v1376_v46  ;;  %v1002_v1 = vadd.f32 1.0, %v1527_v5  ;;  %1534 = vtanh.f32 %v942_v53  ;;  %v945_v49 = vmul.f32 0.7978846, %v913_v41  ;;  %v852_v35 = vmul.f32 %v820_v58, %v2038_v17 }
 0x25f   : > { %v1377_v4 = vpack.c.bf16 %v1065_v39, %v1994_v61  ;;  %v1004_v59 = vadd.f32 1.0, %v1529_v62  ;;  %1536 = vtanh.f32 %v944_v50  ;;  %v914_v29 = vadd.f32 %v882_v51, %v2027_v0 }
 0x260   : > { %v1034_v54 = vmul.f32 0.5, %v1002_v1  ;;  %1538 = vtanh.f32 %v943_v42  ;;  %v884_v8 = vmul.f32 0.044715, %v852_v35  ;;  %v2055_v7 = vadd.f32 %v1924_v36, %v1794_v12 }
 0x261   : > { %1185 = vst [vmem:[%s1943_s11 + $0x38] sm:$0xff] %v1377_v4  ;;  %v1036_v38 = vmul.f32 0.5, %v1004_v59  ;;  %1540 = vtanh.f32 %v945_v49  ;;  %v946_v63 = vmul.f32 0.7978846, %v914_v29  ;;  %v2060_v55 = vadd.f32 %v1926_v56, %v1796_v21 }
 0x262   : > { %v1066_v61 = vmul.f32 %v1034_v54, %v1956_v13  ;;  %v916_v9 = vadd.f32 %v884_v8, %v2038_v17  ;;  %v819_v37 = vmul.f32 %v2055_v7, %v2055_v7  ;;  %v2068_v10 = vadd.f32 %v1928_v57, %v1790_v19 }
 0x263   : > { %v1531_v36 = vpop.eup %1530  ;;  %v1068_v11 = vmul.f32 %v1036_v38, %v1960_v40  ;;  %1542 = vtanh.f32 %v946_v63  ;;  %v821_v14 = vmul.f32 %v2060_v55, %v2060_v55  ;;  %v2075_v56 = vadd.f32 %v1930_v23, %v1792_v20 }
 0x264   : > { %v1533_v13 = vpop.eup %1532  ;;  %v1003_v16 = vadd.f32 1.0, %v1531_v36  ;;  %v948_v26 = vmul.f32 0.7978846, %v916_v9  ;;  %v851_v15 = vmul.f32 %v819_v37, %v2055_v7  ;;  %v822_v19 = vmul.f32 %v2068_v10, %v2068_v10 }
 0x265   : > { %v1005_v57 = vadd.f32 1.0, %v1533_v13  ;;  %v853_v45 = vmul.f32 %v821_v14, %v2060_v55  ;;  %v824_v40 = vmul.f32 %v2075_v56, %v2075_v56  ;;  %v2085_v27 = vadd.f32 %v1932_v30, %v1794_v12 }
 0x266   : > { %v1035_v20 = vmul.f32 0.5, %v1003_v16  ;;  %1544 = vtanh.f32 %v948_v26  ;;  %v883_v23 = vmul.f32 0.044715, %v851_v15  ;;  %v854_v18 = vmul.f32 %v822_v19, %v2068_v10 }
 0x267   : > { %v1037_v24 = vmul.f32 0.5, %v1005_v57  ;;  %v885_v32 = vmul.f32 0.044715, %v853_v45  ;;  %v856_v25 = vmul.f32 %v824_v40, %v2075_v56  ;;  %v823_v31 = vmul.f32 %v2085_v27, %v2085_v27 }
 0x268   : > { %v1535_v34 = vpop.eup %1534  ;;  %v1067_v43 = vmul.f32 %v1035_v20, %v1967_v48  ;;  %v915_v52 = vadd.f32 %v883_v23, %v2055_v7  ;;  %v886_v33 = vmul.f32 0.044715, %v854_v18  ;;  %v2095_v12 = vadd.f32 %v1936_v6, %v1796_v21 }
 0x269   : > { %v1537_v30 = vpop.eup %1536  ;;  %v1069_v22 = vmul.f32 %v1037_v24, %v1971_v60  ;;  %v1006_v28 = vadd.f32 1.0, %v1535_v34  ;;  %v917_v46 = vadd.f32 %v885_v32, %v2060_v55  ;;  %v888_v53 = vmul.f32 0.044715, %v856_v25 }
 0x26a   : > { %v1539_v41 = vpop.eup %1538  ;;  %v1378_v58 = vpack.c.bf16 %v1067_v43, %v1066_v61  ;;  %v1008_v5 = vadd.f32 1.0, %v1537_v30  ;;  %v947_v48 = vmul.f32 0.7978846, %v915_v52  ;;  %v918_v39 = vadd.f32 %v886_v33, %v2068_v10 }
 0x26b   : > { %v1541_v50 = vpop.eup %1540  ;;  %v1379_v42 = vpack.c.bf16 %v1069_v22, %v1068_v11  ;;  %v1038_v51 = vmul.f32 0.5, %v1006_v28  ;;  %v1007_v21 = vadd.f32 1.0, %v1539_v41  ;;  %v949_v6 = vmul.f32 0.7978846, %v917_v46 }
 0x26c   : > { %1186 = vst [vmem:[%s1943_s11 + $0x40] sm:$0xff] %v1378_v58  ;;  %v1040_v62 = vmul.f32 0.5, %v1008_v5  ;;  %v1009_v1 = vadd.f32 1.0, %v1541_v50  ;;  %1546 = vtanh.f32 %v947_v48  ;;  %v950_v60 = vmul.f32 0.7978846, %v918_v39 }
 0x26d   : > { %v1543_v49 = vpop.eup %1542  ;;  %1187 = vst [vmem:[%s1943_s11 + $0x48] sm:$0xff] %v1379_v42  ;;  %v1070_v35 = vmul.f32 %v1038_v51, %v2001_v2  ;;  %v1039_v4 = vmul.f32 0.5, %v1007_v21  ;;  %1548 = vtanh.f32 %v949_v6  ;;  %v920_v59 = vadd.f32 %v888_v53, %v2075_v56 }
 0x26e   : > { %v1072_v29 = vmul.f32 %v1040_v62, %v2005_v44  ;;  %v1041_v54 = vmul.f32 0.5, %v1009_v1  ;;  %1550 = vtanh.f32 %v950_v60  ;;  %v855_v63 = vmul.f32 %v823_v31, %v2085_v27 }
 0x26f   : > { %v1071_v8 = vmul.f32 %v1039_v4, %v2010_v47  ;;  %v952_v38 = vmul.f32 0.7978846, %v920_v59  ;;  %v825_v61 = vmul.f32 %v2095_v12, %v2095_v12  ;;  %v1010_v36 = vadd.f32 1.0, %v1543_v49 }
 0x270   : > { %v1545_v9 = vpop.eup %1544  ;;  %v1073_v2 = vmul.f32 %v1041_v54, %v2014_v3  ;;  %v887_v11 = vmul.f32 0.044715, %v855_v63 }
 0x271   : > { %v1380_v37 = vpack.c.bf16 %v1071_v8, %v1070_v35  ;;  %v1012_v44 = vadd.f32 1.0, %v1545_v9  ;;  %1552 = vtanh.f32 %v952_v38  ;;  %v857_v13 = vmul.f32 %v825_v61, %v2095_v12 }
 0x272   : > { %v1381_v14 = vpack.c.bf16 %v1073_v2, %v1072_v29  ;;  %v919_v47 = vadd.f32 %v887_v11, %v2085_v27  ;;  %v1042_v26 = vmul.f32 0.5, %v1010_v36 }
 0x273   : > { %1188 = vst [vmem:[%s1943_s11 + $0x50] sm:$0xff] %v1380_v37  ;;  %v889_v16 = vmul.f32 0.044715, %v857_v13  ;;  %v1044_v57 = vmul.f32 0.5, %v1012_v44 }
 0x274   : > { %1189 = vst [vmem:[%s1943_s11 + $0x58] sm:$0xff] %v1381_v14  ;;  %v951_v15 = vmul.f32 0.7978846, %v919_v47  ;;  %v1074_v24 = vmul.f32 %v1042_v26, %v2027_v0 }
 0x275   : > { %v921_v45 = vadd.f32 %v889_v16, %v2095_v12  ;;  %v1076_v25 = vmul.f32 %v1044_v57, %v2038_v17 }
 0x276   : > { %v1547_v19 = vpop.eup %1546  ;;  %1554 = vtanh.f32 %v951_v15 }
 0x277   : > { %v1549_v3 = vpop.eup %1548  ;;  %v1011_v40 = vadd.f32 1.0, %v1547_v19  ;;  %v953_v18 = vmul.f32 0.7978846, %v921_v45 }
 0x278   : > { %v1551_v20 = vpop.eup %1550  ;;  %v1013_v23 = vadd.f32 1.0, %v1549_v3 }
 0x279   : > { %v1043_v32 = vmul.f32 0.5, %v1011_v40  ;;  %1556 = vtanh.f32 %v953_v18  ;;  %v1014_v33 = vadd.f32 1.0, %v1551_v20 }
 0x27a   : > { %v1045_v31 = vmul.f32 0.5, %v1013_v23 }
 0x27b   : > { %v1075_v34 = vmul.f32 %v1043_v32, %v2055_v7  ;;  %v1553_v43 = vpop.eup %1552  ;;  %v1046_v46 = vmul.f32 0.5, %v1014_v33 }
 0x27c   : > { %v1077_v52 = vmul.f32 %v1045_v31, %v2060_v55  ;;  %v1016_v28 = vadd.f32 1.0, %v1553_v43 }
 0x27d   : > { %v1382_v30 = vpack.c.bf16 %v1075_v34, %v1074_v24  ;;  %v1078_v58 = vmul.f32 %v1046_v46, %v2068_v10 }
 0x27e   : > { %v1383_v22 = vpack.c.bf16 %v1077_v52, %v1076_v25  ;;  %v1048_v41 = vmul.f32 0.5, %v1016_v28 }
 0x27f   : > { %1190 = vst [vmem:[%s1943_s11 + $0x60] sm:$0xff] %v1382_v30 }
 0x280   : > { %1191 = vst [vmem:[%s1943_s11 + $0x68] sm:$0xff] %v1383_v22  ;;  %v1555_v0 = vpop.eup %1554  ;;  %v1080_v55 = vmul.f32 %v1048_v41, %v2075_v56 }
 0x281   : > { %v1015_v53 = vadd.f32 1.0, %v1555_v0 }
 0x283   : > { %v1557_v17 = vpop.eup %1556  ;;  %v1047_v5 = vmul.f32 0.5, %v1015_v53 }
 0x284   : > { %v1017_v7 = vadd.f32 1.0, %v1557_v17 }
 0x285   : > { %v1079_v48 = vmul.f32 %v1047_v5, %v2085_v27 }
 0x286   : > { %v1049_v39 = vmul.f32 0.5, %v1017_v7 }
 0x287   : > { %v1384_v50 = vpack.c.bf16 %v1079_v48, %v1078_v58 }
 0x288   : > { %v1081_v42 = vmul.f32 %v1049_v39, %v2095_v12 }
 0x289   : > { %1192 = vst [vmem:[%s1943_s11 + $0x70] sm:$0xff] %v1384_v50 }
 0x28a   : > { %v1385_v51 = vpack.c.bf16 %v1081_v42, %v1080_v55 }
 0x28c   : > { %1193 = vst [vmem:[%s1943_s11 + $0x78] sm:$0xff] %v1385_v51 }
 0x28d PF: > { %s15_s20 = sadd.s32 1, %s1580_s20   ;;  %s2142_s18 = smov %s1576_s19 }
 0x28e   : > { %p12_p5 = scmp.ge.s32.totalorder %s15_s20, 4   ;;  %s2143_s19 = smov %s2145_s21 }
 0x290   :  { %14 = sbr.rel (!%p12_p5) target bundleno = 2 (0x2), region = 76 }

// kernel: _lambda_.33
= control target key start
LH: loop header
LB: loop body
LE: loop exit
PB: predicated region body
PF: predicated region fallthrough
CT: control target
= control target key end

     0   :  { %s732_s12 = smov 0   ;;  %s734_s13 = smov 0   ;;  %s804_s0 = inlined_call_operand.vmem [shape: bf16[2,288,128], index: 0, kind: input, shape index: {}]   ;;  %s805_s1 = inlined_call_operand.vmem [shape: bf16[16,288], index: 1, kind: input, shape index: {}]   ;;  %s806_s2 = inlined_call_operand.vmem [shape: f32[16,1], index: 2, kind: input, shape index: {}]   ;;  %s807_s3 = inlined_call_operand.vmem [shape: bf16[2,16,128], index: 3, kind: output, shape index: {}]  }
   0x1   :  { %s736_s14 = smov 0  }
   0x2 LB: > { %s25_s15 = sadd.s32 1, %s703_s13  ;;  %p563_p0 = scmp.ge.s32.totalorder %s707_s14, 1  ;;  %s707_s14 = sphi %s736_s14, %s13_s14   ;;  %s703_s13 = sphi %s734_s13, %s809_s13   ;;  %s699_s12 = sphi %s732_s12, %s808_s12  }
   0x3   : > { %p27_p1 = scmp.ge.s32.totalorder %s25_s15, 2  ;;  %p156_p2 = scmp.lt.s32.totalorder %s707_s14, 3 }
   0x5   : > { %s811_s15 = smov (%p27_p1, %s25_s15), 0  ;;  %p157_p3 = pnand %p563_p0, %p156_p2 }
   0x6   : > { %p186_p4 = scmp.lt.s32.totalorder (!%p157_p3), %s699_s12, 1  ;;  %v709_v0 = vmov (!%p157_p3), 0.0   ;;  %v682_v1 = vld [vmem:[%s805_s1 + $0x4] ss:$12 sps:$4 sm:$0xff] (!%p157_p3)   ;;  %vm710_vm0 = vmmov (!%p157_p3), 0   ;;  %v711_v2 = vmov (!%p157_p3), 0  }
   0x7   : > { %160 = sbr.rel (%p157_p3) target bundleno = 277 (0x115), region = 32  ;;  %626 = vmatprep.subr.bf16.mxu1 (!%p157_p3), %v709_v0  ;;  %630 = vmatprep.mubr.msk.bf16.mxu1 (!%p157_p3), %vm710_vm0, %v709_v0  ;;  %v243_v3 = vld [vmem:[%s806_s2] sm:$0xff] (!%p157_p3)  ;;  %v244_v4 = vld [vmem:[%s806_s2 + $0x8] sm:$0xff] (!%p157_p3)  ;;  %vm378_vm1 = vcmask (!%p157_p3), 261120  }
   0x8   : > { %414 = vmatprep.mubr.bf16.mxu0 (!%p157_p3), %v682_v1  ;;  %662 = vset.pattern.permute.xlu0 (!%p157_p3), %v711_v2  ;;  %v684_v19 = vld [vmem:[%s805_s1 + $0x8] ss:$12 sps:$4 sm:$0xff] (!%p157_p3)   ;;  %v680_v24 = vld [vmem:[%s805_s1] ss:$12 sps:$4 sm:$0xff] (!%p157_p3)  }
   0x9   : > { %247 = vperm.xlu0 (!%p157_p3), %662, %v243_v3  }
   0xd   : > { %252 = vperm.xlu0 (!%p157_p3), %662, %v244_v4  }
   0xe   : > { %s813_s12 = smov (!%p186_p4, %s699_s12), 1 }
   0xf   : > { %s634_s20 = smul.u32 144, %s813_s12  ;;  %s593_s30 = sshll.u32 %s813_s12, 3 }
  0x10   : > { %s201_s6 = scalar_lea.vmem %s807_s3, %s593_s30 }
  0x11   : > { %s765_s25 = scalar_lea.vmem %s804_s0, %s634_s20 }
  0x12   : > { %v663_v5 = vld [vmem:[%s765_s25 + $0x40] sm:$0xff]   ;;  %v665_v7 = vld [vmem:[%s765_s25 + $0x48] sm:$0xff]   ;;  %v667_v9 = vld [vmem:[%s765_s25 + $0x50] sm:$0xff]  }
  0x13   : > { %v664_v6 = vld [vmem:[%s765_s25] sm:$0xff]   ;;  %601 = vmatprep.subr.bf16.mxu0 %v663_v5  ;;  %v666_v8 = vld [vmem:[%s765_s25 + $0x8] sm:$0xff]   ;;  %v668_v10 = vld [vmem:[%s765_s25 + $0x10] sm:$0xff]  }
  0x14   : > { %602 = vmatpush3.bf16.msra.mxu0 %v664_v6  ;;  %v669_v11 = vld [vmem:[%s765_s25 + $0x58] sm:$0xff]   ;;  %v671_v13 = vld [vmem:[%s765_s25 + $0x60] sm:$0xff]   ;;  %v673_v16 = vld [vmem:[%s765_s25 + $0x68] sm:$0xff]  }
  0x15   : > { %603 = vmatprep.subr.bf16.mxu0 %v665_v7  ;;  %v670_v12 = vld [vmem:[%s765_s25 + $0x18] sm:$0xff]   ;;  %v677_v14 = vld [vmem:[%s765_s25 + $0x80] sm:$0xff]   ;;  %v683_v17 = vld [vmem:[%s765_s25 + $0x88] sm:$0xff]  }
  0x16   : > { %v672_v15 = vld [vmem:[%s765_s25 + $0x20] sm:$0xff]   ;;  %627 = vmatpush3.bf16.msra.mxu1 %v677_v14  ;;  %v674_v18 = vld [vmem:[%s765_s25 + $0x28] sm:$0xff]   ;;  %v675_v20 = vld [vmem:[%s765_s25 + $0x70] sm:$0xff]  }
  0x17   : > { %628 = vmatprep.subr.bf16.mxu1 %v709_v0  ;;  %v676_v21 = vld [vmem:[%s765_s25 + $0x30] sm:$0xff]   ;;  %v678_v22 = vld [vmem:[%s765_s25 + $0x78] sm:$0xff]  }
  0x18   : > { %604 = vmatpush3.bf16.msra.mxu0 %v666_v8  ;;  %v679_v23 = vld [vmem:[%s765_s25 + $0x38] sm:$0xff]  }
  0x19   : > { %605 = vmatprep.subr.bf16.mxu0 %v667_v9 }
  0x1a   : > { %629 = vmatpush3.bf16.msra.mxu1 %v683_v17 }
  0x1c   : > { %606 = vmatpush3.bf16.msra.mxu0 %v668_v10 }
  0x1d   : > { %607 = vmatprep.subr.bf16.mxu0 %v669_v11  ;;  %631 = vmatmul.mubr.msk.bf16.vlgmr.msra.gmra.mrb[0].mxu1 %vm378_vm1, %v684_v19 }
  0x20   : > { %608 = vmatpush3.bf16.msra.mxu0 %v670_v12 }
  0x21   : > { %609 = vmatprep.subr.bf16.mxu0 %v671_v13 }
  0x24   : > { %610 = vmatpush3.bf16.msra.mxu0 %v672_v15 }
  0x25   : > { %611 = vmatprep.subr.bf16.mxu0 %v673_v16 }
  0x28   : > { %612 = vmatpush3.bf16.msra.mxu0 %v674_v18 }
  0x29   : > { %613 = vmatprep.subr.bf16.mxu0 %v675_v20 }
  0x2c   : > { %614 = vmatpush3.bf16.msra.mxu0 %v676_v21 }
  0x2d   : > { %615 = vmatprep.subr.bf16.mxu0 %v678_v22 }
  0x30   : > { %616 = vmatpush3.bf16.msra.mxu0 %v679_v23 }
  0x33   : > { %415 = vmatmul.mubr.bf16.vlgmr.msra.gmra.mrb[0].mxu0 %v680_v24 }
  0x88   : > { %v248_v29 = vpop.permute.xlu0 %247 }
  0x8c   : > { %v253_v37 = vpop.permute.xlu0 %252 }
  0xf0   : > { %v457_v25 = vpop.f32.mrb[0].mxu1 }
  0xf1   : > { %v632_v26 = vpop.f32.mrb[1].mxu1 }
  0xf2   : > { %v460_v27 = vpop.f32.mrb[2].mxu1 }
  0xf3   : > { %v633_v28 = vpop.f32.mrb[3].mxu1 }
 0x106   : > { %v617_v30 = vpop.f32.mrb[0].mxu0 }
 0x107   : > { %v618_v31 = vpop.f32.mrb[1].mxu0 }
 0x108   : > { %v619_v32 = vadd.f32 %v618_v31, %v617_v30  ;;  %v620_v33 = vpop.f32.mrb[2].mxu0 }
 0x109   : > { %v621_v34 = vpop.f32.mrb[3].mxu0 }
 0x10a   : > { %v417_v35 = vadd.f32 %v619_v32, %v248_v29  ;;  %v622_v36 = vadd.f32 %v621_v34, %v620_v33 }
 0x10c   : > { %v458_v38 = vadd.f32 %v457_v25, %v417_v35  ;;  %v420_v39 = vadd.f32 %v622_v36, %v253_v37 }
 0x10e   : > { %v461_v40 = vadd.f32 %v460_v27, %v420_v39  ;;  %v464_v41 = vmax.f32 %v458_v38, 0.0 }
 0x110   : > { %v465_v42 = vmax.f32 %v461_v40, 0.0 }
 0x112   : > { %v599_v43 = vpack.c.bf16 %v465_v42, %v464_v41 }
 0x114   : > { %600 = vst [vmem:[%s201_s6] sm:$0xff] %v599_v43  }
 0x115 PF: > { %s13_s14 = sadd.s32 1, %s707_s14   ;;  %s808_s12 = smov %s703_s13 }
 0x116   : > { %p10_p5 = scmp.ge.s32.totalorder %s13_s14, 4   ;;  %s809_s13 = smov %s811_s15 }
 0x118   :  { %12 = sbr.rel (!%p10_p5) target bundleno = 2 (0x2), region = 62 }

// kernel: _lambda_.34
= control target key start
LH: loop header
LB: loop body
LE: loop exit
PB: predicated region body
PF: predicated region fallthrough
CT: control target
= control target key end

     0   :  { %s818_s12 = smov 0   ;;  %s820_s13 = smov 0   ;;  %s905_s0 = inlined_call_operand.vmem [shape: bf16[2,144,512], index: 0, kind: input, shape index: {}]   ;;  %s906_s1 = inlined_call_operand.vmem [shape: bf16[8,144], index: 1, kind: input, shape index: {}]   ;;  %s907_s2 = inlined_call_operand.vmem [shape: f32[8,1], index: 2, kind: input, shape index: {}]   ;;  %s908_s3 = inlined_call_operand.vmem [shape: bf16[2,8,512], index: 3, kind: output, shape index: {}]  }
   0x1   :  { %s822_s14 = smov 0  }
   0x2 LB: > { %s25_s15 = sadd.s32 1, %s791_s13  ;;  %p639_p0 = scmp.ge.s32.totalorder %s795_s14, 1  ;;  %s795_s14 = sphi %s822_s14, %s13_s14   ;;  %s791_s13 = sphi %s820_s13, %s910_s13   ;;  %s787_s12 = sphi %s818_s12, %s909_s12  }
   0x3   : > { %p27_p1 = scmp.ge.s32.totalorder %s25_s15, 2  ;;  %p158_p2 = scmp.lt.s32.totalorder %s795_s14, 3 }
   0x5   : > { %s912_s15 = smov (%p27_p1, %s25_s15), 0  ;;  %p159_p3 = pnand %p639_p0, %p158_p2 }
   0x6   : > { %p191_p4 = scmp.lt.s32.totalorder (!%p159_p3), %s787_s12, 1  ;;  %v839_v0 = vld [vmem:[%s906_s1] sm:$0xff] (!%p159_p3)  ;;  %vm440_vm0 = vcmask (!%p159_p3), 130048   ;;  %v797_v3 = vmov (!%p159_p3), 0  }
   0x7   : > { %162 = sbr.rel (%p159_p3) target bundleno = 275 (0x113), region = 32  ;;  %v248_v1 = vld [vmem:[%s907_s2] sm:$0xff] (!%p159_p3)  ;;  %v644_v2 = vcombine.high (!%p159_p3), %v839_v0, %v839_v0  ;;  %716 = vset.pattern.permute.xlu0 (!%p159_p3), %v797_v3  ;;  %v643_v40 = vcombine.low (!%p159_p3), %v839_v0, %v839_v0 }
   0x8   : > { %251 = vperm.xlu0 (!%p159_p3), %716, %v248_v1  }
   0x9   : > { %681 = vmatprep.mubr.msk.bf16.mxu0 (!%p159_p3), %vm440_vm0, %v644_v2  ;;  %682 = vmatprep.mubr.msk.bf16.mxu1 (!%p159_p3), %vm440_vm0, %v644_v2 }
   0xe   : > { %s914_s12 = smov (!%p191_p4, %s787_s12), 1 }
   0xf   : > { %s690_s20 = smul.u32 288, %s914_s12  ;;  %s687_s24 = sshll.u32 %s914_s12, 4 }
  0x10   : > { %s208_s27 = scalar_lea.vmem %s908_s3, %s687_s24 }
  0x11   : > { %s852_s23 = scalar_lea.vmem %s905_s0, %s690_s20 }
  0x12   : > { %v717_v4 = vld [vmem:[%s852_s23 + $0x4] ss:$16 sps:$4 sm:$0xff]   ;;  %v719_v5 = vld [vmem:[%s852_s23 + $0xc] ss:$16 sps:$4 sm:$0xff]   ;;  %v721_v6 = vld [vmem:[%s852_s23] ss:$16 sps:$4 sm:$0xff]  }
  0x13   : > { %444 = vmatprep.subr.bf16.mxu0 %v717_v4  ;;  %v722_v7 = vld [vmem:[%s852_s23 + $0x8] ss:$16 sps:$4 sm:$0xff]   ;;  %485 = vmatprep.subr.bf16.mxu1 %v719_v5  ;;  %v723_v8 = vld [vmem:[%s852_s23 + $0x24] ss:$16 sps:$4 sm:$0xff]   ;;  %v725_v9 = vld [vmem:[%s852_s23 + $0x2c] ss:$16 sps:$4 sm:$0xff]  }
  0x14   : > { %445 = vmatpush1.bf16.msra.mxu0 %v721_v6  ;;  %486 = vmatpush1.bf16.msra.mxu1 %v722_v7  ;;  %v727_v10 = vld [vmem:[%s852_s23 + $0x20] ss:$16 sps:$4 sm:$0xff]   ;;  %v728_v11 = vld [vmem:[%s852_s23 + $0x28] ss:$16 sps:$4 sm:$0xff]   ;;  %v729_v12 = vld [vmem:[%s852_s23 + $0x44] ss:$16 sps:$4 sm:$0xff]  }
  0x15   : > { %446 = vmatprep.subr.bf16.mxu0 %v723_v8  ;;  %487 = vmatprep.subr.bf16.mxu1 %v725_v9  ;;  %v731_v13 = vld [vmem:[%s852_s23 + $0x4c] ss:$16 sps:$4 sm:$0xff]   ;;  %v733_v14 = vld [vmem:[%s852_s23 + $0x40] ss:$16 sps:$4 sm:$0xff]   ;;  %v734_v15 = vld [vmem:[%s852_s23 + $0x48] ss:$16 sps:$4 sm:$0xff]  }
  0x16   : > { %v735_v16 = vld [vmem:[%s852_s23 + $0x64] ss:$16 sps:$4 sm:$0xff]   ;;  %v737_v17 = vld [vmem:[%s852_s23 + $0x6c] ss:$16 sps:$4 sm:$0xff]   ;;  %v739_v18 = vld [vmem:[%s852_s23 + $0x60] ss:$16 sps:$4 sm:$0xff]  }
  0x17   : > { %v740_v19 = vld [vmem:[%s852_s23 + $0x68] ss:$16 sps:$4 sm:$0xff]   ;;  %v741_v20 = vld [vmem:[%s852_s23 + $0x84] ss:$16 sps:$4 sm:$0xff]   ;;  %v743_v21 = vld [vmem:[%s852_s23 + $0x8c] ss:$16 sps:$4 sm:$0xff]  }
  0x18   : > { %447 = vmatpush1.bf16.msra.mxu0 %v727_v10  ;;  %488 = vmatpush1.bf16.msra.mxu1 %v728_v11  ;;  %v745_v22 = vld [vmem:[%s852_s23 + $0x80] ss:$16 sps:$4 sm:$0xff]   ;;  %v746_v23 = vld [vmem:[%s852_s23 + $0x88] ss:$16 sps:$4 sm:$0xff]   ;;  %v747_v24 = vld [vmem:[%s852_s23 + $0xa4] ss:$16 sps:$4 sm:$0xff]  }
  0x19   : > { %448 = vmatprep.subr.bf16.mxu0 %v729_v12  ;;  %489 = vmatprep.subr.bf16.mxu1 %v731_v13  ;;  %v749_v25 = vld [vmem:[%s852_s23 + $0xac] ss:$16 sps:$4 sm:$0xff]   ;;  %v751_v26 = vld [vmem:[%s852_s23 + $0xa0] ss:$16 sps:$4 sm:$0xff]   ;;  %v752_v27 = vld [vmem:[%s852_s23 + $0xa8] ss:$16 sps:$4 sm:$0xff]  }
  0x1a   : > { %v753_v28 = vld [vmem:[%s852_s23 + $0xc4] ss:$16 sps:$4 sm:$0xff]   ;;  %v755_v29 = vld [vmem:[%s852_s23 + $0xcc] ss:$16 sps:$4 sm:$0xff]   ;;  %v757_v30 = vld [vmem:[%s852_s23 + $0xc0] ss:$16 sps:$4 sm:$0xff]  }
  0x1b   : > { %v758_v31 = vld [vmem:[%s852_s23 + $0xc8] ss:$16 sps:$4 sm:$0xff]   ;;  %v759_v32 = vld [vmem:[%s852_s23 + $0xe4] ss:$16 sps:$4 sm:$0xff]   ;;  %v761_v33 = vld [vmem:[%s852_s23 + $0xec] ss:$16 sps:$4 sm:$0xff]  }
  0x1c   : > { %449 = vmatpush1.bf16.msra.mxu0 %v733_v14  ;;  %490 = vmatpush1.bf16.msra.mxu1 %v734_v15  ;;  %v763_v34 = vld [vmem:[%s852_s23 + $0xe0] ss:$16 sps:$4 sm:$0xff]   ;;  %v764_v35 = vld [vmem:[%s852_s23 + $0xe8] ss:$16 sps:$4 sm:$0xff]   ;;  %v765_v36 = vld [vmem:[%s852_s23 + $0x104] ss:$16 sps:$4 sm:$0xff]  }
  0x1d   : > { %450 = vmatprep.subr.bf16.mxu0 %v735_v16  ;;  %491 = vmatprep.subr.bf16.mxu1 %v737_v17  ;;  %v767_v37 = vld [vmem:[%s852_s23 + $0x10c] ss:$16 sps:$4 sm:$0xff]   ;;  %v769_v38 = vld [vmem:[%s852_s23 + $0x100] ss:$16 sps:$4 sm:$0xff]   ;;  %v770_v39 = vld [vmem:[%s852_s23 + $0x108] ss:$16 sps:$4 sm:$0xff]  }
  0x20   : > { %451 = vmatpush1.bf16.msra.mxu0 %v739_v18  ;;  %492 = vmatpush1.bf16.msra.mxu1 %v740_v19 }
  0x21   : > { %452 = vmatprep.subr.bf16.mxu0 %v741_v20  ;;  %493 = vmatprep.subr.bf16.mxu1 %v743_v21 }
  0x24   : > { %453 = vmatpush1.bf16.msra.mxu0 %v745_v22  ;;  %494 = vmatpush1.bf16.msra.mxu1 %v746_v23 }
  0x25   : > { %454 = vmatprep.subr.bf16.mxu0 %v747_v24  ;;  %495 = vmatprep.subr.bf16.mxu1 %v749_v25 }
  0x28   : > { %455 = vmatpush1.bf16.msra.mxu0 %v751_v26  ;;  %496 = vmatpush1.bf16.msra.mxu1 %v752_v27 }
  0x29   : > { %456 = vmatprep.subr.bf16.mxu0 %v753_v28  ;;  %497 = vmatprep.subr.bf16.mxu1 %v755_v29 }
  0x2c   : > { %457 = vmatpush1.bf16.msra.mxu0 %v757_v30  ;;  %498 = vmatpush1.bf16.msra.mxu1 %v758_v31 }
  0x2d   : > { %458 = vmatprep.subr.bf16.mxu0 %v759_v32  ;;  %499 = vmatprep.subr.bf16.mxu1 %v761_v33 }
  0x30   : > { %459 = vmatpush1.bf16.msra.mxu0 %v763_v34  ;;  %500 = vmatpush1.bf16.msra.mxu1 %v764_v35 }
  0x31   : > { %460 = vmatprep.subr.bf16.mxu0 %v765_v36  ;;  %501 = vmatprep.subr.bf16.mxu1 %v767_v37 }
  0x34   : > { %461 = vmatpush1.bf16.msra.mxu0 %v769_v38  ;;  %502 = vmatpush1.bf16.msra.mxu1 %v770_v39 }
  0x37   : > { %477 = vmatmul.mubr.bf16.vlgmr.msra.gmra.mrb[0].mxu0 %v643_v40  ;;  %518 = vmatmul.mubr.bf16.vlgmr.msra.gmra.mrb[0].mxu1 %v643_v40 }
  0x87   : > { %v252_v41 = vpop.permute.xlu0 %251 }
 0x10a   : > { %v478_v42 = vpop.f32.mrb[0].mxu0  ;;  %v519_v43 = vpop.f32.mrb[0].mxu1 }
 0x10b   : > { %v479_v44 = vadd.f32 %v478_v42, %v252_v41  ;;  %v520_v45 = vadd.f32 %v519_v43, %v252_v41  ;;  %v480_v46 = vpop.f32.mrb[1].mxu0  ;;  %v521_v47 = vpop.f32.mrb[1].mxu1 }
 0x10c   : > { %v481_v48 = vadd.f32 %v480_v46, %v252_v41  ;;  %v522_v49 = vadd.f32 %v521_v47, %v252_v41  ;;  %v482_v50 = vpop.f32.mrb[2].mxu0  ;;  %v523_v51 = vpop.f32.mrb[2].mxu1 }
 0x10d   : > { %v526_v52 = vmax.f32 %v479_v44, 0.0  ;;  %v528_v53 = vmax.f32 %v520_v45, 0.0  ;;  %v483_v54 = vpop.f32.mrb[3].mxu0  ;;  %v524_v55 = vpop.f32.mrb[3].mxu1 }
 0x10e   : > { %v527_v56 = vmax.f32 %v481_v48, 0.0  ;;  %v529_v57 = vmax.f32 %v522_v49, 0.0 }
 0x110   : > { %v688_v58 = vpack.c.bf16 %v527_v56, %v526_v52  ;;  %v689_v59 = vpack.c.bf16 %v529_v57, %v528_v53 }
 0x112   : > { %546 = vst [vmem:[%s208_s27] sm:$0xff] %v688_v58  ;;  %547 = vst [vmem:[%s208_s27 + $0x8] sm:$0xff] %v689_v59 }
 0x113 PF: > { %s13_s14 = sadd.s32 1, %s795_s14   ;;  %s909_s12 = smov %s791_s13 }
 0x114   : > { %p10_p5 = scmp.ge.s32.totalorder %s13_s14, 4   ;;  %s910_s13 = smov %s912_s15 }
 0x116   :  { %12 = sbr.rel (!%p10_p5) target bundleno = 2 (0x2), region = 62 }

// kernel: _lambda_.35
= control target key start
LH: loop header
LB: loop body
LE: loop exit
PB: predicated region body
PF: predicated region fallthrough
CT: control target
= control target key end

     0   :  { %s657_s12 = smov 0   ;;  %s659_s13 = smov 0   ;;  %s700_s0 = inlined_call_operand.vmem [shape: bf16[2,72,512], index: 0, kind: input, shape index: {}]   ;;  %s701_s1 = inlined_call_operand.vmem [shape: bf16[4,72], index: 1, kind: input, shape index: {}]   ;;  %s702_s2 = inlined_call_operand.vmem [shape: f32[4,1], index: 2, kind: input, shape index: {}]   ;;  %s703_s3 = inlined_call_operand.vmem [shape: f32[2,4,512], index: 3, kind: output, shape index: {}]  }
   0x1   :  { %s661_s14 = smov 0  }
   0x2 LB: > { %s25_s15 = sadd.s32 1, %s630_s13  ;;  %p526_p0 = scmp.ge.s32.totalorder %s634_s14, 1  ;;  %s634_s14 = sphi %s661_s14, %s13_s14   ;;  %s630_s13 = sphi %s659_s13, %s705_s13   ;;  %s626_s12 = sphi %s657_s12, %s704_s12  }
   0x3   : > { %p27_p1 = scmp.ge.s32.totalorder %s25_s15, 2  ;;  %p158_p2 = scmp.lt.s32.totalorder %s634_s14, 3 }
   0x5   : > { %s707_s15 = smov (%p27_p1, %s25_s15), 0  ;;  %p159_p3 = pnand %p526_p0, %p158_p2 }
   0x6   : > { %p191_p4 = scmp.lt.s32.totalorder (!%p159_p3), %s626_s12, 1  ;;  %v636_v0 = vmov (!%p159_p3), 0   ;;  %v230_v1 = vld [vmem:[%s702_s2] sm:$0xf] (!%p159_p3)  ;;  %vm330_vm0 = vcmask (!%p159_p3), 1043456   ;;  %vm326_vm1 = vcmask (!%p159_p3), 588800  }
   0x7   : > { %162 = sbr.rel (%p159_p3) target bundleno = 257 (0x101), region = 32  ;;  %375 = vmatprep.mubr.bf16.mxu0 (!%p159_p3), %v636_v0  ;;  %416 = vmatprep.mubr.bf16.mxu1 (!%p159_p3), %v636_v0  ;;  %v211_v26 = vld [vmem:[%s701_s1] sm:$0x3] (!%p159_p3) }
   0x8   : > { %583 = vset.pattern.permute.xlu0 (!%p159_p3), %v636_v0 }
   0x9   : > { %233 = vperm.xlu0 (!%p159_p3), %583, %v230_v1  }
   0xe   : > { %s709_s12 = smov (!%p191_p4, %s626_s12), 1 }
   0xf   : > { %s557_s18 = smul.u32 144, %s709_s12  ;;  %s556_s24 = sshll.u32 %s709_s12, 4 }
  0x10   : > { %s208_s27 = scalar_lea.vmem %s703_s3, %s556_s24 }
  0x11   : > { %s198_s21 = scalar_lea.vmem %s700_s0, %s557_s18 }
  0x12   : > { %v584_v2 = vld [vmem:[%s198_s21 + $0x4] ss:$16 sps:$4 sm:$0xff]   ;;  %v586_v3 = vld [vmem:[%s198_s21 + $0xc] ss:$16 sps:$4 sm:$0xff]   ;;  %v588_v4 = vld [vmem:[%s198_s21] ss:$16 sps:$4 sm:$0xff]  }
  0x13   : > { %343 = vmatprep.subr.bf16.mxu0 %v584_v2  ;;  %v589_v5 = vld [vmem:[%s198_s21 + $0x8] ss:$16 sps:$4 sm:$0xff]   ;;  %384 = vmatprep.subr.bf16.mxu1 %v586_v3  ;;  %v590_v6 = vld [vmem:[%s198_s21 + $0x24] ss:$16 sps:$4 sm:$0xff]   ;;  %v592_v7 = vld [vmem:[%s198_s21 + $0x2c] ss:$16 sps:$4 sm:$0xff]  }
  0x14   : > { %344 = vmatpush1.bf16.msra.mxu0 %v588_v4  ;;  %385 = vmatpush1.bf16.msra.mxu1 %v589_v5  ;;  %v594_v8 = vld [vmem:[%s198_s21 + $0x20] ss:$16 sps:$4 sm:$0xff]   ;;  %v595_v9 = vld [vmem:[%s198_s21 + $0x28] ss:$16 sps:$4 sm:$0xff]   ;;  %v596_v10 = vld [vmem:[%s198_s21 + $0x44] ss:$16 sps:$4 sm:$0xff]  }
  0x15   : > { %345 = vmatprep.subr.bf16.mxu0 %v590_v6  ;;  %386 = vmatprep.subr.bf16.mxu1 %v592_v7  ;;  %v598_v11 = vld [vmem:[%s198_s21 + $0x4c] ss:$16 sps:$4 sm:$0xff]   ;;  %v600_v12 = vld [vmem:[%s198_s21 + $0x40] ss:$16 sps:$4 sm:$0xff]   ;;  %v601_v13 = vld [vmem:[%s198_s21 + $0x48] ss:$16 sps:$4 sm:$0xff]  }
  0x16   : > { %v602_v14 = vld [vmem:[%s198_s21 + $0x64] ss:$16 sps:$4 sm:$0xff]   ;;  %v604_v15 = vld [vmem:[%s198_s21 + $0x6c] ss:$16 sps:$4 sm:$0xff]   ;;  %v606_v18 = vld [vmem:[%s198_s21 + $0x60] ss:$16 sps:$4 sm:$0xff]  }
  0x17   : > { %v228_v16 = vld [vmem:[%s198_s21 + $0x80] sm:$0xff]  ;;  %v229_v17 = vld [vmem:[%s198_s21 + $0x88] sm:$0xff] }
  0x18   : > { %346 = vmatpush1.bf16.msra.mxu0 %v594_v8  ;;  %387 = vmatpush1.bf16.msra.mxu1 %v595_v9  ;;  %v607_v19 = vld [vmem:[%s198_s21 + $0x68] ss:$16 sps:$4 sm:$0xff]   ;;  %v547_v20 = vcombine.high %v228_v16, %v228_v16  ;;  %v549_v21 = vcombine.high %v229_v17, %v229_v17  ;;  %v546_v22 = vcombine.low %v228_v16, %v228_v16 }
  0x19   : > { %347 = vmatprep.subr.bf16.mxu0 %v596_v10  ;;  %388 = vmatprep.subr.bf16.mxu1 %v598_v11  ;;  %v548_v23 = vcombine.low %v229_v17, %v229_v17 }
  0x1a   : > { %v332_v24 = vsel %vm330_vm0, %v546_v22, 0 }
  0x1b   : > { %v338_v25 = vsel %vm330_vm0, %v548_v23, 0 }
  0x1c   : > { %348 = vmatpush1.bf16.msra.mxu0 %v600_v12  ;;  %389 = vmatpush1.bf16.msra.mxu1 %v601_v13 }
  0x1d   : > { %349 = vmatprep.subr.bf16.mxu0 %v602_v14  ;;  %390 = vmatprep.subr.bf16.mxu1 %v604_v15 }
  0x20   : > { %350 = vmatpush1.bf16.msra.mxu0 %v606_v18  ;;  %391 = vmatpush1.bf16.msra.mxu1 %v607_v19 }
  0x21   : > { %550 = vmatprep.subr.msk.bf16.mxu0 %vm330_vm0, %v547_v20  ;;  %552 = vmatprep.subr.msk.bf16.mxu1 %vm330_vm0, %v549_v21 }
  0x24   : > { %352 = vmatpush1.bf16.msra.mxu0 %v332_v24  ;;  %393 = vmatpush1.bf16.msra.mxu1 %v338_v25 }
  0x27   : > { %551 = vmatmul.mubr.msk.bf16.vlgmr.msra.gmra.mrb[0].mxu0 %vm326_vm1, %v211_v26  ;;  %553 = vmatmul.mubr.msk.bf16.vlgmr.msra.gmra.mrb[0].mxu1 %vm326_vm1, %v211_v26 }
  0x88   : > { %v234_v27 = vpop.permute.xlu0 %233 }
  0xfa   : > { %v377_v28 = vpop.f32.mrb[0].mxu0  ;;  %v418_v29 = vpop.f32.mrb[0].mxu1 }
  0xfb   : > { %v378_v30 = vadd.f32 %v377_v28, %v234_v27  ;;  %v419_v31 = vadd.f32 %v418_v29, %v234_v27  ;;  %v379_v32 = vpop.f32.mrb[1].mxu0  ;;  %v420_v33 = vpop.f32.mrb[1].mxu1 }
  0xfc   : > { %v380_v34 = vadd.f32 %v379_v32, %v234_v27  ;;  %v421_v35 = vadd.f32 %v420_v33, %v234_v27  ;;  %v381_v36 = vpop.f32.mrb[2].mxu0  ;;  %v422_v37 = vpop.f32.mrb[2].mxu1 }
  0xfd   : > { %v382_v38 = vpop.f32.mrb[3].mxu0  ;;  %v423_v39 = vpop.f32.mrb[3].mxu1 }
  0xfe   : > { %v429_v40 = vcombine.low %v378_v30, %v380_v34  ;;  %v430_v41 = vcombine.low %v419_v31, %v421_v35 }
 0x100   : > { %433 = vst [vmem:[%s208_s27] sm:$0xff] %v429_v40  ;;  %434 = vst [vmem:[%s208_s27 + $0x8] sm:$0xff] %v430_v41 }
 0x101 PF: > { %s13_s14 = sadd.s32 1, %s634_s14   ;;  %s704_s12 = smov %s630_s13 }
 0x102   : > { %p10_p5 = scmp.ge.s32.totalorder %s13_s14, 4   ;;  %s705_s13 = smov %s707_s15 }
 0x104   :  { %12 = sbr.rel (!%p10_p5) target bundleno = 2 (0x2), region = 62 }

</bundles_post_ra>
